<compile_context>
chip_gen: v7x
topology: tpu7x:2x2x1
jax: 0.10.0
libtpu: 0.0.40
codegen_flags: <defaults>
</compile_context>

<pallas_src>
import functools

import jax
import jax.numpy as jnp
from jax.experimental import pallas as pl
from jax.experimental.pallas import tpu as pltpu

N_LAYERS = 10  # Autoencoder.__init__ builds 10 ResidualLayer1d blocks


# ----------------------------------------------------------------------------
# Kernel
# ----------------------------------------------------------------------------
def _ae_kernel(x_ref, w1_ref, w2_ref, b1_ref, o_ref, *, n_sub, sub):
    """One batch tile; 10 residual layers statically unrolled, interleaved over
    `n_sub` independent `sub`-row sub-tiles to hide MXU fill/drain latency."""
    # Per-sub-tile carried activation (f32). x is re-read at the end, so it is
    # NOT held live across the unroll.
    hs = [x_ref[pl.ds(s * sub, sub), :] for s in range(n_sub)]

    for l in range(N_LAYERS):                      # static unroll
        w1 = w1_ref[l]                             # (n_in, n32+1)  bf16, BN1 scale folded
        w2 = w2_ref[l]                             # (n32+1, n_in)  bf16, BN2 scale folded, last row = b2
        b1 = b1_ref[pl.ds(l, 1), :]                # (1, n32+1)     f32, last entry = 1.0

        # Layer l for all sub-tiles (independent chains -> co-issued MXU work).
        ts = [
            jnp.maximum(
                jnp.dot(hs[s].astype(w1.dtype), w1,
                        preferred_element_type=jnp.float32) + b1,
                0.0)
            for s in range(n_sub)
        ]
        # Augmented column of t is exactly 1.0, so this dot also adds b2.
        rs = [
            jnp.dot(ts[s].astype(w2.dtype), w2,
                    preferred_element_type=jnp.float32)
            for s in range(n_sub)
        ]
        if l < N_LAYERS - 1:
            hs = [jnp.maximum(hs[s] + rs[s], 0.0) for s in range(n_sub)]
        else:                                      # activation_last=None on block 9
            hs = [hs[s] + rs[s] for s in range(n_sub)]

    # Autoencoder outer skip: main(x) + x  (re-read x -> cheap vld, no live range)
    for s in range(n_sub):
        o_ref[pl.ds(s * sub, sub), :] = hs[s] + x_ref[pl.ds(s * sub, sub), :]


# ----------------------------------------------------------------------------
# Tiling policy
# ----------------------------------------------------------------------------
def _num_tensorcores_per_chip():
    """Best-effort detection of megacore chips (2 TensorCores per device)."""
    try:
        kind = jax.devices()[0].device_kind.lower()
    except Exception:
        return 1
    return 2 if any(tag in kind for tag in ("v4", "v5p", "v7")) else 1


def _choose_tiling(B, num_cores, *, sub=64, max_rows_per_step=128):
    """Returns (rows_per_grid_step, rows_per_subtile, grid_steps)."""
    if B < sub:
        tb = max(8, -(-B // 8) * 8)                # pad tiny batches to 8 rows
        return tb, tb, 1
    n_sub_total = -(-B // sub)                     # ceil(B / sub)
    steps = max(num_cores,                         # feed every TensorCore
                -(-(n_sub_total * sub) // max_rows_per_step),  # bound vreg set
                1)
    steps = min(steps, n_sub_total)
    sub_per_step = -(-n_sub_total // steps)
    steps = -(-n_sub_total // sub_per_step)
    return sub_per_step * sub, sub, steps


# ----------------------------------------------------------------------------
# Wrapper
# ----------------------------------------------------------------------------
def autoencoder_forward(x, params, *, sub_rows=64, max_rows_per_step=128,
                        num_cores=None):
    """x: (B, n_in) float32. params = (w1_packed, w2_packed, b1_packed)."""
    w1p, w2p, b1p = params
    B, n_in = x.shape
    n32p = w1p.shape[-1]

    if num_cores is None:
        num_cores = _num_tensorcores_per_chip()
    tb, sub, steps = _choose_tiling(B, num_cores, sub=sub_rows,
                                    max_rows_per_step=max_rows_per_step)
    n_sub = tb // sub
    padded_B = tb * steps
    # Extra HBM copy only when the caller's batch does not already fit the tiling.
    x_in = x if padded_B == B else jnp.pad(x, ((0, padded_B - B), (0, 0)))

    kernel = functools.partial(_ae_kernel, n_sub=n_sub, sub=sub)

    out = pl.pallas_call(
        kernel,
        out_shape=jax.ShapeDtypeStruct((padded_B, n_in), jnp.float32),
        grid_spec=pltpu.PrefetchScalarGridSpec(
            num_scalar_prefetch=0,
            grid=(steps,),
            in_specs=[
                # activations: one batch tile per grid step
                pl.BlockSpec((tb, n_in), lambda i: (i, 0)),
                # full 10-layer packed weight/bias stacks, resident across steps
                pl.BlockSpec((N_LAYERS, n_in, n32p), lambda i: (0, 0, 0)),
                pl.BlockSpec((N_LAYERS, n32p, n_in), lambda i: (0, 0, 0)),
                pl.BlockSpec((N_LAYERS, n32p), lambda i: (0, 0)),
            ],
            out_specs=pl.BlockSpec((tb, n_in), lambda i: (i, 0)),
        ),
        compiler_params=pltpu.CompilerParams(
            # batch tiles are independent -> megacore-shardable on v4/v5p/v7x
            dimension_semantics=("parallel",)),
    )(x_in, w1p, w2p, b1p)

    return out[:B] if padded_B != B else out


# ----------------------------------------------------------------------------
# Parameters (deterministic synthetic; shapes match the PyTorch module),
# eval-mode BatchNorm folded + b2 packed into W2 via an augmented 1.0 column.
# ----------------------------------------------------------------------------
def init_params(key, n_in, *, weight_dtype=jnp.bfloat16):
    assert n_in % 32 == 0, "Autoencoder requires n_in divisible by 32"
    n32 = n_in // 32
    eps = 1e-5
    ks = jax.random.split(key, 10)

    # nn.Linear weight is (out, in); we store the (in, out) transpose so the
    # kernel computes x @ W1, t @ W2 directly.
    w1 = jax.random.normal(ks[0], (N_LAYERS, n_in, n32), jnp.float32) / jnp.sqrt(n_in)
    w2 = jax.random.normal(ks[1], (N_LAYERS, n32, n_in), jnp.float32) / jnp.sqrt(n32)

    # BatchNorm1d(n32): gamma, beta, running_mean, running_var
    g1 = 1.0 + 0.1 * jax.random.normal(ks[2], (N_LAYERS, 1, n32), jnp.float32)
    be1 = 0.1 * jax.random.normal(ks[3], (N_LAYERS, 1, n32), jnp.float32)
    m1 = 0.1 * jax.random.normal(ks[4], (N_LAYERS, 1, n32), jnp.float32)
    v1 = jax.random.uniform(ks[5], (N_LAYERS, 1, n32), jnp.float32, 0.5, 1.5)
    # BatchNorm1d(n_in)
    g2 = 1.0 + 0.1 * jax.random.normal(ks[6], (N_LAYERS, 1, n_in), jnp.float32)
    be2 = 0.1 * jax.random.normal(ks[7], (N_LAYERS, 1, n_in), jnp.float32)
    m2 = 0.1 * jax.random.normal(ks[8], (N_LAYERS, 1, n_in), jnp.float32)
    v2 = jax.random.uniform(ks[9], (N_LAYERS, 1, n_in), jnp.float32, 0.5, 1.5)

    # Eval-mode BN as per-feature scale/shift: y = x*scale + shift
    s1 = g1 / jnp.sqrt(v1 + eps)
    b1 = be1 - m1 * s1
    s2 = g2 / jnp.sqrt(v2 + eps)
    b2 = be2 - m2 * s2

    w1_folded = w1 * s1                          # (L, n_in, n32)
    w2_folded = w2 * s2                          # (L, n32, n_in)

    # Pack the augmented "bias" column/row:
    #   W1 gets an extra all-zero output column, b1 gets a 1.0 there
    #   -> t[:, n32] = ReLU(0 + 1) == 1.0 exactly
    #   W2 gets b2 appended as its last row -> t @ W2 already includes +b2.
    w1_packed = jnp.concatenate(
        [w1_folded, jnp.zeros((N_LAYERS, n_in, 1), jnp.float32)], axis=-1)
    b1_packed = jnp.concatenate(
        [b1.reshape(N_LAYERS, n32), jnp.ones((N_LAYERS, 1), jnp.float32)], axis=-1)
    w2_packed = jnp.concatenate(
        [w2_folded, b2.reshape(N_LAYERS, 1, n_in)], axis=1)

    # Weights in bf16 (MXU-native); bias stays f32 (elementwise path stays f32).
    # NOTE: default-precision f32 matmuls on TPU already truncate MXU inputs to
    # bf16, so this costs little accuracy vs. the f32-stored variant.
    return (w1_packed.astype(weight_dtype),
            w2_packed.astype(weight_dtype),
            b1_packed)


# ----------------------------------------------------------------------------
# Pure-JAX reference of the (eval-mode, BN-folded) PyTorch forward pass, using
# the exact same packed parameters and dtypes as the kernel.
# ----------------------------------------------------------------------------
def reference(x, params):
    w1p, w2p, b1p = params
    h = x.astype(jnp.float32)
    for l in range(N_LAYERS):
        t = jnp.maximum(
            jnp.dot(h.astype(w1p.dtype), w1p[l],
                    preferred_element_type=jnp.float32) + b1p[l], 0.0)
        r = jnp.dot(t.astype(w2p.dtype), w2p[l],
                    preferred_element_type=jnp.float32)
        h = h + r
        if l < N_LAYERS - 1:
            h = jnp.maximum(h, 0.0)
    return h + x


if __name__ == "__main__":
    key = jax.random.PRNGKey(0)
    n_in = 256          # n32 = n_in / 32 = 8 (smallest MXU-friendly width)
    B = 128
    kx, kp = jax.random.split(key)
    x = jax.random.normal(kx, (B, n_in), jnp.float32)
    params = init_params(kp, n_in)

    ref = reference(x, params)

    # 1) auto-detected tiling (1 step x 2 interleaved sub-tiles on v5e/v6e,
    #    2 parallel steps on megacore chips)
    out = autoencoder_forward(x, params)
    jax.block_until_ready(out)
    assert out.shape == (B, n_in)
    assert jnp.allclose(out, ref, atol=2e-3, rtol=2e-3), "mismatch (auto tiling)"

    # 2) forced 2-step grid (exercises the multi-grid-step / megacore path)
    out2 = autoencoder_forward(x, params, num_cores=2)
    jax.block_until_ready(out2)
    assert jnp.allclose(out2, ref, atol=2e-3, rtol=2e-3), "mismatch (2-step grid)"

    print("KERNEL_OK")
</pallas_src>

<mosaic_0001>
module attributes {stable_mosaic.version = 11 : i64} {
  func.func @_ae_kernel(%arg0: i32, %arg1: memref<128x256xf32, #tpu.memory_space<vmem>>, %arg2: memref<10x256x9xbf16, #tpu.memory_space<vmem>>, %arg3: memref<10x9x256xbf16, #tpu.memory_space<vmem>>, %arg4: memref<10x9xf32, #tpu.memory_space<vmem>>, %arg5: memref<128x256xf32, #tpu.memory_space<vmem>>) attributes {dimension_semantics = [#tpu.dimension_semantics<parallel>], iteration_bounds = array<i64: 1>, scalar_prefetch = 0 : i64, scratch_operands = 0 : i64, tpu.core_type = #tpu.core_type<tc>, window_params = [{transform_indices = @transform_0, window_bounds = array<i64: 128, 256>}, {pipeline_mode = #tpu.pipeline_mode<synchronous>, transform_indices = @transform_1, window_bounds = array<i64: 10, 256, 9>}, {pipeline_mode = #tpu.pipeline_mode<synchronous>, transform_indices = @transform_2, window_bounds = array<i64: 10, 9, 256>}, {pipeline_mode = #tpu.pipeline_mode<synchronous>, transform_indices = @transform_3, window_bounds = array<i64: 10, 9>}, {transform_indices = @transform_4, window_bounds = array<i64: 128, 256>}]} {
    %c0 = arith.constant 0 : index
    %c0_0 = arith.constant 0 : index
    %0 = vector.load %arg1[%c0, %c0_0] : memref<128x256xf32, #tpu.memory_space<vmem>>, vector<64x256xf32>
    %c64 = arith.constant 64 : index
    %c0_1 = arith.constant 0 : index
    %1 = vector.load %arg1[%c64, %c0_1] : memref<128x256xf32, #tpu.memory_space<vmem>>, vector<64x256xf32>
    %c0_2 = arith.constant 0 : index
    %c0_3 = arith.constant 0 : index
    %c0_4 = arith.constant 0 : index
    %2 = vector.load %arg2[%c0_2, %c0_3, %c0_4] : memref<10x256x9xbf16, #tpu.memory_space<vmem>>, vector<1x256x9xbf16>
    %3 = vector.shape_cast %2 : vector<1x256x9xbf16> to vector<256x9xbf16>
    %c0_5 = arith.constant 0 : index
    %c0_6 = arith.constant 0 : index
    %c0_7 = arith.constant 0 : index
    %4 = vector.load %arg3[%c0_5, %c0_6, %c0_7] : memref<10x9x256xbf16, #tpu.memory_space<vmem>>, vector<1x9x256xbf16>
    %5 = vector.shape_cast %4 : vector<1x9x256xbf16> to vector<9x256xbf16>
    %c0_8 = arith.constant 0 : index
    %c0_9 = arith.constant 0 : index
    %6 = vector.load %arg4[%c0_8, %c0_9] : memref<10x9xf32, #tpu.memory_space<vmem>>, vector<1x9xf32>
    %7 = arith.truncf %0 : vector<64x256xf32> to vector<64x256xbf16>
    %cst = arith.constant dense<0.000000e+00> : vector<64x9xf32>
    %8 = tpu.matmul %7, %3, %cst {dimension_numbers = #tpu.dot_dimension_numbers<[1], [0], [0], [1], [0, 0, 1, 1], [], []>} : vector<64x256xbf16>, vector<256x9xbf16>, vector<64x9xf32> -> vector<64x9xf32>
    %9 = vector.broadcast %6 : vector<1x9xf32> to vector<64x9xf32>
    %10 = arith.addf %8, %9 : vector<64x9xf32>
    %cst_10 = arith.constant 0.000000e+00 : f32
    %11 = vector.broadcast %cst_10 : f32 to vector<64x9xf32>
    %12 = arith.maximumf %10, %11 : vector<64x9xf32>
    %13 = arith.truncf %1 : vector<64x256xf32> to vector<64x256xbf16>
    %cst_11 = arith.constant dense<0.000000e+00> : vector<64x9xf32>
    %14 = tpu.matmul %13, %3, %cst_11 {dimension_numbers = #tpu.dot_dimension_numbers<[1], [0], [0], [1], [0, 0, 1, 1], [], []>} : vector<64x256xbf16>, vector<256x9xbf16>, vector<64x9xf32> -> vector<64x9xf32>
    %15 = vector.broadcast %6 : vector<1x9xf32> to vector<64x9xf32>
    %16 = arith.addf %14, %15 : vector<64x9xf32>
    %cst_12 = arith.constant 0.000000e+00 : f32
    %17 = vector.broadcast %cst_12 : f32 to vector<64x9xf32>
    %18 = arith.maximumf %16, %17 : vector<64x9xf32>
    %19 = arith.truncf %12 : vector<64x9xf32> to vector<64x9xbf16>
    %cst_13 = arith.constant dense<0.000000e+00> : vector<64x256xf32>
    %20 = tpu.matmul %19, %5, %cst_13 {dimension_numbers = #tpu.dot_dimension_numbers<[1], [0], [0], [1], [0, 0, 1, 1], [], []>} : vector<64x9xbf16>, vector<9x256xbf16>, vector<64x256xf32> -> vector<64x256xf32>
    %21 = arith.truncf %18 : vector<64x9xf32> to vector<64x9xbf16>
    %cst_14 = arith.constant dense<0.000000e+00> : vector<64x256xf32>
    %22 = tpu.matmul %21, %5, %cst_14 {dimension_numbers = #tpu.dot_dimension_numbers<[1], [0], [0], [1], [0, 0, 1, 1], [], []>} : vector<64x9xbf16>, vector<9x256xbf16>, vector<64x256xf32> -> vector<64x256xf32>
    %23 = arith.addf %0, %20 : vector<64x256xf32>
    %cst_15 = arith.constant 0.000000e+00 : f32
    %24 = vector.broadcast %cst_15 : f32 to vector<64x256xf32>
    %25 = arith.maximumf %23, %24 : vector<64x256xf32>
    %26 = arith.addf %1, %22 : vector<64x256xf32>
    %cst_16 = arith.constant 0.000000e+00 : f32
    %27 = vector.broadcast %cst_16 : f32 to vector<64x256xf32>
    %28 = arith.maximumf %26, %27 : vector<64x256xf32>
    %c1 = arith.constant 1 : index
    %c0_17 = arith.constant 0 : index
    %c0_18 = arith.constant 0 : index
    %29 = vector.load %arg2[%c1, %c0_17, %c0_18] : memref<10x256x9xbf16, #tpu.memory_space<vmem>>, vector<1x256x9xbf16>
    %30 = vector.shape_cast %29 : vector<1x256x9xbf16> to vector<256x9xbf16>
    %c1_19 = arith.constant 1 : index
    %c0_20 = arith.constant 0 : index
    %c0_21 = arith.constant 0 : index
    %31 = vector.load %arg3[%c1_19, %c0_20, %c0_21] : memref<10x9x256xbf16, #tpu.memory_space<vmem>>, vector<1x9x256xbf16>
    %32 = vector.shape_cast %31 : vector<1x9x256xbf16> to vector<9x256xbf16>
    %c1_22 = arith.constant 1 : index
    %c0_23 = arith.constant 0 : index
    %33 = vector.load %arg4[%c1_22, %c0_23] : memref<10x9xf32, #tpu.memory_space<vmem>>, vector<1x9xf32>
    %34 = arith.truncf %25 : vector<64x256xf32> to vector<64x256xbf16>
    %cst_24 = arith.constant dense<0.000000e+00> : vector<64x9xf32>
    %35 = tpu.matmul %34, %30, %cst_24 {dimension_numbers = #tpu.dot_dimension_numbers<[1], [0], [0], [1], [0, 0, 1, 1], [], []>} : vector<64x256xbf16>, vector<256x9xbf16>, vector<64x9xf32> -> vector<64x9xf32>
    %36 = vector.broadcast %33 : vector<1x9xf32> to vector<64x9xf32>
    %37 = arith.addf %35, %36 : vector<64x9xf32>
    %cst_25 = arith.constant 0.000000e+00 : f32
    %38 = vector.broadcast %cst_25 : f32 to vector<64x9xf32>
    %39 = arith.maximumf %37, %38 : vector<64x9xf32>
    %40 = arith.truncf %28 : vector<64x256xf32> to vector<64x256xbf16>
    %cst_26 = arith.constant dense<0.000000e+00> : vector<64x9xf32>
    %41 = tpu.matmul %40, %30, %cst_26 {dimension_numbers = #tpu.dot_dimension_numbers<[1], [0], [0], [1], [0, 0, 1, 1], [], []>} : vector<64x256xbf16>, vector<256x9xbf16>, vector<64x9xf32> -> vector<64x9xf32>
    %42 = vector.broadcast %33 : vector<1x9xf32> to vector<64x9xf32>
    %43 = arith.addf %41, %42 : vector<64x9xf32>
    %cst_27 = arith.constant 0.000000e+00 : f32
    %44 = vector.broadcast %cst_27 : f32 to vector<64x9xf32>
    %45 = arith.maximumf %43, %44 : vector<64x9xf32>
    %46 = arith.truncf %39 : vector<64x9xf32> to vector<64x9xbf16>
    %cst_28 = arith.constant dense<0.000000e+00> : vector<64x256xf32>
    %47 = tpu.matmul %46, %32, %cst_28 {dimension_numbers = #tpu.dot_dimension_numbers<[1], [0], [0], [1], [0, 0, 1, 1], [], []>} : vector<64x9xbf16>, vector<9x256xbf16>, vector<64x256xf32> -> vector<64x256xf32>
    %48 = arith.truncf %45 : vector<64x9xf32> to vector<64x9xbf16>
    %cst_29 = arith.constant dense<0.000000e+00> : vector<64x256xf32>
    %49 = tpu.matmul %48, %32, %cst_29 {dimension_numbers = #tpu.dot_dimension_numbers<[1], [0], [0], [1], [0, 0, 1, 1], [], []>} : vector<64x9xbf16>, vector<9x256xbf16>, vector<64x256xf32> -> vector<64x256xf32>
    %50 = arith.addf %25, %47 : vector<64x256xf32>
    %cst_30 = arith.constant 0.000000e+00 : f32
    %51 = vector.broadcast %cst_30 : f32 to vector<64x256xf32>
    %52 = arith.maximumf %50, %51 : vector<64x256xf32>
    %53 = arith.addf %28, %49 : vector<64x256xf32>
    %cst_31 = arith.constant 0.000000e+00 : f32
    %54 = vector.broadcast %cst_31 : f32 to vector<64x256xf32>
    %55 = arith.maximumf %53, %54 : vector<64x256xf32>
    %c2 = arith.constant 2 : index
    %c0_32 = arith.constant 0 : index
    %c0_33 = arith.constant 0 : index
    %56 = vector.load %arg2[%c2, %c0_32, %c0_33] : memref<10x256x9xbf16, #tpu.memory_space<vmem>>, vector<1x256x9xbf16>
    %57 = vector.shape_cast %56 : vector<1x256x9xbf16> to vector<256x9xbf16>
    %c2_34 = arith.constant 2 : index
    %c0_35 = arith.constant 0 : index
    %c0_36 = arith.constant 0 : index
    %58 = vector.load %arg3[%c2_34, %c0_35, %c0_36] : memref<10x9x256xbf16, #tpu.memory_space<vmem>>, vector<1x9x256xbf16>
    %59 = vector.shape_cast %58 : vector<1x9x256xbf16> to vector<9x256xbf16>
    %c2_37 = arith.constant 2 : index
    %c0_38 = arith.constant 0 : index
    %60 = vector.load %arg4[%c2_37, %c0_38] : memref<10x9xf32, #tpu.memory_space<vmem>>, vector<1x9xf32>
    %61 = arith.truncf %52 : vector<64x256xf32> to vector<64x256xbf16>
    %cst_39 = arith.constant dense<0.000000e+00> : vector<64x9xf32>
    %62 = tpu.matmul %61, %57, %cst_39 {dimension_numbers = #tpu.dot_dimension_numbers<[1], [0], [0], [1], [0, 0, 1, 1], [], []>} : vector<64x256xbf16>, vector<256x9xbf16>, vector<64x9xf32> -> vector<64x9xf32>
    %63 = vector.broadcast %60 : vector<1x9xf32> to vector<64x9xf32>
    %64 = arith.addf %62, %63 : vector<64x9xf32>
    %cst_40 = arith.constant 0.000000e+00 : f32
    %65 = vector.broadcast %cst_40 : f32 to vector<64x9xf32>
    %66 = arith.maximumf %64, %65 : vector<64x9xf32>
    %67 = arith.truncf %55 : vector<64x256xf32> to vector<64x256xbf16>
    %cst_41 = arith.constant dense<0.000000e+00> : vector<64x9xf32>
    %68 = tpu.matmul %67, %57, %cst_41 {dimension_numbers = #tpu.dot_dimension_numbers<[1], [0], [0], [1], [0, 0, 1, 1], [], []>} : vector<64x256xbf16>, vector<256x9xbf16>, vector<64x9xf32> -> vector<64x9xf32>
    %69 = vector.broadcast %60 : vector<1x9xf32> to vector<64x9xf32>
    %70 = arith.addf %68, %69 : vector<64x9xf32>
    %cst_42 = arith.constant 0.000000e+00 : f32
    %71 = vector.broadcast %cst_42 : f32 to vector<64x9xf32>
    %72 = arith.maximumf %70, %71 : vector<64x9xf32>
    %73 = arith.truncf %66 : vector<64x9xf32> to vector<64x9xbf16>
    %cst_43 = arith.constant dense<0.000000e+00> : vector<64x256xf32>
    %74 = tpu.matmul %73, %59, %cst_43 {dimension_numbers = #tpu.dot_dimension_numbers<[1], [0], [0], [1], [0, 0, 1, 1], [], []>} : vector<64x9xbf16>, vector<9x256xbf16>, vector<64x256xf32> -> vector<64x256xf32>
    %75 = arith.truncf %72 : vector<64x9xf32> to vector<64x9xbf16>
    %cst_44 = arith.constant dense<0.000000e+00> : vector<64x256xf32>
    %76 = tpu.matmul %75, %59, %cst_44 {dimension_numbers = #tpu.dot_dimension_numbers<[1], [0], [0], [1], [0, 0, 1, 1], [], []>} : vector<64x9xbf16>, vector<9x256xbf16>, vector<64x256xf32> -> vector<64x256xf32>
    %77 = arith.addf %52, %74 : vector<64x256xf32>
    %cst_45 = arith.constant 0.000000e+00 : f32
    %78 = vector.broadcast %cst_45 : f32 to vector<64x256xf32>
    %79 = arith.maximumf %77, %78 : vector<64x256xf32>
    %80 = arith.addf %55, %76 : vector<64x256xf32>
    %cst_46 = arith.constant 0.000000e+00 : f32
    %81 = vector.broadcast %cst_46 : f32 to vector<64x256xf32>
    %82 = arith.maximumf %80, %81 : vector<64x256xf32>
    %c3 = arith.constant 3 : index
    %c0_47 = arith.constant 0 : index
    %c0_48 = arith.constant 0 : index
    %83 = vector.load %arg2[%c3, %c0_47, %c0_48] : memref<10x256x9xbf16, #tpu.memory_space<vmem>>, vector<1x256x9xbf16>
    %84 = vector.shape_cast %83 : vector<1x256x9xbf16> to vector<256x9xbf16>
    %c3_49 = arith.constant 3 : index
    %c0_50 = arith.constant 0 : index
    %c0_51 = arith.constant 0 : index
    %85 = vector.load %arg3[%c3_49, %c0_50, %c0_51] : memref<10x9x256xbf16, #tpu.memory_space<vmem>>, vector<1x9x256xbf16>
    %86 = vector.shape_cast %85 : vector<1x9x256xbf16> to vector<9x256xbf16>
    %c3_52 = arith.constant 3 : index
    %c0_53 = arith.constant 0 : index
    %87 = vector.load %arg4[%c3_52, %c0_53] : memref<10x9xf32, #tpu.memory_space<vmem>>, vector<1x9xf32>
    %88 = arith.truncf %79 : vector<64x256xf32> to vector<64x256xbf16>
    %cst_54 = arith.constant dense<0.000000e+00> : vector<64x9xf32>
    %89 = tpu.matmul %88, %84, %cst_54 {dimension_numbers = #tpu.dot_dimension_numbers<[1], [0], [0], [1], [0, 0, 1, 1], [], []>} : vector<64x256xbf16>, vector<256x9xbf16>, vector<64x9xf32> -> vector<64x9xf32>
    %90 = vector.broadcast %87 : vector<1x9xf32> to vector<64x9xf32>
    %91 = arith.addf %89, %90 : vector<64x9xf32>
    %cst_55 = arith.constant 0.000000e+00 : f32
    %92 = vector.broadcast %cst_55 : f32 to vector<64x9xf32>
    %93 = arith.maximumf %91, %92 : vector<64x9xf32>
    %94 = arith.truncf %82 : vector<64x256xf32> to vector<64x256xbf16>
    %cst_56 = arith.constant dense<0.000000e+00> : vector<64x9xf32>
    %95 = tpu.matmul %94, %84, %cst_56 {dimension_numbers = #tpu.dot_dimension_numbers<[1], [0], [0], [1], [0, 0, 1, 1], [], []>} : vector<64x256xbf16>, vector<256x9xbf16>, vector<64x9xf32> -> vector<64x9xf32>
    %96 = vector.broadcast %87 : vector<1x9xf32> to vector<64x9xf32>
    %97 = arith.addf %95, %96 : vector<64x9xf32>
    %cst_57 = arith.constant 0.000000e+00 : f32
    %98 = vector.broadcast %cst_57 : f32 to vector<64x9xf32>
    %99 = arith.maximumf %97, %98 : vector<64x9xf32>
    %100 = arith.truncf %93 : vector<64x9xf32> to vector<64x9xbf16>
    %cst_58 = arith.constant dense<0.000000e+00> : vector<64x256xf32>
    %101 = tpu.matmul %100, %86, %cst_58 {dimension_numbers = #tpu.dot_dimension_numbers<[1], [0], [0], [1], [0, 0, 1, 1], [], []>} : vector<64x9xbf16>, vector<9x256xbf16>, vector<64x256xf32> -> vector<64x256xf32>
    %102 = arith.truncf %99 : vector<64x9xf32> to vector<64x9xbf16>
    %cst_59 = arith.constant dense<0.000000e+00> : vector<64x256xf32>
    %103 = tpu.matmul %102, %86, %cst_59 {dimension_numbers = #tpu.dot_dimension_numbers<[1], [0], [0], [1], [0, 0, 1, 1], [], []>} : vector<64x9xbf16>, vector<9x256xbf16>, vector<64x256xf32> -> vector<64x256xf32>
    %104 = arith.addf %79, %101 : vector<64x256xf32>
    %cst_60 = arith.constant 0.000000e+00 : f32
    %105 = vector.broadcast %cst_60 : f32 to vector<64x256xf32>
    %106 = arith.maximumf %104, %105 : vector<64x256xf32>
    %107 = arith.addf %82, %103 : vector<64x256xf32>
    %cst_61 = arith.constant 0.000000e+00 : f32
    %108 = vector.broadcast %cst_61 : f32 to vector<64x256xf32>
    %109 = arith.maximumf %107, %108 : vector<64x256xf32>
    %c4 = arith.constant 4 : index
    %c0_62 = arith.constant 0 : index
    %c0_63 = arith.constant 0 : index
    %110 = vector.load %arg2[%c4, %c0_62, %c0_63] : memref<10x256x9xbf16, #tpu.memory_space<vmem>>, vector<1x256x9xbf16>
    %111 = vector.shape_cast %110 : vector<1x256x9xbf16> to vector<256x9xbf16>
    %c4_64 = arith.constant 4 : index
    %c0_65 = arith.constant 0 : index
    %c0_66 = arith.constant 0 : index
    %112 = vector.load %arg3[%c4_64, %c0_65, %c0_66] : memref<10x9x256xbf16, #tpu.memory_space<vmem>>, vector<1x9x256xbf16>
    %113 = vector.shape_cast %112 : vector<1x9x256xbf16> to vector<9x256xbf16>
    %c4_67 = arith.constant 4 : index
    %c0_68 = arith.constant 0 : index
    %114 = vector.load %arg4[%c4_67, %c0_68] : memref<10x9xf32, #tpu.memory_space<vmem>>, vector<1x9xf32>
    %115 = arith.truncf %106 : vector<64x256xf32> to vector<64x256xbf16>
    %cst_69 = arith.constant dense<0.000000e+00> : vector<64x9xf32>
    %116 = tpu.matmul %115, %111, %cst_69 {dimension_numbers = #tpu.dot_dimension_numbers<[1], [0], [0], [1], [0, 0, 1, 1], [], []>} : vector<64x256xbf16>, vector<256x9xbf16>, vector<64x9xf32> -> vector<64x9xf32>
    %117 = vector.broadcast %114 : vector<1x9xf32> to vector<64x9xf32>
    %118 = arith.addf %116, %117 : vector<64x9xf32>
    %cst_70 = arith.constant 0.000000e+00 : f32
    %119 = vector.broadcast %cst_70 : f32 to vector<64x9xf32>
    %120 = arith.maximumf %118, %119 : vector<64x9xf32>
    %121 = arith.truncf %109 : vector<64x256xf32> to vector<64x256xbf16>
    %cst_71 = arith.constant dense<0.000000e+00> : vector<64x9xf32>
    %122 = tpu.matmul %121, %111, %cst_71 {dimension_numbers = #tpu.dot_dimension_numbers<[1], [0], [0], [1], [0, 0, 1, 1], [], []>} : vector<64x256xbf16>, vector<256x9xbf16>, vector<64x9xf32> -> vector<64x9xf32>
    %123 = vector.broadcast %114 : vector<1x9xf32> to vector<64x9xf32>
    %124 = arith.addf %122, %123 : vector<64x9xf32>
    %cst_72 = arith.constant 0.000000e+00 : f32
    %125 = vector.broadcast %cst_72 : f32 to vector<64x9xf32>
    %126 = arith.maximumf %124, %125 : vector<64x9xf32>
    %127 = arith.truncf %120 : vector<64x9xf32> to vector<64x9xbf16>
    %cst_73 = arith.constant dense<0.000000e+00> : vector<64x256xf32>
    %128 = tpu.matmul %127, %113, %cst_73 {dimension_numbers = #tpu.dot_dimension_numbers<[1], [0], [0], [1], [0, 0, 1, 1], [], []>} : vector<64x9xbf16>, vector<9x256xbf16>, vector<64x256xf32> -> vector<64x256xf32>
    %129 = arith.truncf %126 : vector<64x9xf32> to vector<64x9xbf16>
    %cst_74 = arith.constant dense<0.000000e+00> : vector<64x256xf32>
    %130 = tpu.matmul %129, %113, %cst_74 {dimension_numbers = #tpu.dot_dimension_numbers<[1], [0], [0], [1], [0, 0, 1, 1], [], []>} : vector<64x9xbf16>, vector<9x256xbf16>, vector<64x256xf32> -> vector<64x256xf32>
    %131 = arith.addf %106, %128 : vector<64x256xf32>
    %cst_75 = arith.constant 0.000000e+00 : f32
    %132 = vector.broadcast %cst_75 : f32 to vector<64x256xf32>
    %133 = arith.maximumf %131, %132 : vector<64x256xf32>
    %134 = arith.addf %109, %130 : vector<64x256xf32>
    %cst_76 = arith.constant 0.000000e+00 : f32
    %135 = vector.broadcast %cst_76 : f32 to vector<64x256xf32>
    %136 = arith.maximumf %134, %135 : vector<64x256xf32>
    %c5 = arith.constant 5 : index
    %c0_77 = arith.constant 0 : index
    %c0_78 = arith.constant 0 : index
    %137 = vector.load %arg2[%c5, %c0_77, %c0_78] : memref<10x256x9xbf16, #tpu.memory_space<vmem>>, vector<1x256x9xbf16>
    %138 = vector.shape_cast %137 : vector<1x256x9xbf16> to vector<256x9xbf16>
    %c5_79 = arith.constant 5 : index
    %c0_80 = arith.constant 0 : index
    %c0_81 = arith.constant 0 : index
    %139 = vector.load %arg3[%c5_79, %c0_80, %c0_81] : memref<10x9x256xbf16, #tpu.memory_space<vmem>>, vector<1x9x256xbf16>
    %140 = vector.shape_cast %139 : vector<1x9x256xbf16> to vector<9x256xbf16>
    %c5_82 = arith.constant 5 : index
    %c0_83 = arith.constant 0 : index
    %141 = vector.load %arg4[%c5_82, %c0_83] : memref<10x9xf32, #tpu.memory_space<vmem>>, vector<1x9xf32>
    %142 = arith.truncf %133 : vector<64x256xf32> to vector<64x256xbf16>
    %cst_84 = arith.constant dense<0.000000e+00> : vector<64x9xf32>
    %143 = tpu.matmul %142, %138, %cst_84 {dimension_numbers = #tpu.dot_dimension_numbers<[1], [0], [0], [1], [0, 0, 1, 1], [], []>} : vector<64x256xbf16>, vector<256x9xbf16>, vector<64x9xf32> -> vector<64x9xf32>
    %144 = vector.broadcast %141 : vector<1x9xf32> to vector<64x9xf32>
    %145 = arith.addf %143, %144 : vector<64x9xf32>
    %cst_85 = arith.constant 0.000000e+00 : f32
    %146 = vector.broadcast %cst_85 : f32 to vector<64x9xf32>
    %147 = arith.maximumf %145, %146 : vector<64x9xf32>
    %148 = arith.truncf %136 : vector<64x256xf32> to vector<64x256xbf16>
    %cst_86 = arith.constant dense<0.000000e+00> : vector<64x9xf32>
    %149 = tpu.matmul %148, %138, %cst_86 {dimension_numbers = #tpu.dot_dimension_numbers<[1], [0], [0], [1], [0, 0, 1, 1], [], []>} : vector<64x256xbf16>, vector<256x9xbf16>, vector<64x9xf32> -> vector<64x9xf32>
    %150 = vector.broadcast %141 : vector<1x9xf32> to vector<64x9xf32>
    %151 = arith.addf %149, %150 : vector<64x9xf32>
    %cst_87 = arith.constant 0.000000e+00 : f32
    %152 = vector.broadcast %cst_87 : f32 to vector<64x9xf32>
    %153 = arith.maximumf %151, %152 : vector<64x9xf32>
    %154 = arith.truncf %147 : vector<64x9xf32> to vector<64x9xbf16>
    %cst_88 = arith.constant dense<0.000000e+00> : vector<64x256xf32>
    %155 = tpu.matmul %154, %140, %cst_88 {dimension_numbers = #tpu.dot_dimension_numbers<[1], [0], [0], [1], [0, 0, 1, 1], [], []>} : vector<64x9xbf16>, vector<9x256xbf16>, vector<64x256xf32> -> vector<64x256xf32>
    %156 = arith.truncf %153 : vector<64x9xf32> to vector<64x9xbf16>
    %cst_89 = arith.constant dense<0.000000e+00> : vector<64x256xf32>
    %157 = tpu.matmul %156, %140, %cst_89 {dimension_numbers = #tpu.dot_dimension_numbers<[1], [0], [0], [1], [0, 0, 1, 1], [], []>} : vector<64x9xbf16>, vector<9x256xbf16>, vector<64x256xf32> -> vector<64x256xf32>
    %158 = arith.addf %133, %155 : vector<64x256xf32>
    %cst_90 = arith.constant 0.000000e+00 : f32
    %159 = vector.broadcast %cst_90 : f32 to vector<64x256xf32>
    %160 = arith.maximumf %158, %159 : vector<64x256xf32>
    %161 = arith.addf %136, %157 : vector<64x256xf32>
    %cst_91 = arith.constant 0.000000e+00 : f32
    %162 = vector.broadcast %cst_91 : f32 to vector<64x256xf32>
    %163 = arith.maximumf %161, %162 : vector<64x256xf32>
    %c6 = arith.constant 6 : index
    %c0_92 = arith.constant 0 : index
    %c0_93 = arith.constant 0 : index
    %164 = vector.load %arg2[%c6, %c0_92, %c0_93] : memref<10x256x9xbf16, #tpu.memory_space<vmem>>, vector<1x256x9xbf16>
    %165 = vector.shape_cast %164 : vector<1x256x9xbf16> to vector<256x9xbf16>
    %c6_94 = arith.constant 6 : index
    %c0_95 = arith.constant 0 : index
    %c0_96 = arith.constant 0 : index
    %166 = vector.load %arg3[%c6_94, %c0_95, %c0_96] : memref<10x9x256xbf16, #tpu.memory_space<vmem>>, vector<1x9x256xbf16>
    %167 = vector.shape_cast %166 : vector<1x9x256xbf16> to vector<9x256xbf16>
    %c6_97 = arith.constant 6 : index
    %c0_98 = arith.constant 0 : index
    %168 = vector.load %arg4[%c6_97, %c0_98] : memref<10x9xf32, #tpu.memory_space<vmem>>, vector<1x9xf32>
    %169 = arith.truncf %160 : vector<64x256xf32> to vector<64x256xbf16>
    %cst_99 = arith.constant dense<0.000000e+00> : vector<64x9xf32>
    %170 = tpu.matmul %169, %165, %cst_99 {dimension_numbers = #tpu.dot_dimension_numbers<[1], [0], [0], [1], [0, 0, 1, 1], [], []>} : vector<64x256xbf16>, vector<256x9xbf16>, vector<64x9xf32> -> vector<64x9xf32>
    %171 = vector.broadcast %168 : vector<1x9xf32> to vector<64x9xf32>
    %172 = arith.addf %170, %171 : vector<64x9xf32>
    %cst_100 = arith.constant 0.000000e+00 : f32
    %173 = vector.broadcast %cst_100 : f32 to vector<64x9xf32>
    %174 = arith.maximumf %172, %173 : vector<64x9xf32>
    %175 = arith.truncf %163 : vector<64x256xf32> to vector<64x256xbf16>
    %cst_101 = arith.constant dense<0.000000e+00> : vector<64x9xf32>
    %176 = tpu.matmul %175, %165, %cst_101 {dimension_numbers = #tpu.dot_dimension_numbers<[1], [0], [0], [1], [0, 0, 1, 1], [], []>} : vector<64x256xbf16>, vector<256x9xbf16>, vector<64x9xf32> -> vector<64x9xf32>
    %177 = vector.broadcast %168 : vector<1x9xf32> to vector<64x9xf32>
    %178 = arith.addf %176, %177 : vector<64x9xf32>
    %cst_102 = arith.constant 0.000000e+00 : f32
    %179 = vector.broadcast %cst_102 : f32 to vector<64x9xf32>
    %180 = arith.maximumf %178, %179 : vector<64x9xf32>
    %181 = arith.truncf %174 : vector<64x9xf32> to vector<64x9xbf16>
    %cst_103 = arith.constant dense<0.000000e+00> : vector<64x256xf32>
    %182 = tpu.matmul %181, %167, %cst_103 {dimension_numbers = #tpu.dot_dimension_numbers<[1], [0], [0], [1], [0, 0, 1, 1], [], []>} : vector<64x9xbf16>, vector<9x256xbf16>, vector<64x256xf32> -> vector<64x256xf32>
    %183 = arith.truncf %180 : vector<64x9xf32> to vector<64x9xbf16>
    %cst_104 = arith.constant dense<0.000000e+00> : vector<64x256xf32>
    %184 = tpu.matmul %183, %167, %cst_104 {dimension_numbers = #tpu.dot_dimension_numbers<[1], [0], [0], [1], [0, 0, 1, 1], [], []>} : vector<64x9xbf16>, vector<9x256xbf16>, vector<64x256xf32> -> vector<64x256xf32>
    %185 = arith.addf %160, %182 : vector<64x256xf32>
    %cst_105 = arith.constant 0.000000e+00 : f32
    %186 = vector.broadcast %cst_105 : f32 to vector<64x256xf32>
    %187 = arith.maximumf %185, %186 : vector<64x256xf32>
    %188 = arith.addf %163, %184 : vector<64x256xf32>
    %cst_106 = arith.constant 0.000000e+00 : f32
    %189 = vector.broadcast %cst_106 : f32 to vector<64x256xf32>
    %190 = arith.maximumf %188, %189 : vector<64x256xf32>
    %c7 = arith.constant 7 : index
    %c0_107 = arith.constant 0 : index
    %c0_108 = arith.constant 0 : index
    %191 = vector.load %arg2[%c7, %c0_107, %c0_108] : memref<10x256x9xbf16, #tpu.memory_space<vmem>>, vector<1x256x9xbf16>
    %192 = vector.shape_cast %191 : vector<1x256x9xbf16> to vector<256x9xbf16>
    %c7_109 = arith.constant 7 : index
    %c0_110 = arith.constant 0 : index
    %c0_111 = arith.constant 0 : index
    %193 = vector.load %arg3[%c7_109, %c0_110, %c0_111] : memref<10x9x256xbf16, #tpu.memory_space<vmem>>, vector<1x9x256xbf16>
    %194 = vector.shape_cast %193 : vector<1x9x256xbf16> to vector<9x256xbf16>
    %c7_112 = arith.constant 7 : index
    %c0_113 = arith.constant 0 : index
    %195 = vector.load %arg4[%c7_112, %c0_113] : memref<10x9xf32, #tpu.memory_space<vmem>>, vector<1x9xf32>
    %196 = arith.truncf %187 : vector<64x256xf32> to vector<64x256xbf16>
    %cst_114 = arith.constant dense<0.000000e+00> : vector<64x9xf32>
    %197 = tpu.matmul %196, %192, %cst_114 {dimension_numbers = #tpu.dot_dimension_numbers<[1], [0], [0], [1], [0, 0, 1, 1], [], []>} : vector<64x256xbf16>, vector<256x9xbf16>, vector<64x9xf32> -> vector<64x9xf32>
    %198 = vector.broadcast %195 : vector<1x9xf32> to vector<64x9xf32>
    %199 = arith.addf %197, %198 : vector<64x9xf32>
    %cst_115 = arith.constant 0.000000e+00 : f32
    %200 = vector.broadcast %cst_115 : f32 to vector<64x9xf32>
    %201 = arith.maximumf %199, %200 : vector<64x9xf32>
    %202 = arith.truncf %190 : vector<64x256xf32> to vector<64x256xbf16>
    %cst_116 = arith.constant dense<0.000000e+00> : vector<64x9xf32>
    %203 = tpu.matmul %202, %192, %cst_116 {dimension_numbers = #tpu.dot_dimension_numbers<[1], [0], [0], [1], [0, 0, 1, 1], [], []>} : vector<64x256xbf16>, vector<256x9xbf16>, vector<64x9xf32> -> vector<64x9xf32>
    %204 = vector.broadcast %195 : vector<1x9xf32> to vector<64x9xf32>
    %205 = arith.addf %203, %204 : vector<64x9xf32>
    %cst_117 = arith.constant 0.000000e+00 : f32
    %206 = vector.broadcast %cst_117 : f32 to vector<64x9xf32>
    %207 = arith.maximumf %205, %206 : vector<64x9xf32>
    %208 = arith.truncf %201 : vector<64x9xf32> to vector<64x9xbf16>
    %cst_118 = arith.constant dense<0.000000e+00> : vector<64x256xf32>
    %209 = tpu.matmul %208, %194, %cst_118 {dimension_numbers = #tpu.dot_dimension_numbers<[1], [0], [0], [1], [0, 0, 1, 1], [], []>} : vector<64x9xbf16>, vector<9x256xbf16>, vector<64x256xf32> -> vector<64x256xf32>
    %210 = arith.truncf %207 : vector<64x9xf32> to vector<64x9xbf16>
    %cst_119 = arith.constant dense<0.000000e+00> : vector<64x256xf32>
    %211 = tpu.matmul %210, %194, %cst_119 {dimension_numbers = #tpu.dot_dimension_numbers<[1], [0], [0], [1], [0, 0, 1, 1], [], []>} : vector<64x9xbf16>, vector<9x256xbf16>, vector<64x256xf32> -> vector<64x256xf32>
    %212 = arith.addf %187, %209 : vector<64x256xf32>
    %cst_120 = arith.constant 0.000000e+00 : f32
    %213 = vector.broadcast %cst_120 : f32 to vector<64x256xf32>
    %214 = arith.maximumf %212, %213 : vector<64x256xf32>
    %215 = arith.addf %190, %211 : vector<64x256xf32>
    %cst_121 = arith.constant 0.000000e+00 : f32
    %216 = vector.broadcast %cst_121 : f32 to vector<64x256xf32>
    %217 = arith.maximumf %215, %216 : vector<64x256xf32>
    %c8 = arith.constant 8 : index
    %c0_122 = arith.constant 0 : index
    %c0_123 = arith.constant 0 : index
    %218 = vector.load %arg2[%c8, %c0_122, %c0_123] : memref<10x256x9xbf16, #tpu.memory_space<vmem>>, vector<1x256x9xbf16>
    %219 = vector.shape_cast %218 : vector<1x256x9xbf16> to vector<256x9xbf16>
    %c8_124 = arith.constant 8 : index
    %c0_125 = arith.constant 0 : index
    %c0_126 = arith.constant 0 : index
    %220 = vector.load %arg3[%c8_124, %c0_125, %c0_126] : memref<10x9x256xbf16, #tpu.memory_space<vmem>>, vector<1x9x256xbf16>
    %221 = vector.shape_cast %220 : vector<1x9x256xbf16> to vector<9x256xbf16>
    %c8_127 = arith.constant 8 : index
    %c0_128 = arith.constant 0 : index
    %222 = vector.load %arg4[%c8_127, %c0_128] : memref<10x9xf32, #tpu.memory_space<vmem>>, vector<1x9xf32>
    %223 = arith.truncf %214 : vector<64x256xf32> to vector<64x256xbf16>
    %cst_129 = arith.constant dense<0.000000e+00> : vector<64x9xf32>
    %224 = tpu.matmul %223, %219, %cst_129 {dimension_numbers = #tpu.dot_dimension_numbers<[1], [0], [0], [1], [0, 0, 1, 1], [], []>} : vector<64x256xbf16>, vector<256x9xbf16>, vector<64x9xf32> -> vector<64x9xf32>
    %225 = vector.broadcast %222 : vector<1x9xf32> to vector<64x9xf32>
    %226 = arith.addf %224, %225 : vector<64x9xf32>
    %cst_130 = arith.constant 0.000000e+00 : f32
    %227 = vector.broadcast %cst_130 : f32 to vector<64x9xf32>
    %228 = arith.maximumf %226, %227 : vector<64x9xf32>
    %229 = arith.truncf %217 : vector<64x256xf32> to vector<64x256xbf16>
    %cst_131 = arith.constant dense<0.000000e+00> : vector<64x9xf32>
    %230 = tpu.matmul %229, %219, %cst_131 {dimension_numbers = #tpu.dot_dimension_numbers<[1], [0], [0], [1], [0, 0, 1, 1], [], []>} : vector<64x256xbf16>, vector<256x9xbf16>, vector<64x9xf32> -> vector<64x9xf32>
    %231 = vector.broadcast %222 : vector<1x9xf32> to vector<64x9xf32>
    %232 = arith.addf %230, %231 : vector<64x9xf32>
    %cst_132 = arith.constant 0.000000e+00 : f32
    %233 = vector.broadcast %cst_132 : f32 to vector<64x9xf32>
    %234 = arith.maximumf %232, %233 : vector<64x9xf32>
    %235 = arith.truncf %228 : vector<64x9xf32> to vector<64x9xbf16>
    %cst_133 = arith.constant dense<0.000000e+00> : vector<64x256xf32>
    %236 = tpu.matmul %235, %221, %cst_133 {dimension_numbers = #tpu.dot_dimension_numbers<[1], [0], [0], [1], [0, 0, 1, 1], [], []>} : vector<64x9xbf16>, vector<9x256xbf16>, vector<64x256xf32> -> vector<64x256xf32>
    %237 = arith.truncf %234 : vector<64x9xf32> to vector<64x9xbf16>
    %cst_134 = arith.constant dense<0.000000e+00> : vector<64x256xf32>
    %238 = tpu.matmul %237, %221, %cst_134 {dimension_numbers = #tpu.dot_dimension_numbers<[1], [0], [0], [1], [0, 0, 1, 1], [], []>} : vector<64x9xbf16>, vector<9x256xbf16>, vector<64x256xf32> -> vector<64x256xf32>
    %239 = arith.addf %214, %236 : vector<64x256xf32>
    %cst_135 = arith.constant 0.000000e+00 : f32
    %240 = vector.broadcast %cst_135 : f32 to vector<64x256xf32>
    %241 = arith.maximumf %239, %240 : vector<64x256xf32>
    %242 = arith.addf %217, %238 : vector<64x256xf32>
    %cst_136 = arith.constant 0.000000e+00 : f32
    %243 = vector.broadcast %cst_136 : f32 to vector<64x256xf32>
    %244 = arith.maximumf %242, %243 : vector<64x256xf32>
    %c9 = arith.constant 9 : index
    %c0_137 = arith.constant 0 : index
    %c0_138 = arith.constant 0 : index
    %245 = vector.load %arg2[%c9, %c0_137, %c0_138] : memref<10x256x9xbf16, #tpu.memory_space<vmem>>, vector<1x256x9xbf16>
    %246 = vector.shape_cast %245 : vector<1x256x9xbf16> to vector<256x9xbf16>
    %c9_139 = arith.constant 9 : index
    %c0_140 = arith.constant 0 : index
    %c0_141 = arith.constant 0 : index
    %247 = vector.load %arg3[%c9_139, %c0_140, %c0_141] : memref<10x9x256xbf16, #tpu.memory_space<vmem>>, vector<1x9x256xbf16>
    %248 = vector.shape_cast %247 : vector<1x9x256xbf16> to vector<9x256xbf16>
    %c9_142 = arith.constant 9 : index
    %c0_143 = arith.constant 0 : index
    %249 = vector.load %arg4[%c9_142, %c0_143] : memref<10x9xf32, #tpu.memory_space<vmem>>, vector<1x9xf32>
    %250 = arith.truncf %241 : vector<64x256xf32> to vector<64x256xbf16>
    %cst_144 = arith.constant dense<0.000000e+00> : vector<64x9xf32>
    %251 = tpu.matmul %250, %246, %cst_144 {dimension_numbers = #tpu.dot_dimension_numbers<[1], [0], [0], [1], [0, 0, 1, 1], [], []>} : vector<64x256xbf16>, vector<256x9xbf16>, vector<64x9xf32> -> vector<64x9xf32>
    %252 = vector.broadcast %249 : vector<1x9xf32> to vector<64x9xf32>
    %253 = arith.addf %251, %252 : vector<64x9xf32>
    %cst_145 = arith.constant 0.000000e+00 : f32
    %254 = vector.broadcast %cst_145 : f32 to vector<64x9xf32>
    %255 = arith.maximumf %253, %254 : vector<64x9xf32>
    %256 = arith.truncf %244 : vector<64x256xf32> to vector<64x256xbf16>
    %cst_146 = arith.constant dense<0.000000e+00> : vector<64x9xf32>
    %257 = tpu.matmul %256, %246, %cst_146 {dimension_numbers = #tpu.dot_dimension_numbers<[1], [0], [0], [1], [0, 0, 1, 1], [], []>} : vector<64x256xbf16>, vector<256x9xbf16>, vector<64x9xf32> -> vector<64x9xf32>
    %258 = vector.broadcast %249 : vector<1x9xf32> to vector<64x9xf32>
    %259 = arith.addf %257, %258 : vector<64x9xf32>
    %cst_147 = arith.constant 0.000000e+00 : f32
    %260 = vector.broadcast %cst_147 : f32 to vector<64x9xf32>
    %261 = arith.maximumf %259, %260 : vector<64x9xf32>
    %262 = arith.truncf %255 : vector<64x9xf32> to vector<64x9xbf16>
    %cst_148 = arith.constant dense<0.000000e+00> : vector<64x256xf32>
    %263 = tpu.matmul %262, %248, %cst_148 {dimension_numbers = #tpu.dot_dimension_numbers<[1], [0], [0], [1], [0, 0, 1, 1], [], []>} : vector<64x9xbf16>, vector<9x256xbf16>, vector<64x256xf32> -> vector<64x256xf32>
    %264 = arith.truncf %261 : vector<64x9xf32> to vector<64x9xbf16>
    %cst_149 = arith.constant dense<0.000000e+00> : vector<64x256xf32>
    %265 = tpu.matmul %264, %248, %cst_149 {dimension_numbers = #tpu.dot_dimension_numbers<[1], [0], [0], [1], [0, 0, 1, 1], [], []>} : vector<64x9xbf16>, vector<9x256xbf16>, vector<64x256xf32> -> vector<64x256xf32>
    %266 = arith.addf %241, %263 : vector<64x256xf32>
    %267 = arith.addf %244, %265 : vector<64x256xf32>
    %c0_150 = arith.constant 0 : index
    %c0_151 = arith.constant 0 : index
    %268 = vector.load %arg1[%c0_150, %c0_151] : memref<128x256xf32, #tpu.memory_space<vmem>>, vector<64x256xf32>
    %269 = arith.addf %266, %268 : vector<64x256xf32>
    %c0_152 = arith.constant 0 : index
    %c0_153 = arith.constant 0 : index
    %270 = vector.load %arg5[%c0_152, %c0_153] : memref<128x256xf32, #tpu.memory_space<vmem>>, vector<64x256xf32>
    tpu.vector_store %arg5[%c0_152, %c0_153], %269 {strides = array<i32>} : memref<128x256xf32, #tpu.memory_space<vmem>>, vector<64x256xf32>,
    %c64_154 = arith.constant 64 : index
    %c0_155 = arith.constant 0 : index
    %271 = vector.load %arg1[%c64_154, %c0_155] : memref<128x256xf32, #tpu.memory_space<vmem>>, vector<64x256xf32>
    %272 = arith.addf %267, %271 : vector<64x256xf32>
    %c64_156 = arith.constant 64 : index
    %c0_157 = arith.constant 0 : index
    %273 = vector.load %arg5[%c64_156, %c0_157] : memref<128x256xf32, #tpu.memory_space<vmem>>, vector<64x256xf32>
    tpu.vector_store %arg5[%c64_156, %c0_157], %272 {strides = array<i32>} : memref<128x256xf32, #tpu.memory_space<vmem>>, vector<64x256xf32>,
    return
  }
  func.func @transform_0(%arg0: i32) -> (i32, i32) {
    %c0_i32 = arith.constant 0 : i32
    %c0_i32_0 = arith.constant 0 : i32
    return %arg0, %c0_i32 : i32, i32
  }
  func.func @transform_1(%arg0: i32) -> (i32, i32, i32) {
    %c0_i32 = arith.constant 0 : i32
    %c0_i32_0 = arith.constant 0 : i32
    %c0_i32_1 = arith.constant 0 : i32
    %c0_i32_2 = arith.constant 0 : i32
    return %c0_i32, %c0_i32_0, %c0_i32_1 : i32, i32, i32
  }
  func.func @transform_2(%arg0: i32) -> (i32, i32, i32) {
    %c0_i32 = arith.constant 0 : i32
    %c0_i32_0 = arith.constant 0 : i32
    %c0_i32_1 = arith.constant 0 : i32
    %c0_i32_2 = arith.constant 0 : i32
    return %c0_i32, %c0_i32_0, %c0_i32_1 : i32, i32, i32
  }
  func.func @transform_3(%arg0: i32) -> (i32, i32) {
    %c0_i32 = arith.constant 0 : i32
    %c0_i32_0 = arith.constant 0 : i32
    %c0_i32_1 = arith.constant 0 : i32
    return %c0_i32, %c0_i32_0 : i32, i32
  }
  func.func @transform_4(%arg0: i32) -> (i32, i32) {
    %c0_i32 = arith.constant 0 : i32
    %c0_i32_0 = arith.constant 0 : i32
    return %arg0, %c0_i32 : i32, i32
  }
}

</mosaic_0001>

<bundles_post_ra>
// kernel: tpu_custom_call.1
= control target key start
LH: loop header
LB: loop body
LE: loop exit
PB: predicated region body
PF: predicated region fallthrough
CT: control target
= control target key end

     0   :  { %vm373_vm0 = vcmask 1043456   ;;  %vm374_vm1 = vcmask 1044480   ;;  %v7311_v20 = vmov 65535   ;;  %s10589_s0 = inlined_call_operand.vmem [shape: f32[128,256], index: 0, kind: input, shape index: {}]   ;;  %s10590_s1 = inlined_call_operand.vmem [shape: bf16[10,256,9], index: 1, kind: input, shape index: {}]   ;;  %s10591_s2 = inlined_call_operand.vmem [shape: bf16[10,9,256], index: 2, kind: input, shape index: {}]   ;;  %s10592_s3 = inlined_call_operand.vmem [shape: f32[10,9], index: 3, kind: input, shape index: {}]   ;;  %s10593_s4 = inlined_call_operand.hbm [shape: f32[128,256], index: 4, kind: output, shape index: {}]  }
   0x1   :  { %v7049_v0 = vld [vmem:[%s10590_s1 + $0x40] sm:$0xff]   ;;  %v7051_v2 = vld [vmem:[%s10590_s1 + $0x48] sm:$0xff]   ;;  %v7053_v4 = vld [vmem:[%s10590_s1 + $0x50] sm:$0xff]   ;;  %v375_v21 = vsel %vm373_vm0, 4294967295, %v7311_v20 }
   0x2   :  { %v7050_v1 = vld [vmem:[%s10590_s1] sm:$0xff]   ;;  %6244 = vmatprep.subr.bf16.mxu0 %v7049_v0  ;;  %6284 = vmatprep.subr.bf16.mxu1 %v7049_v0  ;;  %v7052_v3 = vld [vmem:[%s10590_s1 + $0x8] sm:$0xff]   ;;  %v7054_v5 = vld [vmem:[%s10590_s1 + $0x10] sm:$0xff]   ;;  %v7425_v32 = vsel %vm374_vm1, %v375_v21, 0 }
   0x3   :  { %6245 = vmatpush3.bf16.msra.mxu0 %v7050_v1  ;;  %6285 = vmatpush3.bf16.msra.mxu1 %v7050_v1  ;;  %v7055_v6 = vld [vmem:[%s10590_s1 + $0x58] sm:$0xff]   ;;  %v7057_v8 = vld [vmem:[%s10590_s1 + $0x60] sm:$0xff]   ;;  %v7059_v10 = vld [vmem:[%s10590_s1 + $0x68] sm:$0xff]  }
   0x4   :  { %6246 = vmatprep.subr.bf16.mxu0 %v7051_v2  ;;  %6286 = vmatprep.subr.bf16.mxu1 %v7051_v2  ;;  %v7056_v7 = vld [vmem:[%s10590_s1 + $0x18] sm:$0xff]   ;;  %v7058_v9 = vld [vmem:[%s10590_s1 + $0x20] sm:$0xff]   ;;  %v20_v11 = vld [vmem:[%s10589_s0 + $0x8] sm:$0xff] }
   0x5   :  { %v22_v12 = vld [vmem:[%s10589_s0 + $0x18] sm:$0xff]  ;;  %v36_v13 = vld [vmem:[%s10589_s0 + $0x88] sm:$0xff]  ;;  %v7061_v18 = vld [vmem:[%s10590_s1 + $0x70] sm:$0xff]  }
   0x6   :  { %v87_v14 = vpack.c.bf16 %v22_v12, %v20_v11  ;;  %v38_v15 = vld [vmem:[%s10589_s0 + $0x98] sm:$0xff]  ;;  %v7060_v17 = vld [vmem:[%s10590_s1 + $0x28] sm:$0xff]   ;;  %v7062_v19 = vld [vmem:[%s10590_s1 + $0x30] sm:$0xff]  }
   0x7   :  { %6247 = vmatpush3.bf16.msra.mxu0 %v7052_v3  ;;  %6287 = vmatpush3.bf16.msra.mxu1 %v7052_v3  ;;  %v268_v16 = vpack.c.bf16 %v38_v15, %v36_v13  ;;  %v7063_v22 = vld [vmem:[%s10590_s1 + $0x78] sm:$0xff]   ;;  %v19_v24 = vld [vmem:[%s10589_s0] sm:$0xff]  ;;  %v21_v25 = vld [vmem:[%s10589_s0 + $0x10] sm:$0xff] }
   0x8   :  { %6248 = vmatprep.subr.bf16.mxu0 %v7053_v4  ;;  %6288 = vmatprep.subr.bf16.mxu1 %v7053_v4  ;;  %v7064_v23 = vld [vmem:[%s10590_s1 + $0x38] sm:$0xff]   ;;  %v35_v26 = vld [vmem:[%s10589_s0 + $0x80] sm:$0xff]  ;;  %v37_v27 = vld [vmem:[%s10589_s0 + $0x90] sm:$0xff]  ;;  %v86_v35 = vpack.c.bf16 %v21_v25, %v19_v24 }
   0x9   :  { %226 = vmatprep.mubr.bf16.mxu0 %v87_v14  ;;  %307 = vmatprep.mubr.bf16.mxu1 %v268_v16  ;;  %v24_v28 = vld [vmem:[%s10589_s0 + $0x28] sm:$0xff]  ;;  %v26_v29 = vld [vmem:[%s10589_s0 + $0x38] sm:$0xff]  ;;  %v267_v36 = vpack.c.bf16 %v37_v27, %v35_v26  ;;  %v23_v41 = vld [vmem:[%s10589_s0 + $0x20] sm:$0xff] }
   0xa   :  { %v40_v30 = vld [vmem:[%s10589_s0 + $0xa8] sm:$0xff]  ;;  %v42_v31 = vld [vmem:[%s10589_s0 + $0xb8] sm:$0xff]  ;;  %v89_v38 = vpack.c.bf16 %v26_v29, %v24_v28  ;;  %v25_v42 = vld [vmem:[%s10589_s0 + $0x30] sm:$0xff] }
   0xb   :  { %6249 = vmatpush3.bf16.msra.mxu0 %v7054_v5  ;;  %6289 = vmatpush3.bf16.msra.mxu1 %v7054_v5  ;;  %v7065_v33 = vld [vmem:[%s10591_s2] ss:$8 sps:$4 sm:$0x1f]   ;;  %v7067_v34 = vld [vmem:[%s10591_s2 + $0x4] ss:$8 sps:$4 sm:$0x1f]   ;;  %v270_v39 = vpack.c.bf16 %v42_v31, %v40_v30  ;;  %v88_v49 = vpack.c.bf16 %v25_v42, %v23_v41 }
   0xc   :  { %6250 = vmatprep.subr.bf16.mxu0 %v7055_v6  ;;  %6290 = vmatprep.subr.bf16.mxu1 %v7055_v6  ;;  %v381_v37 = vand.u32 %v7067_v34, %v7425_v32  ;;  %v378_v40 = vand.u32 %v7065_v33, %v7425_v32  ;;  %v39_v43 = vld [vmem:[%s10589_s0 + $0xa0] sm:$0xff]  ;;  %v41_v44 = vld [vmem:[%s10589_s0 + $0xb0] sm:$0xff]  ;;  %v28_v45 = vld [vmem:[%s10589_s0 + $0x48] sm:$0xff] }
   0xd   :  { %v30_v46 = vld [vmem:[%s10589_s0 + $0x58] sm:$0xff]  ;;  %v44_v47 = vld [vmem:[%s10589_s0 + $0xc8] sm:$0xff]  ;;  %v269_v50 = vpack.c.bf16 %v41_v44, %v39_v43  ;;  %v27_v53 = vld [vmem:[%s10589_s0 + $0x40] sm:$0xff] }
   0xe   :  { %v46_v48 = vld [vmem:[%s10589_s0 + $0xd8] sm:$0xff]  ;;  %v91_v51 = vpack.c.bf16 %v30_v46, %v28_v45  ;;  %v29_v54 = vld [vmem:[%s10589_s0 + $0x50] sm:$0xff]  ;;  %v43_v55 = vld [vmem:[%s10589_s0 + $0xc0] sm:$0xff] }
   0xf   :  { %6251 = vmatpush3.bf16.msra.mxu0 %v7056_v7  ;;  %6291 = vmatpush3.bf16.msra.mxu1 %v7056_v7  ;;  %v272_v52 = vpack.c.bf16 %v46_v48, %v44_v47  ;;  %v45_v56 = vld [vmem:[%s10589_s0 + $0xd0] sm:$0xff]  ;;  %v32_v57 = vld [vmem:[%s10589_s0 + $0x68] sm:$0xff]  ;;  %v34_v58 = vld [vmem:[%s10589_s0 + $0x78] sm:$0xff]  ;;  %v90_v61 = vpack.c.bf16 %v29_v54, %v27_v53  ;;  %v7312_v7 = vmov 0  }
  0x10   :  { %6252 = vmatprep.subr.bf16.mxu0 %v7057_v8  ;;  %6292 = vmatprep.subr.bf16.mxu1 %v7057_v8  ;;  %v48_v59 = vld [vmem:[%s10589_s0 + $0xe8] sm:$0xff]  ;;  %v50_v60 = vld [vmem:[%s10589_s0 + $0xf8] sm:$0xff]  ;;  %v271_v62 = vpack.c.bf16 %v45_v56, %v43_v55  ;;  %v93_v63 = vpack.c.bf16 %v34_v58, %v32_v57  ;;  %v31_v1 = vld [vmem:[%s10589_s0 + $0x60] sm:$0xff] }
  0x11   :  { %v274_v0 = vpack.c.bf16 %v50_v60, %v48_v59  ;;  %v33_v2 = vld [vmem:[%s10589_s0 + $0x70] sm:$0xff]  ;;  %v47_v3 = vld [vmem:[%s10589_s0 + $0xe0] sm:$0xff] }
  0x12   :  { %v49_v4 = vld [vmem:[%s10589_s0 + $0xf0] sm:$0xff]  ;;  %v92_v5 = vpack.c.bf16 %v33_v2, %v31_v1 }
  0x13   :  { %6253 = vmatpush3.bf16.msra.mxu0 %v7058_v9  ;;  %6293 = vmatpush3.bf16.msra.mxu1 %v7058_v9  ;;  %v273_v6 = vpack.c.bf16 %v49_v4, %v47_v3 }
  0x14   :  { %6254 = vmatprep.subr.bf16.mxu0 %v7059_v10  ;;  %6294 = vmatprep.subr.bf16.mxu1 %v7059_v10 }
  0x17   :  { %6255 = vmatpush3.bf16.msra.mxu0 %v7060_v17  ;;  %6295 = vmatpush3.bf16.msra.mxu1 %v7060_v17 }
  0x18   :  { %6256 = vmatprep.subr.bf16.mxu0 %v7061_v18  ;;  %6296 = vmatprep.subr.bf16.mxu1 %v7061_v18 }
  0x1b   :  { %6257 = vmatpush3.bf16.msra.mxu0 %v7062_v19  ;;  %6297 = vmatpush3.bf16.msra.mxu1 %v7062_v19 }
  0x1c   :  { %6258 = vmatprep.subr.bf16.mxu0 %v7063_v22  ;;  %6298 = vmatprep.subr.bf16.mxu1 %v7063_v22 }
  0x1f   :  { %6259 = vmatpush3.bf16.msra.mxu0 %v7064_v23  ;;  %6299 = vmatpush3.bf16.msra.mxu1 %v7064_v23 }
  0x20   :  { %383 = vmatprep.subr.bf16.mxu0 %v381_v37  ;;  %472 = vmatprep.subr.bf16.mxu1 %v381_v37 }
  0x22   :  { %227 = vmatmul.mubr.bf16.vlgmr.msra.gmra.mrb[0].mxu0 %v86_v35  ;;  %308 = vmatmul.mubr.bf16.vlgmr.msra.gmra.mrb[0].mxu1 %v267_v36 }
  0x23   :  { %234 = vmatprep.mubr.bf16.mxu0 %v89_v38  ;;  %315 = vmatprep.mubr.bf16.mxu1 %v270_v39 }
  0x24   :  { %384 = vmatpush1.bf16.msra.mxu0 %v378_v40  ;;  %473 = vmatpush1.bf16.msra.mxu1 %v378_v40 }
  0x2a   :  { %235 = vmatmul.mubr.bf16.gmra.mrb[4].mxu0 %v88_v49  ;;  %316 = vmatmul.mubr.bf16.gmra.mrb[4].mxu1 %v269_v50 }
  0x2b   :  { %242 = vmatprep.mubr.bf16.mxu0 %v91_v51  ;;  %323 = vmatprep.mubr.bf16.mxu1 %v272_v52 }
  0x32   :  { %243 = vmatmul.mubr.bf16.gmra.mrb[8].mxu0 %v90_v61  ;;  %324 = vmatmul.mubr.bf16.gmra.mrb[8].mxu1 %v271_v62 }
  0x33   :  { %250 = vmatprep.mubr.bf16.mxu0 %v93_v63  ;;  %331 = vmatprep.mubr.bf16.mxu1 %v274_v0 }
  0x3a   :  { %251 = vmatmul.mubr.bf16.gmra.mrb[12].mxu0 %v92_v5  ;;  %332 = vmatmul.mubr.bf16.gmra.mrb[12].mxu1 %v273_v6 }
  0x3b   :  { %415 = vmatprep.mubr.bf16.mxu0 %v7312_v7  ;;  %504 = vmatprep.mubr.bf16.mxu1 %v7312_v7 }
  0x3c   :  { %9 = vsyncpa [#allocation3], 0  ;;  %v7068_v8 = vld [vmem:[%s10590_s1 + $0xc0] sm:$0xff]   ;;  %vm360_vm2 = vcmask 72704   ;;  %v7070_v44 = vld [vmem:[%s10590_s1 + $0xc8] sm:$0xff]  }
  0x3d   :  { %6324 = vmatprep.subr.bf16.mxu0 %v7068_v8  ;;  %6364 = vmatprep.subr.bf16.mxu1 %v7068_v8  ;;  %v7503_v11 = vld [vmem:[%s10592_s3] ss:$0 sm:$0xff]  ;;  %v7071_v51 = vld [vmem:[%s10590_s1 + $0x88] sm:$0xff]   ;;  %v7072_v52 = vld [vmem:[%s10590_s1 + $0xd0] sm:$0xff]  }
  0x3e   :  { %v7069_v41 = vld [vmem:[%s10590_s1 + $0x80] sm:$0xff]   ;;  %v7073_v5 = vld [vmem:[%s10590_s1 + $0x90] sm:$0xff]  }
  0xf5   :  { %v6260_v9 = vpop.f32.mrb[0].mxu0  ;;  %v6300_v10 = vpop.f32.mrb[0].mxu1 }
  0xf6   :  { %v6261_v12 = vpop.f32.mrb[1].mxu0  ;;  %v6301_v13 = vpop.f32.mrb[1].mxu1 }
  0xf7   :  { %v6262_v14 = vadd.f32 %v6261_v12, %v6260_v9  ;;  %v6302_v15 = vadd.f32 %v6301_v13, %v6300_v10  ;;  %v6263_v16 = vpop.f32.mrb[2].mxu0  ;;  %v6303_v17 = vpop.f32.mrb[2].mxu1  ;;  %v7074_v12 = vld [vmem:[%s10590_s1 + $0xd8] sm:$0xff]  }
  0xf8   :  { %v6264_v18 = vpop.f32.mrb[3].mxu0  ;;  %v6304_v19 = vpop.f32.mrb[3].mxu1 }
  0xf9   :  { %v229_v20 = vadd.f32 %v6262_v14, %v7503_v11  ;;  %v310_v21 = vadd.f32 %v6302_v15, %v7503_v11  ;;  %v6265_v22 = vadd.f32 %v6264_v18, %v6263_v16  ;;  %v6305_v23 = vadd.f32 %v6304_v19, %v6303_v17  ;;  %v7075_v15 = vld [vmem:[%s10590_s1 + $0x98] sm:$0xff]  }
  0xfb   :  { %v232_v24 = vadd.f32 %v6265_v22, %v7503_v11  ;;  %v313_v25 = vadd.f32 %v6305_v23, %v7503_v11  ;;  %v259_v26 = vmax.f32 %v229_v20, 0.0  ;;  %v340_v27 = vmax.f32 %v310_v21, 0.0 }
  0xfd   :  { %v260_v28 = vmax.f32 %v232_v24, 0.0  ;;  %v341_v29 = vmax.f32 %v313_v25, 0.0  ;;  %v6266_v30 = vpop.f32.mrb[4].mxu0  ;;  %v6306_v31 = vpop.f32.mrb[4].mxu1 }
  0xfe   :  { %v6267_v33 = vpop.f32.mrb[5].mxu0  ;;  %v6307_v34 = vpop.f32.mrb[5].mxu1 }
  0xff   :  { %v348_v35 = vpack.c.bf16 %v260_v28, %v259_v26  ;;  %v456_v36 = vpack.c.bf16 %v341_v29, %v340_v27  ;;  %v6268_v37 = vadd.f32 %v6267_v33, %v6266_v30  ;;  %v6308_v38 = vadd.f32 %v6307_v34, %v6306_v31  ;;  %v6269_v39 = vpop.f32.mrb[6].mxu0  ;;  %v6309_v40 = vpop.f32.mrb[6].mxu1  ;;  %v7076_v30 = vld [vmem:[%s10590_s1 + $0xe0] sm:$0xff]  }
 0x100   :  { %v6270_v42 = vpop.f32.mrb[7].mxu0  ;;  %v6310_v43 = vpop.f32.mrb[7].mxu1  ;;  %v7077_v34 = vld [vmem:[%s10590_s1 + $0xa0] sm:$0xff]  }
 0x101   :  { %v237_v45 = vadd.f32 %v6268_v37, %v7503_v11  ;;  %v318_v46 = vadd.f32 %v6308_v38, %v7503_v11  ;;  %v6271_v47 = vadd.f32 %v6270_v42, %v6269_v39  ;;  %v6311_v48 = vadd.f32 %v6310_v43, %v6309_v40  ;;  %5687 = vmatmul.mubr.msk.bf16.vlgmr.msra.gmra.mrb[16].mxu0 %vm360_vm2, %v348_v35  ;;  %v7078_v39 = vld [vmem:[%s10590_s1 + $0xe8] sm:$0xff]  }
 0x102   :  { %5691 = vmatmul.mubr.msk.bf16.vlgmr.msra.gmra.mrb[16].mxu1 %vm360_vm2, %v456_v36  ;;  %425 = vmatprep.mubr.bf16.mxu0 %v7312_v7  ;;  %v7079_v42 = vld [vmem:[%s10590_s1 + $0xa8] sm:$0xff]  }
 0x103   :  { %v240_v49 = vadd.f32 %v6271_v47, %v7503_v11  ;;  %v321_v50 = vadd.f32 %v6311_v48, %v7503_v11  ;;  %514 = vmatprep.mubr.bf16.mxu1 %v7312_v7  ;;  %6325 = vmatpush3.bf16.msra.mxu0 %v7069_v41  ;;  %v261_v53 = vmax.f32 %v237_v45, 0.0  ;;  %v342_v54 = vmax.f32 %v318_v46, 0.0 }
 0x104   :  { %6365 = vmatpush3.bf16.msra.mxu1 %v7069_v41  ;;  %6326 = vmatprep.subr.bf16.mxu0 %v7070_v44 }
 0x105   :  { %v262_v55 = vmax.f32 %v240_v49, 0.0  ;;  %v343_v56 = vmax.f32 %v321_v50, 0.0  ;;  %v6272_v57 = vpop.f32.mrb[8].mxu0  ;;  %v6312_v58 = vpop.f32.mrb[8].mxu1  ;;  %6366 = vmatprep.subr.bf16.mxu1 %v7070_v44  ;;  %v7081_v49 = vld [vmem:[%s10590_s1 + $0xb0] sm:$0xff]   ;;  %v7082_v50 = vld [vmem:[%s10590_s1 + $0xf8] sm:$0xff]  }
 0x106   :  { %v6273_v59 = vpop.f32.mrb[9].mxu0  ;;  %v6313_v60 = vpop.f32.mrb[9].mxu1 }
 0x107   :  { %v6274_v61 = vadd.f32 %v6273_v59, %v6272_v57  ;;  %v6314_v62 = vadd.f32 %v6313_v60, %v6312_v58  ;;  %v6275_v63 = vpop.f32.mrb[10].mxu0  ;;  %v6315_v0 = vpop.f32.mrb[10].mxu1  ;;  %v349_v1 = vpack.c.bf16 %v262_v55, %v261_v53  ;;  %v457_v2 = vpack.c.bf16 %v343_v56, %v342_v54  ;;  %6327 = vmatpush3.bf16.msra.mxu0 %v7071_v51  ;;  %v7239_v57 = vld [vmem:[%s10589_s0 + $0x8] sm:$0xff] }
 0x108   :  { %v6276_v3 = vpop.f32.mrb[11].mxu0  ;;  %v6316_v4 = vpop.f32.mrb[11].mxu1  ;;  %6367 = vmatpush3.bf16.msra.mxu1 %v7071_v51  ;;  %6328 = vmatprep.subr.bf16.mxu0 %v7072_v52  ;;  %v7083_v51 = vld [vmem:[%s10590_s1 + $0xb8] sm:$0xff]  }
 0x109   :  { %v245_v6 = vadd.f32 %v6274_v61, %v7503_v11  ;;  %v326_v8 = vadd.f32 %v6314_v62, %v7503_v11  ;;  %v6277_v9 = vadd.f32 %v6276_v3, %v6275_v63  ;;  %v6317_v10 = vadd.f32 %v6316_v4, %v6315_v0  ;;  %5688 = vmatmul.mubr.msk.bf16.gmra.mrb[20].mxu0 %vm360_vm2, %v349_v1  ;;  %v7240_v61 = vld [vmem:[%s10589_s0] sm:$0xff]  ;;  %v7241_v63 = vld [vmem:[%s10589_s0 + $0x88] sm:$0xff]  ;;  %v7242_v1 = vld [vmem:[%s10589_s0 + $0x10] sm:$0xff] }
 0x10a   :  { %5692 = vmatmul.mubr.msk.bf16.gmra.mrb[20].mxu1 %vm360_vm2, %v457_v2  ;;  %435 = vmatprep.mubr.bf16.mxu0 %v7312_v7 }
 0x10b   :  { %v248_v13 = vadd.f32 %v6277_v9, %v7503_v11  ;;  %v329_v14 = vadd.f32 %v6317_v10, %v7503_v11  ;;  %524 = vmatprep.mubr.bf16.mxu1 %v7312_v7  ;;  %6368 = vmatprep.subr.bf16.mxu1 %v7072_v52  ;;  %v263_v16 = vmax.f32 %v245_v6, 0.0  ;;  %v344_v17 = vmax.f32 %v326_v8, 0.0  ;;  %v7086_v52 = vld [vmem:[%s10591_s2 + $0x14] ss:$8 sps:$4 sm:$0x1f]  }
 0x10c   :  { %6329 = vmatpush3.bf16.msra.mxu0 %v7073_v5  ;;  %6369 = vmatpush3.bf16.msra.mxu1 %v7073_v5  ;;  %v936_v53 = vand.u32 %v7086_v52, %v7425_v32  ;;  %v7243_v5 = vld [vmem:[%s10589_s0 + $0x80] sm:$0xff]  ;;  %v7244_v8 = vld [vmem:[%s10589_s0 + $0x90] sm:$0xff]  ;;  %v7245_v10 = vld [vmem:[%s10589_s0 + $0x18] sm:$0xff] }
 0x10d   :  { %v264_v18 = vmax.f32 %v248_v13, 0.0  ;;  %v345_v19 = vmax.f32 %v329_v14, 0.0  ;;  %v6278_v20 = vpop.f32.mrb[12].mxu0  ;;  %v6318_v21 = vpop.f32.mrb[12].mxu1  ;;  %6330 = vmatprep.subr.bf16.mxu0 %v7074_v12  ;;  %6370 = vmatprep.subr.bf16.mxu1 %v7074_v12 }
 0x10e   :  { %v6279_v22 = vpop.f32.mrb[13].mxu0  ;;  %v6319_v23 = vpop.f32.mrb[13].mxu1  ;;  %v7084_v14 = vld [vmem:[%s10591_s2 + $0x10] ss:$8 sps:$4 sm:$0x1f]  }
 0x10f   :  { %v6280_v24 = vadd.f32 %v6279_v22, %v6278_v20  ;;  %v6320_v25 = vadd.f32 %v6319_v23, %v6318_v21  ;;  %v6281_v26 = vpop.f32.mrb[14].mxu0  ;;  %v6321_v27 = vpop.f32.mrb[14].mxu1  ;;  %v350_v28 = vpack.c.bf16 %v264_v18, %v263_v16  ;;  %v458_v29 = vpack.c.bf16 %v345_v19, %v344_v17  ;;  %v7246_v16 = vld [vmem:[%s10589_s0 + $0x98] sm:$0xff] }
 0x110   :  { %v6282_v31 = vpop.f32.mrb[15].mxu0  ;;  %v6322_v33 = vpop.f32.mrb[15].mxu1  ;;  %6331 = vmatpush3.bf16.msra.mxu0 %v7075_v15  ;;  %6371 = vmatpush3.bf16.msra.mxu1 %v7075_v15 }
 0x111   :  { %v253_v35 = vadd.f32 %v6280_v24, %v7503_v11  ;;  %v334_v36 = vadd.f32 %v6320_v25, %v7503_v11  ;;  %v6283_v37 = vadd.f32 %v6282_v31, %v6281_v26  ;;  %v6323_v38 = vadd.f32 %v6322_v33, %v6321_v27  ;;  %5689 = vmatmul.mubr.msk.bf16.gmra.mrb[24].mxu0 %vm360_vm2, %v350_v28 }
 0x112   :  { %5693 = vmatmul.mubr.msk.bf16.gmra.mrb[24].mxu1 %vm360_vm2, %v458_v29  ;;  %445 = vmatprep.mubr.bf16.mxu0 %v7312_v7  ;;  %v933_v27 = vand.u32 %v7084_v14, %v7425_v32 }
 0x113   :  { %v256_v40 = vadd.f32 %v6283_v37, %v7503_v11  ;;  %v337_v41 = vadd.f32 %v6323_v38, %v7503_v11  ;;  %534 = vmatprep.mubr.bf16.mxu1 %v7312_v7  ;;  %6332 = vmatprep.subr.bf16.mxu0 %v7076_v30  ;;  %v265_v43 = vmax.f32 %v253_v35, 0.0  ;;  %v346_v44 = vmax.f32 %v334_v36, 0.0  ;;  %v7080_v11 = vld [vmem:[%s10590_s1 + $0xf0] sm:$0xff]   ;;  %v7248_v38 = vld [vmem:[%s10589_s0 + $0x20] sm:$0xff] }
 0x114   :  { %6372 = vmatprep.subr.bf16.mxu1 %v7076_v30  ;;  %6333 = vmatpush3.bf16.msra.mxu0 %v7077_v34 }
 0x115   :  { %v266_v45 = vmax.f32 %v256_v40, 0.0  ;;  %v347_v46 = vmax.f32 %v337_v41, 0.0  ;;  %6373 = vmatpush3.bf16.msra.mxu1 %v7077_v34  ;;  %6334 = vmatprep.subr.bf16.mxu0 %v7078_v39  ;;  %v7247_v34 = vld [vmem:[%s10589_s0 + $0x28] sm:$0xff] }
 0x116   :  { %6374 = vmatprep.subr.bf16.mxu1 %v7078_v39  ;;  %v7249_v40 = vld [vmem:[%s10589_s0 + $0xa8] sm:$0xff] }
 0x117   :  { %v351_v47 = vpack.c.bf16 %v266_v45, %v265_v43  ;;  %v459_v48 = vpack.c.bf16 %v347_v46, %v346_v44  ;;  %v7251_v46 = vld [vmem:[%s10589_s0 + $0xa0] sm:$0xff] }
 0x118   :  { %6335 = vmatpush3.bf16.msra.mxu0 %v7079_v42 }
 0x119   :  { %5690 = vmatmul.mubr.msk.bf16.gmra.mrb[28].mxu0 %vm360_vm2, %v351_v47  ;;  %6375 = vmatpush3.bf16.msra.mxu1 %v7079_v42  ;;  %v7250_v42 = vld [vmem:[%s10589_s0 + $0x30] sm:$0xff] }
 0x11a   :  { %5694 = vmatmul.mubr.msk.bf16.gmra.mrb[28].mxu1 %vm360_vm2, %v459_v48  ;;  %6336 = vmatprep.subr.bf16.mxu0 %v7080_v11  ;;  %v7252_v48 = vld [vmem:[%s10589_s0 + $0xb0] sm:$0xff] }
 0x11b   :  { %6376 = vmatprep.subr.bf16.mxu1 %v7080_v11 }
 0x11c   :  { %6337 = vmatpush3.bf16.msra.mxu0 %v7081_v49 }
 0x11d   :  { %6377 = vmatpush3.bf16.msra.mxu1 %v7081_v49  ;;  %6338 = vmatprep.subr.bf16.mxu0 %v7082_v50  ;;  %v7253_v49 = vld [vmem:[%s10589_s0 + $0x38] sm:$0xff] }
 0x11e   :  { %6378 = vmatprep.subr.bf16.mxu1 %v7082_v50 }
 0x120   :  { %6339 = vmatpush3.bf16.msra.mxu0 %v7083_v51 }
 0x121   :  { %6379 = vmatpush3.bf16.msra.mxu1 %v7083_v51  ;;  %938 = vmatprep.subr.bf16.mxu0 %v936_v53 }
 0x122   :  { %1027 = vmatprep.subr.bf16.mxu1 %v936_v53  ;;  %v7254_v53 = vld [vmem:[%s10589_s0 + $0xb8] sm:$0xff] }
 0x1d4   :  { %v417_v54 = vpop.f32.mrb[16].mxu0 }
 0x1d5   :  { %v506_v55 = vpop.f32.mrb[16].mxu1  ;;  %v419_v56 = vpop.f32.mrb[17].mxu0  ;;  %v7592_v62 = vadd.f32 %v7240_v61, %v417_v54 }
 0x1d6   :  { %v7587_v58 = vadd.f32 %v7239_v57, %v419_v56  ;;  %v508_v59 = vpop.f32.mrb[17].mxu1  ;;  %v421_v60 = vpop.f32.mrb[18].mxu0  ;;  %v7607_v6 = vadd.f32 %v7243_v5, %v506_v55 }
 0x1d7   :  { %v7597_v0 = vadd.f32 %v7241_v63, %v508_v59  ;;  %v7602_v2 = vadd.f32 %v7242_v1, %v421_v60  ;;  %v510_v3 = vpop.f32.mrb[18].mxu1  ;;  %v423_v4 = vpop.f32.mrb[19].mxu0  ;;  %v561_v21 = vmax.f32 %v7592_v62, 0.0 }
 0x1d8   :  { %v7612_v9 = vadd.f32 %v7244_v8, %v510_v3  ;;  %v7617_v12 = vadd.f32 %v7245_v10, %v423_v4  ;;  %v512_v13 = vpop.f32.mrb[19].mxu1  ;;  %v562_v18 = vmax.f32 %v7587_v58, 0.0  ;;  %v593_v24 = vmax.f32 %v7607_v6, 0.0 }
 0x1d9   :  { %v563_v15 = vmax.f32 %v7602_v2, 0.0  ;;  %v7626_v17 = vadd.f32 %v7246_v16, %v512_v13  ;;  %v594_v22 = vmax.f32 %v7597_v0, 0.0  ;;  %v7255_v13 = vld [vmem:[%s10589_s0 + $0x48] sm:$0xff] }
 0x1da   :  { %v595_v19 = vmax.f32 %v7612_v9, 0.0  ;;  %v564_v20 = vmax.f32 %v7617_v12, 0.0  ;;  %v7103_v2 = vld [vmem:[%s10591_s2 + $0x20] ss:$8 sps:$4 sm:$0x1f]  }
 0x1db   :  { %v10618_v23 = vmax.f32 %v7626_v17, 0.0  ;;  %v646_v28 = vpack.c.bf16 %v563_v15, %v561_v21 }
 0x1dc   :  { %v427_v25 = vpop.f32.mrb[20].mxu0  ;;  %v647_v26 = vpack.c.bf16 %v564_v20, %v562_v18  ;;  %v827_v33 = vpack.c.bf16 %v595_v19, %v593_v24 }
 0x1dd   :  { %v516_v29 = vpop.f32.mrb[20].mxu1  ;;  %v429_v30 = vpop.f32.mrb[21].mxu0  ;;  %v828_v31 = vpack.c.bf16 %v10618_v23, %v594_v22  ;;  %v7660_v39 = vadd.f32 %v7248_v38, %v427_v25 }
 0x1de   :  { %v7655_v35 = vadd.f32 %v7247_v34, %v429_v30  ;;  %v518_v36 = vpop.f32.mrb[21].mxu1  ;;  %v431_v37 = vpop.f32.mrb[22].mxu0  ;;  %786 = vmatprep.mubr.bf16.mxu0 %v647_v26  ;;  %v7675_v47 = vadd.f32 %v7251_v46, %v516_v29  ;;  %v7257_v29 = vld [vmem:[%s10589_s0 + $0xc8] sm:$0xff] }
 0x1df   :  { %v7665_v41 = vadd.f32 %v7249_v40, %v518_v36  ;;  %v7670_v43 = vadd.f32 %v7250_v42, %v431_v37  ;;  %v520_v44 = vpop.f32.mrb[22].mxu1  ;;  %867 = vmatprep.mubr.bf16.mxu1 %v828_v31  ;;  %v433_v45 = vpop.f32.mrb[23].mxu0  ;;  %787 = vmatmul.mubr.bf16.vlgmr.msra.gmra.mrb[32].mxu0 %v646_v28  ;;  %v10616_v59 = vmax.f32 %v7660_v39, 0.0  ;;  %v7258_v31 = vld [vmem:[%s10589_s0 + $0x50] sm:$0xff]  ;;  %v7259_v37 = vld [vmem:[%s10589_s0 + $0xc0] sm:$0xff] }
 0x1e0   :  { %v7680_v11 = vadd.f32 %v7252_v48, %v520_v44  ;;  %v7685_v50 = vadd.f32 %v7253_v49, %v433_v45  ;;  %v522_v51 = vpop.f32.mrb[23].mxu1  ;;  %868 = vmatmul.mubr.bf16.vlgmr.msra.gmra.mrb[32].mxu1 %v827_v33  ;;  %939 = vmatpush1.bf16.msra.mxu0 %v933_v27  ;;  %v10617_v55 = vmax.f32 %v7655_v35, 0.0  ;;  %v10613_v63 = vmax.f32 %v7675_v47, 0.0  ;;  %v7260_v40 = vld [vmem:[%s10589_s0 + $0xd0] sm:$0xff]  ;;  %v7261_v44 = vld [vmem:[%s10589_s0 + $0x58] sm:$0xff] }
 0x1e1   :  { %v10614_v52 = vmax.f32 %v7670_v43, 0.0  ;;  %v7691_v54 = vadd.f32 %v7254_v53, %v522_v51  ;;  %1028 = vmatpush1.bf16.msra.mxu1 %v933_v27  ;;  %v10615_v60 = vmax.f32 %v7665_v41, 0.0  ;;  %v7256_v27 = vld [vmem:[%s10589_s0 + $0x40] sm:$0xff]  ;;  %v7262_v49 = vld [vmem:[%s10589_s0 + $0xd8] sm:$0xff] }
 0x1e2   :  { %v10612_v56 = vmax.f32 %v7680_v11, 0.0  ;;  %v10611_v57 = vmax.f32 %v7685_v50, 0.0 }
 0x1e3   :  { %v10610_v61 = vmax.f32 %v7691_v54, 0.0  ;;  %v648_v10 = vpack.c.bf16 %v10614_v52, %v10616_v59 }
 0x1e4   :  { %v437_v1 = vpop.f32.mrb[24].mxu0  ;;  %v649_v3 = vpack.c.bf16 %v10611_v57, %v10617_v55  ;;  %v829_v26 = vpack.c.bf16 %v10612_v56, %v10613_v63 }
 0x1e5   :  { %v526_v4 = vpop.f32.mrb[24].mxu1  ;;  %v439_v5 = vpop.f32.mrb[25].mxu0  ;;  %v830_v8 = vpack.c.bf16 %v10610_v61, %v10615_v60  ;;  %v7724_v28 = vadd.f32 %v7256_v27, %v437_v1 }
 0x1e6   :  { %v7715_v14 = vadd.f32 %v7255_v13, %v439_v5  ;;  %v528_v16 = vpop.f32.mrb[25].mxu1  ;;  %v441_v25 = vpop.f32.mrb[26].mxu0  ;;  %794 = vmatprep.mubr.bf16.mxu0 %v649_v3  ;;  %v7739_v38 = vadd.f32 %v7259_v37, %v526_v4 }
 0x1e7   :  { %v7729_v30 = vadd.f32 %v7257_v29, %v528_v16  ;;  %v7734_v33 = vadd.f32 %v7258_v31, %v441_v25  ;;  %v530_v34 = vpop.f32.mrb[26].mxu1  ;;  %875 = vmatprep.mubr.bf16.mxu1 %v830_v8  ;;  %v443_v36 = vpop.f32.mrb[27].mxu0  ;;  %795 = vmatmul.mubr.bf16.gmra.mrb[36].mxu0 %v648_v10  ;;  %v10608_v4 = vmax.f32 %v7724_v28, 0.0  ;;  %v7263_v31 = vld [vmem:[%s10589_s0 + $0x68] sm:$0xff] }
 0x1e8   :  { %v7744_v42 = vadd.f32 %v7260_v40, %v530_v34  ;;  %v7749_v45 = vadd.f32 %v7261_v44, %v443_v36  ;;  %v532_v46 = vpop.f32.mrb[27].mxu1  ;;  %876 = vmatmul.mubr.bf16.gmra.mrb[36].mxu1 %v829_v26  ;;  %v10609_v53 = vmax.f32 %v7715_v14, 0.0  ;;  %v10597_v10 = vmax.f32 %v7739_v38, 0.0  ;;  %v7264_v44 = vld [vmem:[%s10589_s0 + $0x60] sm:$0xff] }
 0x1e9   :  { %v10598_v48 = vmax.f32 %v7734_v33, 0.0  ;;  %v7755_v51 = vadd.f32 %v7262_v49, %v532_v46  ;;  %v10599_v5 = vmax.f32 %v7729_v30, 0.0  ;;  %v7265_v49 = vld [vmem:[%s10589_s0 + $0xe8] sm:$0xff] }
 0x1ea   :  { %v10596_v1 = vmax.f32 %v7744_v42, 0.0  ;;  %v10595_v3 = vmax.f32 %v7749_v45, 0.0 }
 0x1eb   :  { %v10594_v8 = vmax.f32 %v7755_v51, 0.0  ;;  %v650_v29 = vpack.c.bf16 %v10598_v48, %v10608_v4 }
 0x1ec   :  { %v447_v13 = vpop.f32.mrb[28].mxu0  ;;  %v651_v16 = vpack.c.bf16 %v10595_v3, %v10609_v53  ;;  %v831_v40 = vpack.c.bf16 %v10596_v1, %v10597_v10 }
 0x1ed   :  { %v536_v25 = vpop.f32.mrb[28].mxu1  ;;  %v449_v26 = vpop.f32.mrb[29].mxu0  ;;  %v832_v27 = vpack.c.bf16 %v10594_v8, %v10599_v5  ;;  %v7788_v46 = vadd.f32 %v7264_v44, %v447_v13  ;;  %v7267_v13 = vld [vmem:[%s10589_s0 + $0xe0] sm:$0xff] }
 0x1ee   :  { %v7779_v34 = vadd.f32 %v7263_v31, %v449_v26  ;;  %v538_v36 = vpop.f32.mrb[29].mxu1  ;;  %v451_v37 = vpop.f32.mrb[30].mxu0  ;;  %802 = vmatprep.mubr.bf16.mxu0 %v651_v16  ;;  %v7266_v16 = vld [vmem:[%s10589_s0 + $0x70] sm:$0xff]  ;;  %v7803_v44 = vadd.f32 %v7267_v13, %v536_v25  ;;  %v7270_v25 = vld [vmem:[%s10589_s0 + $0xf8] sm:$0xff] }
 0x1ef   :  { %v7793_v26 = vadd.f32 %v7265_v49, %v538_v36  ;;  %v7798_v31 = vadd.f32 %v7266_v16, %v451_v37  ;;  %v540_v8 = vpop.f32.mrb[30].mxu1  ;;  %883 = vmatprep.mubr.bf16.mxu1 %v832_v27  ;;  %v453_v3 = vpop.f32.mrb[31].mxu0  ;;  %803 = vmatmul.mubr.bf16.gmra.mrb[40].mxu0 %v650_v29  ;;  %v7268_v36 = vld [vmem:[%s10589_s0 + $0xf0] sm:$0xff]  ;;  %v7269_v37 = vld [vmem:[%s10589_s0 + $0x78] sm:$0xff]  ;;  %v10606_v10 = vmax.f32 %v7788_v46, 0.0 }
 0x1f0   :  { %v7808_v49 = vadd.f32 %v7268_v36, %v540_v8  ;;  %v7813_v16 = vadd.f32 %v7269_v37, %v453_v3  ;;  %v542_v27 = vpop.f32.mrb[31].mxu1  ;;  %884 = vmatmul.mubr.bf16.gmra.mrb[40].mxu1 %v831_v40  ;;  %v10607_v1 = vmax.f32 %v7779_v34, 0.0  ;;  %v10604_v37 = vmax.f32 %v7803_v44, 0.0 }
 0x1f1   :  { %v10602_v29 = vmax.f32 %v7798_v31, 0.0  ;;  %v7819_v13 = vadd.f32 %v7270_v25, %v542_v27  ;;  %v10605_v3 = vmax.f32 %v7793_v26, 0.0 }
 0x1f2   :  { %v10603_v8 = vmax.f32 %v7808_v49, 0.0  ;;  %v10601_v36 = vmax.f32 %v7813_v16, 0.0 }
 0x1f3   :  { %v10600_v40 = vmax.f32 %v7819_v13, 0.0  ;;  %v652_v48 = vpack.c.bf16 %v10602_v29, %v10606_v10  ;;  %v7852_v29 = vld [vmem:[%s10592_s3 + $0x1] ss:$0 sm:$0xff] }
 0x1f4   :  { %v653_v27 = vpack.c.bf16 %v10601_v36, %v10607_v1  ;;  %v833_v5 = vpack.c.bf16 %v10603_v8, %v10604_v37 }
 0x1f5   :  { %v834_v25 = vpack.c.bf16 %v10600_v40, %v10605_v3  ;;  %v7087_v40 = vld [vmem:[%s10590_s1 + $0x140] sm:$0xff]  }
 0x1f6   :  { %810 = vmatprep.mubr.bf16.mxu0 %v653_v27  ;;  %6404 = vmatprep.subr.bf16.mxu0 %v7087_v40 }
 0x1f7   :  { %891 = vmatprep.mubr.bf16.mxu1 %v834_v25  ;;  %811 = vmatmul.mubr.bf16.gmra.mrb[44].mxu0 %v652_v48 }
 0x1f8   :  { %892 = vmatmul.mubr.bf16.gmra.mrb[44].mxu1 %v833_v5  ;;  %970 = vmatprep.mubr.bf16.mxu0 %v7312_v7 }
 0x1f9   :  { %1059 = vmatprep.mubr.bf16.mxu1 %v7312_v7  ;;  %6444 = vmatprep.subr.bf16.mxu1 %v7087_v40 }
 0x2b2   :  { %v6340_v36 = vpop.f32.mrb[32].mxu0 }
 0x2b3   :  { %v6380_v27 = vpop.f32.mrb[32].mxu1  ;;  %v6341_v25 = vpop.f32.mrb[33].mxu0 }
 0x2b4   :  { %v6342_v48 = vadd.f32 %v6341_v25, %v6340_v36  ;;  %v6381_v5 = vpop.f32.mrb[33].mxu1  ;;  %v6343_v8 = vpop.f32.mrb[34].mxu0 }
 0x2b5   :  { %v6382_v37 = vadd.f32 %v6381_v5, %v6380_v27  ;;  %v6383_v3 = vpop.f32.mrb[34].mxu1  ;;  %v6344_v10 = vpop.f32.mrb[35].mxu0 }
 0x2b6   :  { %v789_v1 = vadd.f32 %v6342_v48, %v7852_v29  ;;  %v6345_v4 = vadd.f32 %v6344_v10, %v6343_v8  ;;  %v6384_v53 = vpop.f32.mrb[35].mxu1  ;;  %v7088_v10 = vld [vmem:[%s10590_s1 + $0x100] sm:$0xff]  }
 0x2b7   :  { %v870_v40 = vadd.f32 %v6382_v37, %v7852_v29  ;;  %v6385_v61 = vadd.f32 %v6384_v53, %v6383_v3 }
 0x2b8   :  { %v792_v57 = vadd.f32 %v6345_v4, %v7852_v29  ;;  %v819_v63 = vmax.f32 %v789_v1, 0.0 }
 0x2b9   :  { %v873_v56 = vadd.f32 %v6385_v61, %v7852_v29  ;;  %v900_v36 = vmax.f32 %v870_v40, 0.0 }
 0x2ba   :  { %v820_v52 = vmax.f32 %v792_v57, 0.0  ;;  %v6346_v60 = vpop.f32.mrb[36].mxu0  ;;  %v7089_v57 = vld [vmem:[%s10590_s1 + $0x148] sm:$0xff]  }
 0x2bb   :  { %v901_v25 = vmax.f32 %v873_v56, 0.0  ;;  %v6386_v59 = vpop.f32.mrb[36].mxu1  ;;  %v6347_v27 = vpop.f32.mrb[37].mxu0 }
 0x2bc   :  { %v908_v5 = vpack.c.bf16 %v820_v52, %v819_v63  ;;  %v6348_v55 = vadd.f32 %v6347_v27, %v6346_v60  ;;  %v6387_v23 = vpop.f32.mrb[37].mxu1  ;;  %v6349_v48 = vpop.f32.mrb[38].mxu0  ;;  %v7091_v63 = vld [vmem:[%s10590_s1 + $0x150] sm:$0xff]  }
 0x2bd   :  { %v1011_v53 = vpack.c.bf16 %v901_v25, %v900_v36  ;;  %v6388_v8 = vadd.f32 %v6387_v23, %v6386_v59  ;;  %v6389_v4 = vpop.f32.mrb[38].mxu1  ;;  %v6350_v3 = vpop.f32.mrb[39].mxu0 }
 0x2be   :  { %v797_v56 = vadd.f32 %v6348_v55, %v7852_v29  ;;  %v6351_v61 = vadd.f32 %v6350_v3, %v6349_v48  ;;  %v6390_v1 = vpop.f32.mrb[39].mxu1  ;;  %5748 = vmatmul.mubr.msk.bf16.vlgmr.msra.gmra.mrb[48].mxu0 %vm360_vm2, %v908_v5  ;;  %v7090_v55 = vld [vmem:[%s10590_s1 + $0x108] sm:$0xff]  }
 0x2bf   :  { %v878_v52 = vadd.f32 %v6388_v8, %v7852_v29  ;;  %v6391_v60 = vadd.f32 %v6390_v1, %v6389_v4  ;;  %5752 = vmatmul.mubr.msk.bf16.vlgmr.msra.gmra.mrb[48].mxu1 %vm360_vm2, %v1011_v53  ;;  %980 = vmatprep.mubr.bf16.mxu0 %v7312_v7 }
 0x2c0   :  { %v800_v23 = vadd.f32 %v6351_v61, %v7852_v29  ;;  %1069 = vmatprep.mubr.bf16.mxu1 %v7312_v7  ;;  %6405 = vmatpush3.bf16.msra.mxu0 %v7088_v10  ;;  %v821_v37 = vmax.f32 %v797_v56, 0.0 }
 0x2c1   :  { %v881_v59 = vadd.f32 %v6391_v60, %v7852_v29  ;;  %6445 = vmatpush3.bf16.msra.mxu1 %v7088_v10  ;;  %6406 = vmatprep.subr.bf16.mxu0 %v7089_v57  ;;  %v902_v25 = vmax.f32 %v878_v52, 0.0  ;;  %v7092_v10 = vld [vmem:[%s10590_s1 + $0x110] sm:$0xff]  }
 0x2c2   :  { %v822_v40 = vmax.f32 %v800_v23, 0.0  ;;  %v6352_v36 = vpop.f32.mrb[40].mxu0  ;;  %6446 = vmatprep.subr.bf16.mxu1 %v7089_v57  ;;  %v7093_v57 = vld [vmem:[%s10590_s1 + $0x158] sm:$0xff]  }
 0x2c3   :  { %v903_v27 = vmax.f32 %v881_v59, 0.0  ;;  %v6392_v5 = vpop.f32.mrb[40].mxu1  ;;  %v6353_v48 = vpop.f32.mrb[41].mxu0 }
 0x2c4   :  { %v6354_v53 = vadd.f32 %v6353_v48, %v6352_v36  ;;  %v6393_v8 = vpop.f32.mrb[41].mxu1  ;;  %v6355_v4 = vpop.f32.mrb[42].mxu0  ;;  %v909_v3 = vpack.c.bf16 %v822_v40, %v821_v37  ;;  %6407 = vmatpush3.bf16.msra.mxu0 %v7090_v55  ;;  %v7094_v36 = vld [vmem:[%s10590_s1 + $0x118] sm:$0xff]  }
 0x2c5   :  { %v6394_v61 = vadd.f32 %v6393_v8, %v6392_v5  ;;  %v6395_v1 = vpop.f32.mrb[42].mxu1  ;;  %v6356_v60 = vpop.f32.mrb[43].mxu0  ;;  %v1012_v56 = vpack.c.bf16 %v903_v27, %v902_v25  ;;  %6447 = vmatpush3.bf16.msra.mxu1 %v7090_v55  ;;  %6408 = vmatprep.subr.bf16.mxu0 %v7091_v63 }
 0x2c6   :  { %v805_v52 = vadd.f32 %v6354_v53, %v7852_v29  ;;  %v6357_v23 = vadd.f32 %v6356_v60, %v6355_v4  ;;  %v6396_v59 = vpop.f32.mrb[43].mxu1  ;;  %5749 = vmatmul.mubr.msk.bf16.gmra.mrb[52].mxu0 %vm360_vm2, %v909_v3  ;;  %6448 = vmatprep.subr.bf16.mxu1 %v7091_v63  ;;  %v7095_v63 = vld [vmem:[%s10590_s1 + $0x160] sm:$0xff]  }
 0x2c7   :  { %v886_v37 = vadd.f32 %v6394_v61, %v7852_v29  ;;  %v6397_v40 = vadd.f32 %v6396_v59, %v6395_v1  ;;  %5753 = vmatmul.mubr.msk.bf16.gmra.mrb[52].mxu1 %vm360_vm2, %v1012_v56  ;;  %990 = vmatprep.mubr.bf16.mxu0 %v7312_v7 }
 0x2c8   :  { %v808_v55 = vadd.f32 %v6357_v23, %v7852_v29  ;;  %1079 = vmatprep.mubr.bf16.mxu1 %v7312_v7  ;;  %6409 = vmatpush3.bf16.msra.mxu0 %v7092_v10  ;;  %v823_v27 = vmax.f32 %v805_v52, 0.0 }
 0x2c9   :  { %v889_v25 = vadd.f32 %v6397_v40, %v7852_v29  ;;  %6449 = vmatpush3.bf16.msra.mxu1 %v7092_v10  ;;  %6410 = vmatprep.subr.bf16.mxu0 %v7093_v57  ;;  %v904_v53 = vmax.f32 %v886_v37, 0.0  ;;  %v7096_v10 = vld [vmem:[%s10590_s1 + $0x120] sm:$0xff]  }
 0x2ca   :  { %v824_v5 = vmax.f32 %v808_v55, 0.0  ;;  %v6358_v48 = vpop.f32.mrb[44].mxu0  ;;  %6450 = vmatprep.subr.bf16.mxu1 %v7093_v57  ;;  %v7097_v57 = vld [vmem:[%s10590_s1 + $0x168] sm:$0xff]  }
 0x2cb   :  { %v905_v8 = vmax.f32 %v889_v25, 0.0  ;;  %v6398_v4 = vpop.f32.mrb[44].mxu1  ;;  %v6359_v3 = vpop.f32.mrb[45].mxu0 }
 0x2cc   :  { %v6360_v61 = vadd.f32 %v6359_v3, %v6358_v48  ;;  %v6399_v1 = vpop.f32.mrb[45].mxu1  ;;  %v6361_v60 = vpop.f32.mrb[46].mxu0  ;;  %v910_v56 = vpack.c.bf16 %v824_v5, %v823_v27  ;;  %6411 = vmatpush3.bf16.msra.mxu0 %v7094_v36  ;;  %v7098_v48 = vld [vmem:[%s10590_s1 + $0x128] sm:$0xff]  }
 0x2cd   :  { %v6400_v23 = vadd.f32 %v6399_v1, %v6398_v4  ;;  %v6401_v59 = vpop.f32.mrb[46].mxu1  ;;  %v6362_v40 = vpop.f32.mrb[47].mxu0  ;;  %v1013_v52 = vpack.c.bf16 %v905_v8, %v904_v53  ;;  %6451 = vmatpush3.bf16.msra.mxu1 %v7094_v36  ;;  %6412 = vmatprep.subr.bf16.mxu0 %v7095_v63 }
 0x2ce   :  { %v813_v37 = vadd.f32 %v6360_v61, %v7852_v29  ;;  %v6363_v55 = vadd.f32 %v6362_v40, %v6361_v60  ;;  %v6402_v25 = vpop.f32.mrb[47].mxu1  ;;  %5750 = vmatmul.mubr.msk.bf16.gmra.mrb[56].mxu0 %vm360_vm2, %v910_v56  ;;  %6452 = vmatprep.subr.bf16.mxu1 %v7095_v63  ;;  %v7099_v60 = vld [vmem:[%s10590_s1 + $0x170] sm:$0xff]   ;;  %v7101_v56 = vld [vmem:[%s10590_s1 + $0x178] sm:$0xff]  }
 0x2cf   :  { %v894_v27 = vadd.f32 %v6400_v23, %v7852_v29  ;;  %v6403_v5 = vadd.f32 %v6402_v25, %v6401_v59  ;;  %5754 = vmatmul.mubr.msk.bf16.gmra.mrb[56].mxu1 %vm360_vm2, %v1013_v52  ;;  %1000 = vmatprep.mubr.bf16.mxu0 %v7312_v7  ;;  %v7105_v23 = vld [vmem:[%s10591_s2 + $0x24] ss:$8 sps:$4 sm:$0x1f]  }
 0x2d0   :  { %v816_v36 = vadd.f32 %v6363_v55, %v7852_v29  ;;  %1089 = vmatprep.mubr.bf16.mxu1 %v7312_v7  ;;  %6413 = vmatpush3.bf16.msra.mxu0 %v7096_v10  ;;  %v825_v63 = vmax.f32 %v813_v37, 0.0  ;;  %v1491_v59 = vand.u32 %v7105_v23, %v7425_v32 }
 0x2d1   :  { %v897_v53 = vadd.f32 %v6403_v5, %v7852_v29  ;;  %6453 = vmatpush3.bf16.msra.mxu1 %v7096_v10  ;;  %6414 = vmatprep.subr.bf16.mxu0 %v7097_v57  ;;  %v906_v4 = vmax.f32 %v894_v27, 0.0  ;;  %v7100_v29 = vld [vmem:[%s10590_s1 + $0x130] sm:$0xff]   ;;  %v7102_v10 = vld [vmem:[%s10590_s1 + $0x138] sm:$0xff]  }
 0x2d2   :  { %v826_v8 = vmax.f32 %v816_v36, 0.0  ;;  %6454 = vmatprep.subr.bf16.mxu1 %v7097_v57 }
 0x2d3   :  { %v907_v3 = vmax.f32 %v897_v53, 0.0 }
 0x2d4   :  { %v911_v61 = vpack.c.bf16 %v826_v8, %v825_v63  ;;  %6415 = vmatpush3.bf16.msra.mxu0 %v7098_v48 }
 0x2d5   :  { %v1014_v1 = vpack.c.bf16 %v907_v3, %v906_v4  ;;  %6455 = vmatpush3.bf16.msra.mxu1 %v7098_v48  ;;  %6416 = vmatprep.subr.bf16.mxu0 %v7099_v60  ;;  %v1488_v4 = vand.u32 %v7103_v2, %v7425_v32 }
 0x2d6   :  { %5751 = vmatmul.mubr.msk.bf16.gmra.mrb[60].mxu0 %vm360_vm2, %v911_v61  ;;  %6456 = vmatprep.subr.bf16.mxu1 %v7099_v60 }
 0x2d7   :  { %5755 = vmatmul.mubr.msk.bf16.gmra.mrb[60].mxu1 %vm360_vm2, %v1014_v1 }
 0x2d8   :  { %6417 = vmatpush3.bf16.msra.mxu0 %v7100_v29 }
 0x2d9   :  { %6457 = vmatpush3.bf16.msra.mxu1 %v7100_v29  ;;  %6418 = vmatprep.subr.bf16.mxu0 %v7101_v56 }
 0x2da   :  { %6458 = vmatprep.subr.bf16.mxu1 %v7101_v56  ;;  %v10820_v56 = vmax.f32 %v7655_v35, 0.0 }
 0x2dc   :  { %6419 = vmatpush3.bf16.msra.mxu0 %v7102_v10 }
 0x2dd   :  { %6459 = vmatpush3.bf16.msra.mxu1 %v7102_v10  ;;  %1493 = vmatprep.subr.bf16.mxu0 %v1491_v59 }
 0x2de   :  { %1582 = vmatprep.subr.bf16.mxu1 %v1491_v59 }
 0x391   :  { %v972_v40 = vpop.f32.mrb[48].mxu0 }
 0x392   :  { %v1061_v52 = vpop.f32.mrb[48].mxu1  ;;  %v974_v57 = vpop.f32.mrb[49].mxu0  ;;  %v7939_v27 = vadd.f32 %v972_v40, %v561_v21  ;;  %v10819_v21 = vmax.f32 %v7626_v17, 0.0  ;;  %v10821_v40 = vmax.f32 %v7660_v39, 0.0  ;;  %v10825_v39 = vmax.f32 %v7680_v11, 0.0 }
 0x393   :  { %v7935_v37 = vadd.f32 %v974_v57, %v562_v18  ;;  %v1063_v55 = vpop.f32.mrb[49].mxu1  ;;  %v976_v25 = vpop.f32.mrb[50].mxu0  ;;  %v7951_v58 = vadd.f32 %v1061_v52, %v593_v24  ;;  %v10822_v57 = vmax.f32 %v7665_v41, 0.0  ;;  %v10826_v41 = vmax.f32 %v7685_v50, 0.0 }
 0x394   :  { %v7943_v5 = vadd.f32 %v1063_v55, %v594_v22  ;;  %v7947_v36 = vadd.f32 %v976_v25, %v563_v15  ;;  %v1065_v48 = vpop.f32.mrb[50].mxu1  ;;  %v978_v53 = vpop.f32.mrb[51].mxu0  ;;  %v1116_v12 = vmax.f32 %v7939_v27, 0.0  ;;  %v10823_v25 = vmax.f32 %v7670_v43, 0.0 }
 0x395   :  { %v7955_v18 = vadd.f32 %v1065_v48, %v595_v19  ;;  %v7959_v62 = vadd.f32 %v978_v53, %v564_v20  ;;  %v1067_v0 = vpop.f32.mrb[51].mxu1  ;;  %v1117_v22 = vmax.f32 %v7935_v37, 0.0  ;;  %v1148_v63 = vmax.f32 %v7951_v58, 0.0 }
 0x396   :  { %v1118_v15 = vmax.f32 %v7947_v36, 0.0  ;;  %v7967_v6 = vadd.f32 %v1067_v0, %v10819_v21  ;;  %v1149_v20 = vmax.f32 %v7943_v5, 0.0  ;;  %v10824_v0 = vmax.f32 %v7675_v47, 0.0  ;;  %v7122_v36 = vld [vmem:[%s10591_s2 + $0x30] ss:$8 sps:$4 sm:$0x1f]  }
 0x397   :  { %v1150_v9 = vmax.f32 %v7955_v18, 0.0  ;;  %v1119_v19 = vmax.f32 %v7959_v62, 0.0 }
 0x398   :  { %v10643_v24 = vmax.f32 %v7967_v6, 0.0  ;;  %v1201_v3 = vpack.c.bf16 %v1118_v15, %v1116_v12 }
 0x399   :  { %v982_v8 = vpop.f32.mrb[52].mxu0  ;;  %v1202_v17 = vpack.c.bf16 %v1119_v19, %v1117_v22  ;;  %v1382_v29 = vpack.c.bf16 %v1150_v9, %v1148_v63 }
 0x39a   :  { %v1071_v61 = vpop.f32.mrb[52].mxu1  ;;  %v984_v1 = vpop.f32.mrb[53].mxu0  ;;  %v1383_v60 = vpack.c.bf16 %v10643_v24, %v1149_v20  ;;  %v7999_v52 = vadd.f32 %v982_v8, %v10821_v40 }
 0x39b   :  { %v7995_v10 = vadd.f32 %v984_v1, %v10820_v56  ;;  %v1073_v23 = vpop.f32.mrb[53].mxu1  ;;  %v986_v59 = vpop.f32.mrb[54].mxu0  ;;  %1341 = vmatprep.mubr.bf16.mxu0 %v1202_v17  ;;  %v8011_v2 = vadd.f32 %v1071_v61, %v10824_v0  ;;  %v10827_v1 = vmax.f32 %v7691_v54, 0.0 }
 0x39c   :  { %v8003_v55 = vadd.f32 %v1073_v23, %v10822_v57  ;;  %v8007_v48 = vadd.f32 %v986_v59, %v10823_v25  ;;  %v1075_v53 = vpop.f32.mrb[54].mxu1  ;;  %1422 = vmatprep.mubr.bf16.mxu1 %v1383_v60  ;;  %v988_v35 = vpop.f32.mrb[55].mxu0  ;;  %1342 = vmatmul.mubr.bf16.vlgmr.msra.gmra.mrb[64].mxu0 %v1201_v3  ;;  %v10641_v50 = vmax.f32 %v7999_v52, 0.0  ;;  %v10828_v25 = vmax.f32 %v7715_v14, 0.0 }
 0x39d   :  { %v8015_v21 = vadd.f32 %v1075_v53, %v10825_v39  ;;  %v8019_v8 = vadd.f32 %v988_v35, %v10826_v41  ;;  %v1077_v17 = vpop.f32.mrb[55].mxu1  ;;  %1423 = vmatmul.mubr.bf16.vlgmr.msra.gmra.mrb[64].mxu1 %v1382_v29  ;;  %1494 = vmatpush1.bf16.msra.mxu0 %v1488_v4  ;;  %v10642_v47 = vmax.f32 %v7995_v10, 0.0  ;;  %v10627_v56 = vmax.f32 %v8011_v2, 0.0 }
 0x39e   :  { %v10621_v43 = vmax.f32 %v8007_v48, 0.0  ;;  %v8024_v3 = vadd.f32 %v1077_v17, %v10827_v1  ;;  %1583 = vmatpush1.bf16.msra.mxu1 %v1488_v4  ;;  %v10640_v60 = vmax.f32 %v8003_v55, 0.0  ;;  %v10829_v41 = vmax.f32 %v7724_v28, 0.0 }
 0x39f   :  { %v10622_v11 = vmax.f32 %v8015_v21, 0.0  ;;  %v10620_v61 = vmax.f32 %v8019_v8, 0.0  ;;  %v10830_v1 = vmax.f32 %v7729_v30, 0.0  ;;  %v10831_v14 = vmax.f32 %v7734_v33, 0.0 }
 0x3a0   :  { %v10619_v29 = vmax.f32 %v8024_v3, 0.0  ;;  %v1203_v57 = vpack.c.bf16 %v10621_v43, %v10641_v50  ;;  %v10833_v28 = vmax.f32 %v7744_v42, 0.0  ;;  %v10834_v30 = vmax.f32 %v7749_v45, 0.0 }
 0x3a1   :  { %v992_v23 = vpop.f32.mrb[56].mxu0  ;;  %v1204_v54 = vpack.c.bf16 %v10620_v61, %v10642_v47  ;;  %v1384_v39 = vpack.c.bf16 %v10622_v11, %v10627_v56  ;;  %v10832_v61 = vmax.f32 %v7739_v38, 0.0 }
 0x3a2   :  { %v1081_v4 = vpop.f32.mrb[56].mxu1  ;;  %v994_v59 = vpop.f32.mrb[57].mxu0  ;;  %v1385_v40 = vpack.c.bf16 %v10619_v29, %v10640_v60  ;;  %v8055_v17 = vadd.f32 %v992_v23, %v10829_v41 }
 0x3a3   :  { %v8047_v53 = vadd.f32 %v994_v59, %v10828_v25  ;;  %v1083_v35 = vpop.f32.mrb[57].mxu1  ;;  %v996_v0 = vpop.f32.mrb[58].mxu0  ;;  %1349 = vmatprep.mubr.bf16.mxu0 %v1204_v54  ;;  %v8067_v43 = vadd.f32 %v1081_v4, %v10832_v61 }
 0x3a4   :  { %v8059_v29 = vadd.f32 %v1083_v35, %v10830_v1  ;;  %v8063_v59 = vadd.f32 %v996_v0, %v10831_v14  ;;  %v1085_v25 = vpop.f32.mrb[58].mxu1  ;;  %1430 = vmatprep.mubr.bf16.mxu1 %v1385_v40  ;;  %v998_v54 = vpop.f32.mrb[59].mxu0  ;;  %1350 = vmatmul.mubr.bf16.gmra.mrb[68].mxu0 %v1203_v57  ;;  %v10835_v40 = vmax.f32 %v7755_v51, 0.0  ;;  %v10629_v4 = vmax.f32 %v8055_v17, 0.0 }
 0x3a5   :  { %v8071_v23 = vadd.f32 %v1085_v25, %v10833_v28  ;;  %v8075_v35 = vadd.f32 %v998_v54, %v10834_v30  ;;  %v1087_v41 = vpop.f32.mrb[59].mxu1  ;;  %1431 = vmatmul.mubr.bf16.gmra.mrb[68].mxu1 %v1384_v39  ;;  %v10624_v38 = vmax.f32 %v8047_v53, 0.0  ;;  %v10639_v39 = vmax.f32 %v8067_v43, 0.0 }
 0x3a6   :  { %v10628_v33 = vmax.f32 %v8063_v59, 0.0  ;;  %v8080_v0 = vadd.f32 %v1087_v41, %v10835_v40  ;;  %v10626_v45 = vmax.f32 %v8059_v29, 0.0  ;;  %v10836_v30 = vmax.f32 %v7779_v34, 0.0 }
 0x3a7   :  { %v10638_v61 = vmax.f32 %v8071_v23, 0.0  ;;  %v10623_v42 = vmax.f32 %v8075_v35, 0.0  ;;  %v10839_v34 = vmax.f32 %v7798_v31, 0.0 }
 0x3a8   :  { %v10625_v57 = vmax.f32 %v8080_v0, 0.0  ;;  %v1205_v28 = vpack.c.bf16 %v10628_v33, %v10629_v4  ;;  %v10840_v33 = vmax.f32 %v7803_v44, 0.0 }
 0x3a9   :  { %v1002_v1 = vpop.f32.mrb[60].mxu0  ;;  %v1206_v51 = vpack.c.bf16 %v10623_v42, %v10624_v38  ;;  %v1386_v42 = vpack.c.bf16 %v10638_v61, %v10639_v39  ;;  %v10837_v38 = vmax.f32 %v7788_v46, 0.0  ;;  %v10841_v46 = vmax.f32 %v7808_v49, 0.0 }
 0x3aa   :  { %v1091_v14 = vpop.f32.mrb[60].mxu1  ;;  %v1004_v25 = vpop.f32.mrb[61].mxu0  ;;  %v1387_v54 = vpack.c.bf16 %v10625_v57, %v10626_v45  ;;  %v10838_v45 = vmax.f32 %v7793_v26, 0.0  ;;  %v10842_v26 = vmax.f32 %v7813_v16, 0.0 }
 0x3ab   :  { %v8103_v41 = vadd.f32 %v1004_v25, %v10836_v30  ;;  %v1093_v40 = vpop.f32.mrb[61].mxu1  ;;  %v1006_v11 = vpop.f32.mrb[62].mxu0  ;;  %1357 = vmatprep.mubr.bf16.mxu0 %v1206_v51  ;;  %v8111_v57 = vadd.f32 %v1002_v1, %v10837_v38  ;;  %v8123_v4 = vadd.f32 %v1091_v14, %v10840_v33 }
 0x3ac   :  { %v8115_v56 = vadd.f32 %v1093_v40, %v10838_v45  ;;  %v8119_v25 = vadd.f32 %v1006_v11, %v10839_v34  ;;  %v1095_v30 = vpop.f32.mrb[62].mxu1  ;;  %1438 = vmatprep.mubr.bf16.mxu1 %v1387_v54  ;;  %v1008_v51 = vpop.f32.mrb[63].mxu0  ;;  %1358 = vmatmul.mubr.bf16.gmra.mrb[72].mxu0 %v1205_v28  ;;  %v10843_v11 = vmax.f32 %v7819_v13, 0.0 }
 0x3ad   :  { %v8127_v38 = vadd.f32 %v1095_v30, %v10841_v46  ;;  %v8131_v45 = vadd.f32 %v1008_v51, %v10842_v26  ;;  %v1097_v1 = vpop.f32.mrb[63].mxu1  ;;  %1439 = vmatmul.mubr.bf16.gmra.mrb[72].mxu1 %v1386_v42  ;;  %v10637_v44 = vmax.f32 %v8103_v41, 0.0  ;;  %v10636_v14 = vmax.f32 %v8111_v57, 0.0  ;;  %v7106_v51 = vld [vmem:[%s10590_s1 + $0x1c0] sm:$0xff]  }
 0x3ae   :  { %v10634_v31 = vmax.f32 %v8119_v25, 0.0  ;;  %v8136_v54 = vadd.f32 %v1097_v1, %v10843_v11  ;;  %v10635_v16 = vmax.f32 %v8115_v56, 0.0  ;;  %v10633_v42 = vmax.f32 %v8123_v4, 0.0  ;;  %6484 = vmatprep.subr.bf16.mxu0 %v7106_v51  ;;  %6524 = vmatprep.subr.bf16.mxu1 %v7106_v51  ;;  %v8169_v1 = vld [vmem:[%s10592_s3 + $0x2] ss:$0 sm:$0xff] }
 0x3af   :  { %v10632_v33 = vmax.f32 %v8127_v38, 0.0  ;;  %v10631_v49 = vmax.f32 %v8131_v45, 0.0 }
 0x3b0   :  { %v10630_v28 = vmax.f32 %v8136_v54, 0.0  ;;  %v1207_v34 = vpack.c.bf16 %v10634_v31, %v10636_v14 }
 0x3b1   :  { %v1208_v13 = vpack.c.bf16 %v10631_v49, %v10637_v44  ;;  %v1388_v30 = vpack.c.bf16 %v10632_v33, %v10633_v42 }
 0x3b2   :  { %v1389_v40 = vpack.c.bf16 %v10630_v28, %v10635_v16 }
 0x3b3   :  { %1365 = vmatprep.mubr.bf16.mxu0 %v1208_v13 }
 0x3b4   :  { %1446 = vmatprep.mubr.bf16.mxu1 %v1389_v40  ;;  %1366 = vmatmul.mubr.bf16.gmra.mrb[76].mxu0 %v1207_v34 }
 0x3b5   :  { %1447 = vmatmul.mubr.bf16.gmra.mrb[76].mxu1 %v1388_v30  ;;  %1525 = vmatprep.mubr.bf16.mxu0 %v7312_v7 }
 0x3b6   :  { %1614 = vmatprep.mubr.bf16.mxu1 %v7312_v7 }
 0x46f   :  { %v6420_v46 = vpop.f32.mrb[64].mxu0 }
 0x470   :  { %v6460_v26 = vpop.f32.mrb[64].mxu1  ;;  %v6421_v11 = vpop.f32.mrb[65].mxu0 }
 0x471   :  { %v6422_v13 = vadd.f32 %v6421_v11, %v6420_v46  ;;  %v6461_v40 = vpop.f32.mrb[65].mxu1  ;;  %v6423_v34 = vpop.f32.mrb[66].mxu0 }
 0x472   :  { %v6462_v30 = vadd.f32 %v6461_v40, %v6460_v26  ;;  %v6463_v28 = vpop.f32.mrb[66].mxu1  ;;  %v6424_v49 = vpop.f32.mrb[67].mxu0 }
 0x473   :  { %v1344_v33 = vadd.f32 %v6422_v13, %v8169_v1  ;;  %v6425_v42 = vadd.f32 %v6424_v49, %v6423_v34  ;;  %v6464_v31 = vpop.f32.mrb[67].mxu1  ;;  %v7107_v49 = vld [vmem:[%s10590_s1 + $0x180] sm:$0xff]  }
 0x474   :  { %v1425_v51 = vadd.f32 %v6462_v30, %v8169_v1  ;;  %v6465_v16 = vadd.f32 %v6464_v31, %v6463_v28 }
 0x475   :  { %v1347_v14 = vadd.f32 %v6425_v42, %v8169_v1  ;;  %v1374_v61 = vmax.f32 %v1344_v33, 0.0  ;;  %v7108_v33 = vld [vmem:[%s10590_s1 + $0x1c8] sm:$0xff]  }
 0x476   :  { %v1428_v44 = vadd.f32 %v6465_v16, %v8169_v1  ;;  %v1455_v46 = vmax.f32 %v1425_v51, 0.0 }
 0x477   :  { %v1375_v39 = vmax.f32 %v1347_v14, 0.0  ;;  %v6426_v60 = vpop.f32.mrb[68].mxu0 }
 0x478   :  { %v1456_v11 = vmax.f32 %v1428_v44, 0.0  ;;  %v6466_v50 = vpop.f32.mrb[68].mxu1  ;;  %v6427_v26 = vpop.f32.mrb[69].mxu0 }
 0x479   :  { %v1463_v40 = vpack.c.bf16 %v1375_v39, %v1374_v61  ;;  %v6428_v47 = vadd.f32 %v6427_v26, %v6426_v60  ;;  %v6467_v24 = vpop.f32.mrb[69].mxu1  ;;  %v6429_v13 = vpop.f32.mrb[70].mxu0  ;;  %v7110_v39 = vld [vmem:[%s10590_s1 + $0x1d0] sm:$0xff]  }
 0x47a   :  { %v1566_v31 = vpack.c.bf16 %v1456_v11, %v1455_v46  ;;  %v6468_v28 = vadd.f32 %v6467_v24, %v6466_v50  ;;  %v6469_v42 = vpop.f32.mrb[70].mxu1  ;;  %v6430_v34 = vpop.f32.mrb[71].mxu0 }
 0x47b   :  { %v1352_v44 = vadd.f32 %v6428_v47, %v8169_v1  ;;  %v6431_v14 = vadd.f32 %v6430_v34, %v6429_v13  ;;  %v6470_v16 = vpop.f32.mrb[71].mxu1  ;;  %5809 = vmatmul.mubr.msk.bf16.vlgmr.msra.gmra.mrb[80].mxu0 %vm360_vm2, %v1463_v40  ;;  %v7109_v47 = vld [vmem:[%s10590_s1 + $0x188] sm:$0xff]  }
 0x47c   :  { %v1433_v60 = vadd.f32 %v6468_v28, %v8169_v1  ;;  %v6471_v61 = vadd.f32 %v6470_v16, %v6469_v42  ;;  %5813 = vmatmul.mubr.msk.bf16.vlgmr.msra.gmra.mrb[80].mxu1 %vm360_vm2, %v1566_v31  ;;  %1535 = vmatprep.mubr.bf16.mxu0 %v7312_v7 }
 0x47d   :  { %v1355_v24 = vadd.f32 %v6431_v14, %v8169_v1  ;;  %1624 = vmatprep.mubr.bf16.mxu1 %v7312_v7  ;;  %6485 = vmatpush3.bf16.msra.mxu0 %v7107_v49  ;;  %v1376_v30 = vmax.f32 %v1352_v44, 0.0 }
 0x47e   :  { %v1436_v50 = vadd.f32 %v6471_v61, %v8169_v1  ;;  %6525 = vmatpush3.bf16.msra.mxu1 %v7107_v49  ;;  %6486 = vmatprep.subr.bf16.mxu0 %v7108_v33  ;;  %v1457_v11 = vmax.f32 %v1433_v60, 0.0  ;;  %v7111_v49 = vld [vmem:[%s10590_s1 + $0x190] sm:$0xff]  }
 0x47f   :  { %v1377_v51 = vmax.f32 %v1355_v24, 0.0  ;;  %v6432_v46 = vpop.f32.mrb[72].mxu0  ;;  %6526 = vmatprep.subr.bf16.mxu1 %v7108_v33  ;;  %v7112_v33 = vld [vmem:[%s10590_s1 + $0x1d8] sm:$0xff]  }
 0x480   :  { %v1458_v26 = vmax.f32 %v1436_v50, 0.0  ;;  %v6472_v40 = vpop.f32.mrb[72].mxu1  ;;  %v6433_v13 = vpop.f32.mrb[73].mxu0 }
 0x481   :  { %v1464_v31 = vpack.c.bf16 %v1377_v51, %v1376_v30  ;;  %v6434_v28 = vadd.f32 %v6433_v13, %v6432_v46  ;;  %v6473_v42 = vpop.f32.mrb[73].mxu1  ;;  %v6435_v34 = vpop.f32.mrb[74].mxu0  ;;  %6487 = vmatpush3.bf16.msra.mxu0 %v7109_v47  ;;  %v7113_v46 = vld [vmem:[%s10590_s1 + $0x198] sm:$0xff]  }
 0x482   :  { %v1567_v14 = vpack.c.bf16 %v1458_v26, %v1457_v11  ;;  %v6474_v16 = vadd.f32 %v6473_v42, %v6472_v40  ;;  %v6475_v61 = vpop.f32.mrb[74].mxu1  ;;  %v6436_v44 = vpop.f32.mrb[75].mxu0  ;;  %6527 = vmatpush3.bf16.msra.mxu1 %v7109_v47  ;;  %6488 = vmatprep.subr.bf16.mxu0 %v7110_v39 }
 0x483   :  { %v1360_v60 = vadd.f32 %v6434_v28, %v8169_v1  ;;  %v6437_v24 = vadd.f32 %v6436_v44, %v6435_v34  ;;  %v6476_v50 = vpop.f32.mrb[75].mxu1  ;;  %5810 = vmatmul.mubr.msk.bf16.gmra.mrb[84].mxu0 %vm360_vm2, %v1464_v31  ;;  %6528 = vmatprep.subr.bf16.mxu1 %v7110_v39  ;;  %v7114_v39 = vld [vmem:[%s10590_s1 + $0x1e0] sm:$0xff]  }
 0x484   :  { %v1441_v30 = vadd.f32 %v6474_v16, %v8169_v1  ;;  %v6477_v51 = vadd.f32 %v6476_v50, %v6475_v61  ;;  %5814 = vmatmul.mubr.msk.bf16.gmra.mrb[84].mxu1 %vm360_vm2, %v1567_v14  ;;  %1545 = vmatprep.mubr.bf16.mxu0 %v7312_v7 }
 0x485   :  { %v1363_v47 = vadd.f32 %v6437_v24, %v8169_v1  ;;  %1634 = vmatprep.mubr.bf16.mxu1 %v7312_v7  ;;  %6489 = vmatpush3.bf16.msra.mxu0 %v7111_v49  ;;  %v1378_v26 = vmax.f32 %v1360_v60, 0.0 }
 0x486   :  { %v1444_v11 = vadd.f32 %v6477_v51, %v8169_v1  ;;  %6529 = vmatpush3.bf16.msra.mxu1 %v7111_v49  ;;  %6490 = vmatprep.subr.bf16.mxu0 %v7112_v33  ;;  %v1459_v31 = vmax.f32 %v1441_v30, 0.0  ;;  %v7115_v49 = vld [vmem:[%s10590_s1 + $0x1a0] sm:$0xff]  }
 0x487   :  { %v1379_v40 = vmax.f32 %v1363_v47, 0.0  ;;  %v6438_v13 = vpop.f32.mrb[76].mxu0  ;;  %6530 = vmatprep.subr.bf16.mxu1 %v7112_v33  ;;  %v7116_v33 = vld [vmem:[%s10590_s1 + $0x1e8] sm:$0xff]  }
 0x488   :  { %v1460_v28 = vmax.f32 %v1444_v11, 0.0  ;;  %v6478_v42 = vpop.f32.mrb[76].mxu1  ;;  %v6439_v34 = vpop.f32.mrb[77].mxu0 }
 0x489   :  { %v1465_v14 = vpack.c.bf16 %v1379_v40, %v1378_v26  ;;  %v6440_v16 = vadd.f32 %v6439_v34, %v6438_v13  ;;  %v6479_v61 = vpop.f32.mrb[77].mxu1  ;;  %v6441_v44 = vpop.f32.mrb[78].mxu0  ;;  %6491 = vmatpush3.bf16.msra.mxu0 %v7113_v46  ;;  %v7117_v13 = vld [vmem:[%s10590_s1 + $0x1a8] sm:$0xff]  }
 0x48a   :  { %v1568_v24 = vpack.c.bf16 %v1460_v28, %v1459_v31  ;;  %v6480_v50 = vadd.f32 %v6479_v61, %v6478_v42  ;;  %v6481_v51 = vpop.f32.mrb[78].mxu1  ;;  %v6442_v60 = vpop.f32.mrb[79].mxu0  ;;  %6531 = vmatpush3.bf16.msra.mxu1 %v7113_v46  ;;  %6492 = vmatprep.subr.bf16.mxu0 %v7114_v39  ;;  %v7118_v61 = vld [vmem:[%s10590_s1 + $0x1f0] sm:$0xff]  }
 0x48b   :  { %v1368_v30 = vadd.f32 %v6440_v16, %v8169_v1  ;;  %v6443_v47 = vadd.f32 %v6442_v60, %v6441_v44  ;;  %v6482_v11 = vpop.f32.mrb[79].mxu1  ;;  %5811 = vmatmul.mubr.msk.bf16.gmra.mrb[88].mxu0 %vm360_vm2, %v1465_v14  ;;  %6532 = vmatprep.subr.bf16.mxu1 %v7114_v39  ;;  %v7120_v44 = vld [vmem:[%s10590_s1 + $0x1f8] sm:$0xff]  }
 0x48c   :  { %v1449_v26 = vadd.f32 %v6480_v50, %v8169_v1  ;;  %v6483_v40 = vadd.f32 %v6482_v11, %v6481_v51  ;;  %5815 = vmatmul.mubr.msk.bf16.gmra.mrb[88].mxu1 %vm360_vm2, %v1568_v24  ;;  %1555 = vmatprep.mubr.bf16.mxu0 %v7312_v7  ;;  %v7124_v24 = vld [vmem:[%s10591_s2 + $0x34] ss:$8 sps:$4 sm:$0x1f]  }
 0x48d   :  { %v1371_v46 = vadd.f32 %v6443_v47, %v8169_v1  ;;  %1644 = vmatprep.mubr.bf16.mxu1 %v7312_v7  ;;  %6493 = vmatpush3.bf16.msra.mxu0 %v7115_v49  ;;  %v1380_v39 = vmax.f32 %v1368_v30, 0.0  ;;  %v2046_v50 = vand.u32 %v7124_v24, %v7425_v32 }
 0x48e   :  { %v1452_v31 = vadd.f32 %v6483_v40, %v8169_v1  ;;  %6533 = vmatpush3.bf16.msra.mxu1 %v7115_v49  ;;  %6494 = vmatprep.subr.bf16.mxu0 %v7116_v33  ;;  %v1461_v42 = vmax.f32 %v1449_v26, 0.0  ;;  %v7119_v1 = vld [vmem:[%s10590_s1 + $0x1b0] sm:$0xff]   ;;  %v7121_v49 = vld [vmem:[%s10590_s1 + $0x1b8] sm:$0xff]  }
 0x48f   :  { %v1381_v28 = vmax.f32 %v1371_v46, 0.0  ;;  %6534 = vmatprep.subr.bf16.mxu1 %v7116_v33 }
 0x490   :  { %v1462_v34 = vmax.f32 %v1452_v31, 0.0 }
 0x491   :  { %v1466_v14 = vpack.c.bf16 %v1381_v28, %v1380_v39  ;;  %6495 = vmatpush3.bf16.msra.mxu0 %v7117_v13 }
 0x492   :  { %v1569_v16 = vpack.c.bf16 %v1462_v34, %v1461_v42  ;;  %6535 = vmatpush3.bf16.msra.mxu1 %v7117_v13  ;;  %6496 = vmatprep.subr.bf16.mxu0 %v7118_v61  ;;  %v2043_v42 = vand.u32 %v7122_v36, %v7425_v32 }
 0x493   :  { %5812 = vmatmul.mubr.msk.bf16.gmra.mrb[92].mxu0 %vm360_vm2, %v1466_v14  ;;  %6536 = vmatprep.subr.bf16.mxu1 %v7118_v61 }
 0x494   :  { %5816 = vmatmul.mubr.msk.bf16.gmra.mrb[92].mxu1 %vm360_vm2, %v1569_v16 }
 0x495   :  { %6497 = vmatpush3.bf16.msra.mxu0 %v7119_v1 }
 0x496   :  { %6537 = vmatpush3.bf16.msra.mxu1 %v7119_v1  ;;  %6498 = vmatprep.subr.bf16.mxu0 %v7120_v44 }
 0x497   :  { %6538 = vmatprep.subr.bf16.mxu1 %v7120_v44  ;;  %v10845_v44 = vmax.f32 %v7995_v10, 0.0 }
 0x499   :  { %6499 = vmatpush3.bf16.msra.mxu0 %v7121_v49 }
 0x49a   :  { %6539 = vmatpush3.bf16.msra.mxu1 %v7121_v49  ;;  %2048 = vmatprep.subr.bf16.mxu0 %v2046_v50 }
 0x49b   :  { %2137 = vmatprep.subr.bf16.mxu1 %v2046_v50 }
 0x54e   :  { %v1527_v51 = vpop.f32.mrb[80].mxu0 }
 0x54f   :  { %v1616_v60 = vpop.f32.mrb[80].mxu1  ;;  %v1529_v33 = vpop.f32.mrb[81].mxu0  ;;  %v8256_v26 = vadd.f32 %v1527_v51, %v1116_v12  ;;  %v10844_v12 = vmax.f32 %v7967_v6, 0.0  ;;  %v10846_v51 = vmax.f32 %v7999_v52, 0.0  ;;  %v10850_v52 = vmax.f32 %v8015_v21, 0.0 }
 0x550   :  { %v8252_v30 = vadd.f32 %v1529_v33, %v1117_v22  ;;  %v1618_v47 = vpop.f32.mrb[81].mxu1  ;;  %v1531_v11 = vpop.f32.mrb[82].mxu0  ;;  %v8268_v37 = vadd.f32 %v1616_v60, %v1148_v63  ;;  %v10847_v33 = vmax.f32 %v8003_v55, 0.0  ;;  %v10851_v55 = vmax.f32 %v8019_v8, 0.0 }
 0x551   :  { %v8260_v40 = vadd.f32 %v1618_v47, %v1149_v20  ;;  %v8264_v46 = vadd.f32 %v1531_v11, %v1118_v15  ;;  %v1620_v13 = vpop.f32.mrb[82].mxu1  ;;  %v1533_v31 = vpop.f32.mrb[83].mxu0  ;;  %v1671_v62 = vmax.f32 %v8256_v26, 0.0  ;;  %v10848_v11 = vmax.f32 %v8007_v48, 0.0 }
 0x552   :  { %v8272_v22 = vadd.f32 %v1620_v13, %v1150_v9  ;;  %v8276_v27 = vadd.f32 %v1533_v31, %v1119_v19  ;;  %v1622_v5 = vpop.f32.mrb[83].mxu1  ;;  %v1672_v20 = vmax.f32 %v8252_v30, 0.0  ;;  %v1703_v39 = vmax.f32 %v8268_v37, 0.0 }
 0x553   :  { %v1673_v15 = vmax.f32 %v8264_v46, 0.0  ;;  %v8284_v58 = vadd.f32 %v1622_v5, %v10844_v12  ;;  %v1704_v19 = vmax.f32 %v8260_v40, 0.0  ;;  %v10849_v5 = vmax.f32 %v8011_v2, 0.0  ;;  %v7141_v46 = vld [vmem:[%s10591_s2 + $0x40] ss:$8 sps:$4 sm:$0x1f]  }
 0x554   :  { %v1705_v18 = vmax.f32 %v8272_v22, 0.0  ;;  %v1674_v9 = vmax.f32 %v8276_v27, 0.0 }
 0x555   :  { %v10668_v63 = vmax.f32 %v8284_v58, 0.0  ;;  %v1756_v34 = vpack.c.bf16 %v1673_v15, %v1671_v62 }
 0x556   :  { %v1757_v6 = vpack.c.bf16 %v1674_v9, %v1672_v20  ;;  %v1537_v28 = vpop.f32.mrb[84].mxu0  ;;  %v1937_v1 = vpack.c.bf16 %v1705_v18, %v1703_v39 }
 0x557   :  { %v1938_v14 = vpack.c.bf16 %v10668_v63, %v1704_v19  ;;  %v1626_v16 = vpop.f32.mrb[84].mxu1  ;;  %v1539_v61 = vpop.f32.mrb[85].mxu0  ;;  %v8316_v60 = vadd.f32 %v1537_v28, %v10846_v51 }
 0x558   :  { %v8312_v49 = vadd.f32 %v1539_v61, %v10845_v44  ;;  %v1628_v24 = vpop.f32.mrb[85].mxu1  ;;  %v1541_v50 = vpop.f32.mrb[86].mxu0  ;;  %1896 = vmatprep.mubr.bf16.mxu0 %v1757_v6  ;;  %v8328_v36 = vadd.f32 %v1626_v16, %v10849_v5 }
 0x559   :  { %v8320_v47 = vadd.f32 %v1628_v24, %v10847_v33  ;;  %v8324_v13 = vadd.f32 %v1541_v50, %v10848_v11  ;;  %v1630_v31 = vpop.f32.mrb[86].mxu1  ;;  %1977 = vmatprep.mubr.bf16.mxu1 %v1938_v14  ;;  %v1543_v10 = vpop.f32.mrb[87].mxu0  ;;  %1897 = vmatmul.mubr.bf16.vlgmr.msra.gmra.mrb[96].mxu0 %v1756_v34  ;;  %v10852_v14 = vmax.f32 %v8024_v3, 0.0  ;;  %v10666_v8 = vmax.f32 %v8316_v60, 0.0 }
 0x55a   :  { %v8332_v12 = vadd.f32 %v1630_v31, %v10850_v52  ;;  %v8336_v6 = vadd.f32 %v1543_v10, %v10851_v55  ;;  %v1632_v28 = vpop.f32.mrb[87].mxu1  ;;  %1978 = vmatmul.mubr.bf16.vlgmr.msra.gmra.mrb[96].mxu1 %v1937_v1  ;;  %2049 = vmatpush1.bf16.msra.mxu0 %v2043_v42  ;;  %v10667_v2 = vmax.f32 %v8312_v49, 0.0  ;;  %v10654_v44 = vmax.f32 %v8328_v36, 0.0 }
 0x55b   :  { %v10646_v48 = vmax.f32 %v8324_v13, 0.0  ;;  %v8341_v34 = vadd.f32 %v1632_v28, %v10852_v14  ;;  %2138 = vmatpush1.bf16.msra.mxu1 %v2043_v42  ;;  %v10665_v61 = vmax.f32 %v8320_v47, 0.0  ;;  %v10853_v31 = vmax.f32 %v8047_v53, 0.0 }
 0x55c   :  { %v10647_v21 = vmax.f32 %v8332_v12, 0.0  ;;  %v10645_v16 = vmax.f32 %v8336_v6, 0.0  ;;  %v10854_v55 = vmax.f32 %v8055_v17, 0.0  ;;  %v10855_v14 = vmax.f32 %v8059_v29, 0.0 }
 0x55d   :  { %v10644_v1 = vmax.f32 %v8341_v34, 0.0  ;;  %v1758_v24 = vpack.c.bf16 %v10646_v48, %v10666_v8  ;;  %v10858_v17 = vmax.f32 %v8071_v23, 0.0  ;;  %v10859_v29 = vmax.f32 %v8075_v35, 0.0 }
 0x55e   :  { %v1759_v3 = vpack.c.bf16 %v10645_v16, %v10667_v2  ;;  %v1547_v42 = vpop.f32.mrb[88].mxu0  ;;  %v1939_v11 = vpack.c.bf16 %v10647_v21, %v10654_v44  ;;  %v10856_v16 = vmax.f32 %v8063_v59, 0.0 }
 0x55f   :  { %v1940_v50 = vpack.c.bf16 %v10644_v1, %v10665_v61  ;;  %v1636_v51 = vpop.f32.mrb[88].mxu1  ;;  %v1549_v33 = vpop.f32.mrb[89].mxu0  ;;  %v8372_v28 = vadd.f32 %v1547_v42, %v10854_v55 }
 0x560   :  { %v8368_v10 = vadd.f32 %v1549_v33, %v10853_v31  ;;  %v1638_v5 = vpop.f32.mrb[89].mxu1  ;;  %v1551_v52 = vpop.f32.mrb[90].mxu0  ;;  %1904 = vmatprep.mubr.bf16.mxu0 %v1759_v3  ;;  %v10857_v33 = vmax.f32 %v8067_v43, 0.0 }
 0x561   :  { %v8376_v1 = vadd.f32 %v1638_v5, %v10855_v14  ;;  %v8380_v48 = vadd.f32 %v1551_v52, %v10856_v16  ;;  %v1640_v21 = vpop.f32.mrb[90].mxu1  ;;  %1985 = vmatprep.mubr.bf16.mxu1 %v1940_v50  ;;  %v1553_v53 = vpop.f32.mrb[91].mxu0  ;;  %1905 = vmatmul.mubr.bf16.gmra.mrb[100].mxu0 %v1758_v24  ;;  %v10860_v16 = vmax.f32 %v8080_v0, 0.0 }
 0x562   :  { %v8384_v31 = vadd.f32 %v1636_v51, %v10857_v33  ;;  %v8388_v3 = vadd.f32 %v1640_v21, %v10858_v17  ;;  %v8392_v42 = vadd.f32 %v1553_v53, %v10859_v29  ;;  %v1642_v5 = vpop.f32.mrb[91].mxu1  ;;  %1986 = vmatmul.mubr.bf16.gmra.mrb[100].mxu1 %v1939_v11  ;;  %v10653_v43 = vmax.f32 %v8368_v10, 0.0 }
 0x563   :  { %v10649_v59 = vmax.f32 %v8380_v48, 0.0  ;;  %v8397_v50 = vadd.f32 %v1642_v5, %v10860_v16  ;;  %v10650_v21 = vmax.f32 %v8372_v28, 0.0  ;;  %v10652_v35 = vmax.f32 %v8376_v1, 0.0 }
 0x564   :  { %v10655_v24 = vmax.f32 %v8388_v3, 0.0  ;;  %v10648_v23 = vmax.f32 %v8392_v42, 0.0  ;;  %v10664_v11 = vmax.f32 %v8384_v31, 0.0  ;;  %v10861_v29 = vmax.f32 %v8103_v41, 0.0 }
 0x565   :  { %v10651_v51 = vmax.f32 %v8397_v50, 0.0  ;;  %v1760_v55 = vpack.c.bf16 %v10649_v59, %v10650_v21  ;;  %v10862_v59 = vmax.f32 %v8111_v57, 0.0  ;;  %v10866_v57 = vmax.f32 %v8127_v38, 0.0 }
 0x566   :  { %v1761_v0 = vpack.c.bf16 %v10648_v23, %v10653_v43  ;;  %v1557_v52 = vpop.f32.mrb[92].mxu0  ;;  %v1941_v17 = vpack.c.bf16 %v10655_v24, %v10664_v11  ;;  %v10864_v43 = vmax.f32 %v8119_v25, 0.0 }
 0x567   :  { %v1942_v14 = vpack.c.bf16 %v10651_v51, %v10652_v35  ;;  %v1646_v53 = vpop.f32.mrb[92].mxu1  ;;  %v1559_v33 = vpop.f32.mrb[93].mxu0  ;;  %v8428_v21 = vadd.f32 %v1557_v52, %v10862_v59  ;;  %v10863_v51 = vmax.f32 %v8115_v56, 0.0  ;;  %v10867_v56 = vmax.f32 %v8131_v45, 0.0 }
 0x568   :  { %v8424_v5 = vadd.f32 %v1559_v33, %v10861_v29  ;;  %v1648_v16 = vpop.f32.mrb[93].mxu1  ;;  %v1561_v23 = vpop.f32.mrb[94].mxu0  ;;  %1912 = vmatprep.mubr.bf16.mxu0 %v1761_v0  ;;  %v10865_v33 = vmax.f32 %v8123_v4, 0.0 }
 0x569   :  { %v8432_v35 = vadd.f32 %v1648_v16, %v10863_v51  ;;  %v8436_v44 = vadd.f32 %v1561_v23, %v10864_v43  ;;  %v1650_v24 = vpop.f32.mrb[94].mxu1  ;;  %1993 = vmatprep.mubr.bf16.mxu1 %v1942_v14  ;;  %v1563_v41 = vpop.f32.mrb[95].mxu0  ;;  %1913 = vmatmul.mubr.bf16.gmra.mrb[104].mxu0 %v1760_v55  ;;  %v10868_v43 = vmax.f32 %v8136_v54, 0.0 }
 0x56a   :  { %v8440_v29 = vadd.f32 %v1646_v53, %v10865_v33  ;;  %v8444_v59 = vadd.f32 %v1650_v24, %v10866_v57  ;;  %v8448_v51 = vadd.f32 %v1563_v41, %v10867_v56  ;;  %v1652_v0 = vpop.f32.mrb[95].mxu1  ;;  %1994 = vmatmul.mubr.bf16.gmra.mrb[104].mxu1 %v1941_v17  ;;  %v10663_v4 = vmax.f32 %v8424_v5, 0.0  ;;  %v7125_v41 = vld [vmem:[%s10590_s1 + $0x240] sm:$0xff]  }
 0x56b   :  { %v10660_v25 = vmax.f32 %v8436_v44, 0.0  ;;  %v8453_v23 = vadd.f32 %v1652_v0, %v10868_v43  ;;  %v10662_v24 = vmax.f32 %v8428_v21, 0.0  ;;  %v10661_v45 = vmax.f32 %v8432_v35, 0.0  ;;  %6564 = vmatprep.subr.bf16.mxu0 %v7125_v41  ;;  %6604 = vmatprep.subr.bf16.mxu1 %v7125_v41  ;;  %v8486_v56 = vld [vmem:[%s10592_s3 + $0x3] ss:$0 sm:$0xff] }
 0x56c   :  { %v10658_v52 = vmax.f32 %v8444_v59, 0.0  ;;  %v10657_v38 = vmax.f32 %v8448_v51, 0.0  ;;  %v10659_v14 = vmax.f32 %v8440_v29, 0.0 }
 0x56d   :  { %v10656_v55 = vmax.f32 %v8453_v23, 0.0  ;;  %v1762_v53 = vpack.c.bf16 %v10660_v25, %v10662_v24 }
 0x56e   :  { %v1763_v54 = vpack.c.bf16 %v10657_v38, %v10663_v4  ;;  %v1943_v16 = vpack.c.bf16 %v10658_v52, %v10659_v14 }
 0x56f   :  { %v1944_v17 = vpack.c.bf16 %v10656_v55, %v10661_v45 }
 0x570   :  { %1920 = vmatprep.mubr.bf16.mxu0 %v1763_v54 }
 0x571   :  { %2001 = vmatprep.mubr.bf16.mxu1 %v1944_v17  ;;  %1921 = vmatmul.mubr.bf16.gmra.mrb[108].mxu0 %v1762_v53 }
 0x572   :  { %2002 = vmatmul.mubr.bf16.gmra.mrb[108].mxu1 %v1943_v16  ;;  %2080 = vmatprep.mubr.bf16.mxu0 %v7312_v7 }
 0x573   :  { %2169 = vmatprep.mubr.bf16.mxu1 %v7312_v7 }
 0x62c   :  { %v6500_v33 = vpop.f32.mrb[96].mxu0 }
 0x62d   :  { %v6540_v57 = vpop.f32.mrb[96].mxu1  ;;  %v6501_v0 = vpop.f32.mrb[97].mxu0 }
 0x62e   :  { %v6502_v43 = vadd.f32 %v6501_v0, %v6500_v33  ;;  %v6541_v54 = vpop.f32.mrb[97].mxu1  ;;  %v6503_v53 = vpop.f32.mrb[98].mxu0 }
 0x62f   :  { %v6542_v17 = vadd.f32 %v6541_v54, %v6540_v57  ;;  %v6543_v16 = vpop.f32.mrb[98].mxu1  ;;  %v6504_v55 = vpop.f32.mrb[99].mxu0 }
 0x630   :  { %v1899_v38 = vadd.f32 %v6502_v43, %v8486_v56  ;;  %v6505_v52 = vadd.f32 %v6504_v55, %v6503_v53  ;;  %v6544_v14 = vpop.f32.mrb[99].mxu1  ;;  %v7126_v55 = vld [vmem:[%s10590_s1 + $0x200] sm:$0xff]  }
 0x631   :  { %v1980_v41 = vadd.f32 %v6542_v17, %v8486_v56  ;;  %v6545_v25 = vadd.f32 %v6544_v14, %v6543_v16 }
 0x632   :  { %v1902_v45 = vadd.f32 %v6505_v52, %v8486_v56  ;;  %v1929_v4 = vmax.f32 %v1899_v38, 0.0 }
 0x633   :  { %v1983_v24 = vadd.f32 %v6545_v25, %v8486_v56  ;;  %v2010_v33 = vmax.f32 %v1980_v41, 0.0  ;;  %v7127_v25 = vld [vmem:[%s10590_s1 + $0x248] sm:$0xff]  }
 0x634   :  { %v1930_v11 = vmax.f32 %v1902_v45, 0.0  ;;  %v6506_v61 = vpop.f32.mrb[100].mxu0 }
 0x635   :  { %v2011_v0 = vmax.f32 %v1983_v24, 0.0  ;;  %v6546_v8 = vpop.f32.mrb[100].mxu1  ;;  %v6507_v57 = vpop.f32.mrb[101].mxu0 }
 0x636   :  { %v2018_v54 = vpack.c.bf16 %v1930_v11, %v1929_v4  ;;  %v6508_v2 = vadd.f32 %v6507_v57, %v6506_v61  ;;  %v6547_v63 = vpop.f32.mrb[101].mxu1  ;;  %v6509_v43 = vpop.f32.mrb[102].mxu0  ;;  %v7129_v4 = vld [vmem:[%s10590_s1 + $0x250] sm:$0xff]  }
 0x637   :  { %v2121_v14 = vpack.c.bf16 %v2011_v0, %v2010_v33  ;;  %v6548_v53 = vadd.f32 %v6547_v63, %v6546_v8  ;;  %v6549_v52 = vpop.f32.mrb[102].mxu1  ;;  %v6510_v17 = vpop.f32.mrb[103].mxu0 }
 0x638   :  { %v1907_v38 = vadd.f32 %v6508_v2, %v8486_v56  ;;  %v6511_v24 = vadd.f32 %v6510_v17, %v6509_v43  ;;  %v6550_v45 = vpop.f32.mrb[103].mxu1  ;;  %5870 = vmatmul.mubr.msk.bf16.vlgmr.msra.gmra.mrb[112].mxu0 %vm360_vm2, %v2018_v54  ;;  %v7128_v2 = vld [vmem:[%s10590_s1 + $0x208] sm:$0xff]  }
 0x639   :  { %v1988_v61 = vadd.f32 %v6548_v53, %v8486_v56  ;;  %v6551_v11 = vadd.f32 %v6550_v45, %v6549_v52  ;;  %5874 = vmatmul.mubr.msk.bf16.vlgmr.msra.gmra.mrb[112].mxu1 %vm360_vm2, %v2121_v14  ;;  %2090 = vmatprep.mubr.bf16.mxu0 %v7312_v7 }
 0x63a   :  { %v1910_v63 = vadd.f32 %v6511_v24, %v8486_v56  ;;  %2179 = vmatprep.mubr.bf16.mxu1 %v7312_v7  ;;  %6565 = vmatpush3.bf16.msra.mxu0 %v7126_v55  ;;  %v1931_v16 = vmax.f32 %v1907_v38, 0.0 }
 0x63b   :  { %v1991_v8 = vadd.f32 %v6551_v11, %v8486_v56  ;;  %6605 = vmatpush3.bf16.msra.mxu1 %v7126_v55  ;;  %6566 = vmatprep.subr.bf16.mxu0 %v7127_v25  ;;  %v2012_v0 = vmax.f32 %v1988_v61, 0.0  ;;  %v7130_v55 = vld [vmem:[%s10590_s1 + $0x210] sm:$0xff]  }
 0x63c   :  { %v1932_v41 = vmax.f32 %v1910_v63, 0.0  ;;  %v6512_v33 = vpop.f32.mrb[104].mxu0  ;;  %6606 = vmatprep.subr.bf16.mxu1 %v7127_v25  ;;  %v7131_v25 = vld [vmem:[%s10590_s1 + $0x258] sm:$0xff]  }
 0x63d   :  { %v2013_v57 = vmax.f32 %v1991_v8, 0.0  ;;  %v6552_v54 = vpop.f32.mrb[104].mxu1  ;;  %v6513_v43 = vpop.f32.mrb[105].mxu0 }
 0x63e   :  { %v2019_v14 = vpack.c.bf16 %v1932_v41, %v1931_v16  ;;  %v6514_v53 = vadd.f32 %v6513_v43, %v6512_v33  ;;  %v6553_v52 = vpop.f32.mrb[105].mxu1  ;;  %v6515_v17 = vpop.f32.mrb[106].mxu0  ;;  %6567 = vmatpush3.bf16.msra.mxu0 %v7128_v2  ;;  %v7132_v33 = vld [vmem:[%s10590_s1 + $0x218] sm:$0xff]  }
 0x63f   :  { %v2122_v24 = vpack.c.bf16 %v2013_v57, %v2012_v0  ;;  %v6554_v45 = vadd.f32 %v6553_v52, %v6552_v54  ;;  %v6555_v11 = vpop.f32.mrb[106].mxu1  ;;  %v6516_v38 = vpop.f32.mrb[107].mxu0  ;;  %6607 = vmatpush3.bf16.msra.mxu1 %v7128_v2  ;;  %6568 = vmatprep.subr.bf16.mxu0 %v7129_v4 }
 0x640   :  { %v1915_v61 = vadd.f32 %v6514_v53, %v8486_v56  ;;  %v6517_v63 = vadd.f32 %v6516_v38, %v6515_v17  ;;  %v6556_v8 = vpop.f32.mrb[107].mxu1  ;;  %5871 = vmatmul.mubr.msk.bf16.gmra.mrb[116].mxu0 %vm360_vm2, %v2019_v14  ;;  %6608 = vmatprep.subr.bf16.mxu1 %v7129_v4  ;;  %v7133_v4 = vld [vmem:[%s10590_s1 + $0x260] sm:$0xff]  }
 0x641   :  { %v1996_v16 = vadd.f32 %v6554_v45, %v8486_v56  ;;  %v6557_v41 = vadd.f32 %v6556_v8, %v6555_v11  ;;  %5875 = vmatmul.mubr.msk.bf16.gmra.mrb[116].mxu1 %vm360_vm2, %v2122_v24  ;;  %2100 = vmatprep.mubr.bf16.mxu0 %v7312_v7 }
 0x642   :  { %v1918_v2 = vadd.f32 %v6517_v63, %v8486_v56  ;;  %2189 = vmatprep.mubr.bf16.mxu1 %v7312_v7  ;;  %6569 = vmatpush3.bf16.msra.mxu0 %v7130_v55  ;;  %v1933_v57 = vmax.f32 %v1915_v61, 0.0 }
 0x643   :  { %v1999_v0 = vadd.f32 %v6557_v41, %v8486_v56  ;;  %6609 = vmatpush3.bf16.msra.mxu1 %v7130_v55  ;;  %6570 = vmatprep.subr.bf16.mxu0 %v7131_v25  ;;  %v2014_v14 = vmax.f32 %v1996_v16, 0.0  ;;  %v7134_v55 = vld [vmem:[%s10590_s1 + $0x220] sm:$0xff]  }
 0x644   :  { %v1934_v54 = vmax.f32 %v1918_v2, 0.0  ;;  %v6518_v43 = vpop.f32.mrb[108].mxu0  ;;  %6610 = vmatprep.subr.bf16.mxu1 %v7131_v25  ;;  %v7135_v25 = vld [vmem:[%s10590_s1 + $0x268] sm:$0xff]  }
 0x645   :  { %v2015_v53 = vmax.f32 %v1999_v0, 0.0  ;;  %v6558_v52 = vpop.f32.mrb[108].mxu1  ;;  %v6519_v17 = vpop.f32.mrb[109].mxu0 }
 0x646   :  { %v2020_v24 = vpack.c.bf16 %v1934_v54, %v1933_v57  ;;  %v6520_v45 = vadd.f32 %v6519_v17, %v6518_v43  ;;  %v6559_v11 = vpop.f32.mrb[109].mxu1  ;;  %v6521_v38 = vpop.f32.mrb[110].mxu0  ;;  %6571 = vmatpush3.bf16.msra.mxu0 %v7132_v33  ;;  %v7136_v43 = vld [vmem:[%s10590_s1 + $0x228] sm:$0xff]  }
 0x647   :  { %v2123_v63 = vpack.c.bf16 %v2015_v53, %v2014_v14  ;;  %v6560_v8 = vadd.f32 %v6559_v11, %v6558_v52  ;;  %v6561_v41 = vpop.f32.mrb[110].mxu1  ;;  %v6522_v61 = vpop.f32.mrb[111].mxu0  ;;  %6611 = vmatpush3.bf16.msra.mxu1 %v7132_v33  ;;  %6572 = vmatprep.subr.bf16.mxu0 %v7133_v4  ;;  %v7137_v11 = vld [vmem:[%s10590_s1 + $0x270] sm:$0xff]  }
 0x648   :  { %v1923_v16 = vadd.f32 %v6520_v45, %v8486_v56  ;;  %v6523_v2 = vadd.f32 %v6522_v61, %v6521_v38  ;;  %v6562_v0 = vpop.f32.mrb[111].mxu1  ;;  %5872 = vmatmul.mubr.msk.bf16.gmra.mrb[120].mxu0 %vm360_vm2, %v2020_v24  ;;  %6612 = vmatprep.subr.bf16.mxu1 %v7133_v4  ;;  %v7139_v38 = vld [vmem:[%s10590_s1 + $0x278] sm:$0xff]  }
 0x649   :  { %v2004_v57 = vadd.f32 %v6560_v8, %v8486_v56  ;;  %v6563_v54 = vadd.f32 %v6562_v0, %v6561_v41  ;;  %5876 = vmatmul.mubr.msk.bf16.gmra.mrb[120].mxu1 %vm360_vm2, %v2123_v63  ;;  %2110 = vmatprep.mubr.bf16.mxu0 %v7312_v7  ;;  %v7143_v63 = vld [vmem:[%s10591_s2 + $0x44] ss:$8 sps:$4 sm:$0x1f]  }
 0x64a   :  { %v1926_v33 = vadd.f32 %v6523_v2, %v8486_v56  ;;  %2199 = vmatprep.mubr.bf16.mxu1 %v7312_v7  ;;  %6573 = vmatpush3.bf16.msra.mxu0 %v7134_v55  ;;  %v1935_v4 = vmax.f32 %v1923_v16, 0.0  ;;  %v2601_v8 = vand.u32 %v7143_v63, %v7425_v32 }
 0x64b   :  { %v2007_v14 = vadd.f32 %v6563_v54, %v8486_v56  ;;  %6613 = vmatpush3.bf16.msra.mxu1 %v7134_v55  ;;  %6574 = vmatprep.subr.bf16.mxu0 %v7135_v25  ;;  %v2016_v52 = vmax.f32 %v2004_v57, 0.0  ;;  %v7138_v56 = vld [vmem:[%s10590_s1 + $0x230] sm:$0xff]   ;;  %v7140_v55 = vld [vmem:[%s10590_s1 + $0x238] sm:$0xff]  }
 0x64c   :  { %v1936_v53 = vmax.f32 %v1926_v33, 0.0  ;;  %6614 = vmatprep.subr.bf16.mxu1 %v7135_v25 }
 0x64d   :  { %v2017_v17 = vmax.f32 %v2007_v14, 0.0 }
 0x64e   :  { %v2021_v24 = vpack.c.bf16 %v1936_v53, %v1935_v4  ;;  %6575 = vmatpush3.bf16.msra.mxu0 %v7136_v43 }
 0x64f   :  { %v2124_v45 = vpack.c.bf16 %v2017_v17, %v2016_v52  ;;  %6615 = vmatpush3.bf16.msra.mxu1 %v7136_v43  ;;  %6576 = vmatprep.subr.bf16.mxu0 %v7137_v11  ;;  %v2598_v52 = vand.u32 %v7141_v46, %v7425_v32 }
 0x650   :  { %5873 = vmatmul.mubr.msk.bf16.gmra.mrb[124].mxu0 %vm360_vm2, %v2021_v24  ;;  %6616 = vmatprep.subr.bf16.mxu1 %v7137_v11 }
 0x651   :  { %5877 = vmatmul.mubr.msk.bf16.gmra.mrb[124].mxu1 %vm360_vm2, %v2124_v45 }
 0x652   :  { %6577 = vmatpush3.bf16.msra.mxu0 %v7138_v56 }
 0x653   :  { %6617 = vmatpush3.bf16.msra.mxu1 %v7138_v56  ;;  %6578 = vmatprep.subr.bf16.mxu0 %v7139_v38 }
 0x654   :  { %6618 = vmatprep.subr.bf16.mxu1 %v7139_v38  ;;  %v10870_v38 = vmax.f32 %v8312_v49, 0.0 }
 0x656   :  { %6579 = vmatpush3.bf16.msra.mxu0 %v7140_v55 }
 0x657   :  { %6619 = vmatpush3.bf16.msra.mxu1 %v7140_v55  ;;  %2603 = vmatprep.subr.bf16.mxu0 %v2601_v8 }
 0x658   :  { %2692 = vmatprep.subr.bf16.mxu1 %v2601_v8 }
 0x70b   :  { %v2082_v41 = vpop.f32.mrb[112].mxu0 }
 0x70c   :  { %v2171_v61 = vpop.f32.mrb[112].mxu1  ;;  %v2084_v25 = vpop.f32.mrb[113].mxu0  ;;  %v8573_v57 = vadd.f32 %v2082_v41, %v1671_v62  ;;  %v10869_v62 = vmax.f32 %v8284_v58, 0.0  ;;  %v10871_v41 = vmax.f32 %v8316_v60, 0.0  ;;  %v10875_v60 = vmax.f32 %v8332_v12, 0.0 }
 0x70d   :  { %v8569_v16 = vadd.f32 %v2084_v25, %v1672_v20  ;;  %v2173_v2 = vpop.f32.mrb[113].mxu1  ;;  %v2086_v0 = vpop.f32.mrb[114].mxu0  ;;  %v8585_v30 = vadd.f32 %v2171_v61, %v1703_v39  ;;  %v10872_v25 = vmax.f32 %v8320_v47, 0.0  ;;  %v10876_v47 = vmax.f32 %v8336_v6, 0.0 }
 0x70e   :  { %v8577_v54 = vadd.f32 %v2173_v2, %v1704_v19  ;;  %v8581_v33 = vadd.f32 %v2086_v0, %v1673_v15  ;;  %v2175_v43 = vpop.f32.mrb[114].mxu1  ;;  %v2088_v14 = vpop.f32.mrb[115].mxu0  ;;  %v2226_v27 = vmax.f32 %v8573_v57, 0.0  ;;  %v10873_v0 = vmax.f32 %v8324_v13, 0.0 }
 0x70f   :  { %v8589_v20 = vadd.f32 %v2175_v43, %v1705_v18  ;;  %v8593_v26 = vadd.f32 %v2088_v14, %v1674_v9  ;;  %v2177_v40 = vpop.f32.mrb[115].mxu1  ;;  %v2227_v19 = vmax.f32 %v8569_v16, 0.0  ;;  %v2258_v4 = vmax.f32 %v8585_v30, 0.0 }
 0x710   :  { %v2228_v15 = vmax.f32 %v8581_v33, 0.0  ;;  %v8601_v37 = vadd.f32 %v2177_v40, %v10869_v62  ;;  %v2259_v9 = vmax.f32 %v8577_v54, 0.0  ;;  %v10874_v40 = vmax.f32 %v8328_v36, 0.0  ;;  %v7160_v33 = vld [vmem:[%s10591_s2 + $0x50] ss:$8 sps:$4 sm:$0x1f]  }
 0x711   :  { %v2260_v22 = vmax.f32 %v8589_v20, 0.0  ;;  %v2229_v18 = vmax.f32 %v8593_v26, 0.0 }
 0x712   :  { %v10693_v39 = vmax.f32 %v8601_v37, 0.0  ;;  %v2311_v17 = vpack.c.bf16 %v2228_v15, %v2226_v27 }
 0x713   :  { %v2312_v58 = vpack.c.bf16 %v2229_v18, %v2227_v19  ;;  %v2092_v53 = vpop.f32.mrb[116].mxu0  ;;  %v2492_v56 = vpack.c.bf16 %v2260_v22, %v2258_v4 }
 0x714   :  { %v2493_v24 = vpack.c.bf16 %v10693_v39, %v2259_v9  ;;  %v2181_v45 = vpop.f32.mrb[116].mxu1  ;;  %v2094_v11 = vpop.f32.mrb[117].mxu0  ;;  %v8633_v61 = vadd.f32 %v2092_v53, %v10871_v41 }
 0x715   :  { %v8629_v55 = vadd.f32 %v2094_v11, %v10870_v38  ;;  %v2183_v63 = vpop.f32.mrb[117].mxu1  ;;  %v2096_v8 = vpop.f32.mrb[118].mxu0  ;;  %2451 = vmatprep.mubr.bf16.mxu0 %v2312_v58  ;;  %v8645_v46 = vadd.f32 %v2181_v45, %v10874_v40 }
 0x716   :  { %v8637_v2 = vadd.f32 %v2183_v63, %v10872_v25  ;;  %v8641_v43 = vadd.f32 %v2096_v8, %v10873_v0  ;;  %v2185_v14 = vpop.f32.mrb[118].mxu1  ;;  %2532 = vmatprep.mubr.bf16.mxu1 %v2493_v24  ;;  %v2098_v49 = vpop.f32.mrb[119].mxu0  ;;  %2452 = vmatmul.mubr.bf16.vlgmr.msra.gmra.mrb[128].mxu0 %v2311_v17  ;;  %v10877_v24 = vmax.f32 %v8341_v34, 0.0  ;;  %v10691_v6 = vmax.f32 %v8633_v61, 0.0 }
 0x717   :  { %v8649_v62 = vadd.f32 %v2185_v14, %v10875_v60  ;;  %v8653_v58 = vadd.f32 %v2098_v49, %v10876_v47  ;;  %v2187_v53 = vpop.f32.mrb[119].mxu1  ;;  %2533 = vmatmul.mubr.bf16.vlgmr.msra.gmra.mrb[128].mxu1 %v2492_v56  ;;  %2604 = vmatpush1.bf16.msra.mxu0 %v2598_v52  ;;  %v10692_v36 = vmax.f32 %v8629_v55, 0.0  ;;  %v10679_v38 = vmax.f32 %v8645_v46, 0.0 }
 0x718   :  { %v10671_v13 = vmax.f32 %v8641_v43, 0.0  ;;  %v8658_v17 = vadd.f32 %v2187_v53, %v10877_v24  ;;  %2693 = vmatpush1.bf16.msra.mxu1 %v2598_v52  ;;  %v10690_v11 = vmax.f32 %v8637_v2, 0.0  ;;  %v10878_v14 = vmax.f32 %v8368_v10, 0.0 }
 0x719   :  { %v10672_v12 = vmax.f32 %v8649_v62, 0.0  ;;  %v10670_v45 = vmax.f32 %v8653_v58, 0.0  ;;  %v10879_v47 = vmax.f32 %v8372_v28, 0.0  ;;  %v10880_v24 = vmax.f32 %v8376_v1, 0.0 }
 0x71a   :  { %v10669_v56 = vmax.f32 %v8658_v17, 0.0  ;;  %v2313_v63 = vpack.c.bf16 %v10671_v13, %v10691_v6  ;;  %v10883_v28 = vmax.f32 %v8388_v3, 0.0  ;;  %v10884_v1 = vmax.f32 %v8392_v42, 0.0 }
 0x71b   :  { %v2314_v34 = vpack.c.bf16 %v10670_v45, %v10692_v36  ;;  %v2102_v52 = vpop.f32.mrb[120].mxu0  ;;  %v2494_v0 = vpack.c.bf16 %v10672_v12, %v10679_v38  ;;  %v10881_v45 = vmax.f32 %v8380_v48, 0.0 }
 0x71c   :  { %v2495_v8 = vpack.c.bf16 %v10669_v56, %v10690_v11  ;;  %v2191_v41 = vpop.f32.mrb[120].mxu1  ;;  %v2104_v25 = vpop.f32.mrb[121].mxu0  ;;  %v8689_v53 = vadd.f32 %v2102_v52, %v10879_v47 }
 0x71d   :  { %v8685_v49 = vadd.f32 %v2104_v25, %v10878_v14  ;;  %v2193_v40 = vpop.f32.mrb[121].mxu1  ;;  %v2106_v60 = vpop.f32.mrb[122].mxu0  ;;  %2459 = vmatprep.mubr.bf16.mxu0 %v2314_v34  ;;  %v10882_v25 = vmax.f32 %v8384_v31, 0.0 }
 0x71e   :  { %v8693_v56 = vadd.f32 %v2193_v40, %v10880_v24  ;;  %v8697_v13 = vadd.f32 %v2106_v60, %v10881_v45  ;;  %v2195_v12 = vpop.f32.mrb[122].mxu1  ;;  %2540 = vmatprep.mubr.bf16.mxu1 %v2495_v8  ;;  %v2108_v10 = vpop.f32.mrb[123].mxu0  ;;  %2460 = vmatmul.mubr.bf16.gmra.mrb[132].mxu0 %v2313_v63  ;;  %v10885_v45 = vmax.f32 %v8397_v50, 0.0 }
 0x71f   :  { %v8701_v14 = vadd.f32 %v2191_v41, %v10882_v25  ;;  %v8705_v34 = vadd.f32 %v2195_v12, %v10883_v28  ;;  %v8709_v52 = vadd.f32 %v2108_v10, %v10884_v1  ;;  %v2197_v40 = vpop.f32.mrb[123].mxu1  ;;  %2541 = vmatmul.mubr.bf16.gmra.mrb[132].mxu1 %v2494_v0  ;;  %v10678_v31 = vmax.f32 %v8685_v49, 0.0 }
 0x720   :  { %v10674_v48 = vmax.f32 %v8697_v13, 0.0  ;;  %v8714_v8 = vadd.f32 %v2197_v40, %v10885_v45  ;;  %v10675_v12 = vmax.f32 %v8689_v53, 0.0  ;;  %v10677_v42 = vmax.f32 %v8693_v56, 0.0 }
 0x721   :  { %v10680_v63 = vmax.f32 %v8705_v34, 0.0  ;;  %v10673_v3 = vmax.f32 %v8709_v52, 0.0  ;;  %v10689_v0 = vmax.f32 %v8701_v14, 0.0  ;;  %v10886_v1 = vmax.f32 %v8424_v5, 0.0 }
 0x722   :  { %v10676_v41 = vmax.f32 %v8714_v8, 0.0  ;;  %v2315_v47 = vpack.c.bf16 %v10674_v48, %v10675_v12  ;;  %v10887_v48 = vmax.f32 %v8428_v21, 0.0  ;;  %v10891_v21 = vmax.f32 %v8444_v59, 0.0 }
 0x723   :  { %v2316_v50 = vpack.c.bf16 %v10673_v3, %v10678_v31  ;;  %v2112_v60 = vpop.f32.mrb[124].mxu0  ;;  %v2496_v28 = vpack.c.bf16 %v10680_v63, %v10689_v0  ;;  %v10889_v31 = vmax.f32 %v8436_v44, 0.0 }
 0x724   :  { %v2497_v24 = vpack.c.bf16 %v10676_v41, %v10677_v42  ;;  %v2201_v10 = vpop.f32.mrb[124].mxu1  ;;  %v2114_v25 = vpop.f32.mrb[125].mxu0  ;;  %v8745_v12 = vadd.f32 %v2112_v60, %v10887_v48  ;;  %v10888_v41 = vmax.f32 %v8432_v35, 0.0  ;;  %v10892_v35 = vmax.f32 %v8448_v51, 0.0 }
 0x725   :  { %v8741_v40 = vadd.f32 %v2114_v25, %v10886_v1  ;;  %v2203_v45 = vpop.f32.mrb[125].mxu1  ;;  %v2116_v3 = vpop.f32.mrb[126].mxu0  ;;  %2467 = vmatprep.mubr.bf16.mxu0 %v2316_v50  ;;  %v10890_v25 = vmax.f32 %v8440_v29, 0.0 }
 0x726   :  { %v8749_v42 = vadd.f32 %v2203_v45, %v10888_v41  ;;  %v8753_v38 = vadd.f32 %v2116_v3, %v10889_v31  ;;  %v2205_v63 = vpop.f32.mrb[126].mxu1  ;;  %2548 = vmatprep.mubr.bf16.mxu1 %v2497_v24  ;;  %v2118_v5 = vpop.f32.mrb[127].mxu0  ;;  %2468 = vmatmul.mubr.bf16.gmra.mrb[136].mxu0 %v2315_v47  ;;  %v10893_v31 = vmax.f32 %v8453_v23, 0.0 }
 0x727   :  { %v8757_v1 = vadd.f32 %v2201_v10, %v10890_v25  ;;  %v8761_v48 = vadd.f32 %v2205_v63, %v10891_v21  ;;  %v8765_v41 = vadd.f32 %v2118_v5, %v10892_v35  ;;  %v2207_v50 = vpop.f32.mrb[127].mxu1  ;;  %2549 = vmatmul.mubr.bf16.gmra.mrb[136].mxu1 %v2496_v28  ;;  %v10688_v29 = vmax.f32 %v8741_v40, 0.0  ;;  %v7144_v5 = vld [vmem:[%s10590_s1 + $0x2c0] sm:$0xff]  }
 0x728   :  { %v10685_v44 = vmax.f32 %v8753_v38, 0.0  ;;  %v8770_v3 = vadd.f32 %v2207_v50, %v10893_v31  ;;  %v10687_v63 = vmax.f32 %v8745_v12, 0.0  ;;  %v10686_v51 = vmax.f32 %v8749_v42, 0.0  ;;  %6644 = vmatprep.subr.bf16.mxu0 %v7144_v5  ;;  %6684 = vmatprep.subr.bf16.mxu1 %v7144_v5  ;;  %v8803_v35 = vld [vmem:[%s10592_s3 + $0x4] ss:$0 sm:$0xff] }
 0x729   :  { %v10683_v60 = vmax.f32 %v8761_v48, 0.0  ;;  %v10682_v59 = vmax.f32 %v8765_v41, 0.0  ;;  %v10684_v24 = vmax.f32 %v8757_v1, 0.0 }
 0x72a   :  { %v10681_v47 = vmax.f32 %v8770_v3, 0.0  ;;  %v2317_v10 = vpack.c.bf16 %v10685_v44, %v10687_v63 }
 0x72b   :  { %v2318_v23 = vpack.c.bf16 %v10682_v59, %v10688_v29  ;;  %v2498_v45 = vpack.c.bf16 %v10683_v60, %v10684_v24 }
 0x72c   :  { %v2499_v28 = vpack.c.bf16 %v10681_v47, %v10686_v51 }
 0x72d   :  { %2475 = vmatprep.mubr.bf16.mxu0 %v2318_v23 }
 0x72e   :  { %2556 = vmatprep.mubr.bf16.mxu1 %v2499_v28  ;;  %2476 = vmatmul.mubr.bf16.gmra.mrb[140].mxu0 %v2317_v10 }
 0x72f   :  { %2557 = vmatmul.mubr.bf16.gmra.mrb[140].mxu1 %v2498_v45  ;;  %2635 = vmatprep.mubr.bf16.mxu0 %v7312_v7 }
 0x730   :  { %2724 = vmatprep.mubr.bf16.mxu1 %v7312_v7 }
 0x7e9   :  { %v6580_v25 = vpop.f32.mrb[128].mxu0 }
 0x7ea   :  { %v6620_v21 = vpop.f32.mrb[128].mxu1  ;;  %v6581_v50 = vpop.f32.mrb[129].mxu0 }
 0x7eb   :  { %v6582_v31 = vadd.f32 %v6581_v50, %v6580_v25  ;;  %v6621_v23 = vpop.f32.mrb[129].mxu1  ;;  %v6583_v10 = vpop.f32.mrb[130].mxu0 }
 0x7ec   :  { %v6622_v28 = vadd.f32 %v6621_v23, %v6620_v21  ;;  %v6623_v45 = vpop.f32.mrb[130].mxu1  ;;  %v6584_v47 = vpop.f32.mrb[131].mxu0 }
 0x7ed   :  { %v2454_v59 = vadd.f32 %v6582_v31, %v8803_v35  ;;  %v6585_v60 = vadd.f32 %v6584_v47, %v6583_v10  ;;  %v6624_v24 = vpop.f32.mrb[131].mxu1  ;;  %v7145_v47 = vld [vmem:[%s10590_s1 + $0x280] sm:$0xff]  }
 0x7ee   :  { %v2535_v5 = vadd.f32 %v6622_v28, %v8803_v35  ;;  %v6625_v44 = vadd.f32 %v6624_v24, %v6623_v45 }
 0x7ef   :  { %v2457_v51 = vadd.f32 %v6585_v60, %v8803_v35  ;;  %v2484_v29 = vmax.f32 %v2454_v59, 0.0 }
 0x7f0   :  { %v2538_v63 = vadd.f32 %v6625_v44, %v8803_v35  ;;  %v2565_v25 = vmax.f32 %v2535_v5, 0.0  ;;  %v7146_v44 = vld [vmem:[%s10590_s1 + $0x2c8] sm:$0xff]  }
 0x7f1   :  { %v2485_v0 = vmax.f32 %v2457_v51, 0.0  ;;  %v6586_v11 = vpop.f32.mrb[132].mxu0 }
 0x7f2   :  { %v2566_v50 = vmax.f32 %v2538_v63, 0.0  ;;  %v6626_v6 = vpop.f32.mrb[132].mxu1  ;;  %v6587_v21 = vpop.f32.mrb[133].mxu0 }
 0x7f3   :  { %v2573_v23 = vpack.c.bf16 %v2485_v0, %v2484_v29  ;;  %v6588_v36 = vadd.f32 %v6587_v21, %v6586_v11  ;;  %v6627_v39 = vpop.f32.mrb[133].mxu1  ;;  %v6589_v31 = vpop.f32.mrb[134].mxu0  ;;  %v7148_v29 = vld [vmem:[%s10590_s1 + $0x2d0] sm:$0xff]  }
 0x7f4   :  { %v2676_v24 = vpack.c.bf16 %v2566_v50, %v2565_v25  ;;  %v6628_v10 = vadd.f32 %v6627_v39, %v6626_v6  ;;  %v6629_v60 = vpop.f32.mrb[134].mxu1  ;;  %v6590_v28 = vpop.f32.mrb[135].mxu0 }
 0x7f5   :  { %v2462_v59 = vadd.f32 %v6588_v36, %v8803_v35  ;;  %v6591_v63 = vadd.f32 %v6590_v28, %v6589_v31  ;;  %v6630_v51 = vpop.f32.mrb[135].mxu1  ;;  %5931 = vmatmul.mubr.msk.bf16.vlgmr.msra.gmra.mrb[144].mxu0 %vm360_vm2, %v2573_v23  ;;  %v7147_v36 = vld [vmem:[%s10590_s1 + $0x288] sm:$0xff]  }
 0x7f6   :  { %v2543_v11 = vadd.f32 %v6628_v10, %v8803_v35  ;;  %v6631_v0 = vadd.f32 %v6630_v51, %v6629_v60  ;;  %5935 = vmatmul.mubr.msk.bf16.vlgmr.msra.gmra.mrb[144].mxu1 %vm360_vm2, %v2676_v24  ;;  %2645 = vmatprep.mubr.bf16.mxu0 %v7312_v7 }
 0x7f7   :  { %v2465_v39 = vadd.f32 %v6591_v63, %v8803_v35  ;;  %2734 = vmatprep.mubr.bf16.mxu1 %v7312_v7  ;;  %6645 = vmatpush3.bf16.msra.mxu0 %v7145_v47  ;;  %v2486_v45 = vmax.f32 %v2462_v59, 0.0 }
 0x7f8   :  { %v2546_v6 = vadd.f32 %v6631_v0, %v8803_v35  ;;  %6685 = vmatpush3.bf16.msra.mxu1 %v7145_v47  ;;  %6646 = vmatprep.subr.bf16.mxu0 %v7146_v44  ;;  %v2567_v50 = vmax.f32 %v2543_v11, 0.0  ;;  %v7149_v47 = vld [vmem:[%s10590_s1 + $0x290] sm:$0xff]  }
 0x7f9   :  { %v2487_v5 = vmax.f32 %v2465_v39, 0.0  ;;  %v6592_v25 = vpop.f32.mrb[136].mxu0  ;;  %6686 = vmatprep.subr.bf16.mxu1 %v7146_v44  ;;  %v7150_v44 = vld [vmem:[%s10590_s1 + $0x2d8] sm:$0xff]  }
 0x7fa   :  { %v2568_v21 = vmax.f32 %v2546_v6, 0.0  ;;  %v6632_v23 = vpop.f32.mrb[136].mxu1  ;;  %v6593_v31 = vpop.f32.mrb[137].mxu0 }
 0x7fb   :  { %v2574_v24 = vpack.c.bf16 %v2487_v5, %v2486_v45  ;;  %v6594_v10 = vadd.f32 %v6593_v31, %v6592_v25  ;;  %v6633_v60 = vpop.f32.mrb[137].mxu1  ;;  %v6595_v28 = vpop.f32.mrb[138].mxu0  ;;  %6647 = vmatpush3.bf16.msra.mxu0 %v7147_v36  ;;  %v7151_v25 = vld [vmem:[%s10590_s1 + $0x298] sm:$0xff]  }
 0x7fc   :  { %v2677_v63 = vpack.c.bf16 %v2568_v21, %v2567_v50  ;;  %v6634_v51 = vadd.f32 %v6633_v60, %v6632_v23  ;;  %v6635_v0 = vpop.f32.mrb[138].mxu1  ;;  %v6596_v59 = vpop.f32.mrb[139].mxu0  ;;  %6687 = vmatpush3.bf16.msra.mxu1 %v7147_v36  ;;  %6648 = vmatprep.subr.bf16.mxu0 %v7148_v29 }
 0x7fd   :  { %v2470_v11 = vadd.f32 %v6594_v10, %v8803_v35  ;;  %v6597_v39 = vadd.f32 %v6596_v59, %v6595_v28  ;;  %v6636_v6 = vpop.f32.mrb[139].mxu1  ;;  %5932 = vmatmul.mubr.msk.bf16.gmra.mrb[148].mxu0 %vm360_vm2, %v2574_v24  ;;  %6688 = vmatprep.subr.bf16.mxu1 %v7148_v29  ;;  %v7152_v29 = vld [vmem:[%s10590_s1 + $0x2e0] sm:$0xff]  }
 0x7fe   :  { %v2551_v45 = vadd.f32 %v6634_v51, %v8803_v35  ;;  %v6637_v5 = vadd.f32 %v6636_v6, %v6635_v0  ;;  %5936 = vmatmul.mubr.msk.bf16.gmra.mrb[148].mxu1 %vm360_vm2, %v2677_v63  ;;  %2655 = vmatprep.mubr.bf16.mxu0 %v7312_v7 }
 0x7ff   :  { %v2473_v36 = vadd.f32 %v6597_v39, %v8803_v35  ;;  %2744 = vmatprep.mubr.bf16.mxu1 %v7312_v7  ;;  %6649 = vmatpush3.bf16.msra.mxu0 %v7149_v47  ;;  %v2488_v21 = vmax.f32 %v2470_v11, 0.0 }
 0x800   :  { %v2554_v50 = vadd.f32 %v6637_v5, %v8803_v35  ;;  %6689 = vmatpush3.bf16.msra.mxu1 %v7149_v47  ;;  %6650 = vmatprep.subr.bf16.mxu0 %v7150_v44  ;;  %v2569_v24 = vmax.f32 %v2551_v45, 0.0  ;;  %v7153_v47 = vld [vmem:[%s10590_s1 + $0x2a0] sm:$0xff]  }
 0x801   :  { %v2489_v23 = vmax.f32 %v2473_v36, 0.0  ;;  %v6598_v31 = vpop.f32.mrb[140].mxu0  ;;  %6690 = vmatprep.subr.bf16.mxu1 %v7150_v44  ;;  %v7154_v44 = vld [vmem:[%s10590_s1 + $0x2e8] sm:$0xff]  }
 0x802   :  { %v2570_v10 = vmax.f32 %v2554_v50, 0.0  ;;  %v6638_v60 = vpop.f32.mrb[140].mxu1  ;;  %v6599_v28 = vpop.f32.mrb[141].mxu0 }
 0x803   :  { %v2575_v63 = vpack.c.bf16 %v2489_v23, %v2488_v21  ;;  %v6600_v51 = vadd.f32 %v6599_v28, %v6598_v31  ;;  %v6639_v0 = vpop.f32.mrb[141].mxu1  ;;  %v6601_v59 = vpop.f32.mrb[142].mxu0  ;;  %6651 = vmatpush3.bf16.msra.mxu0 %v7151_v25  ;;  %v7155_v31 = vld [vmem:[%s10590_s1 + $0x2a8] sm:$0xff]  }
 0x804   :  { %v2678_v39 = vpack.c.bf16 %v2570_v10, %v2569_v24  ;;  %v6640_v6 = vadd.f32 %v6639_v0, %v6638_v60  ;;  %v6641_v5 = vpop.f32.mrb[142].mxu1  ;;  %v6602_v11 = vpop.f32.mrb[143].mxu0  ;;  %6691 = vmatpush3.bf16.msra.mxu1 %v7151_v25  ;;  %6652 = vmatprep.subr.bf16.mxu0 %v7152_v29  ;;  %v7156_v0 = vld [vmem:[%s10590_s1 + $0x2f0] sm:$0xff]  }
 0x805   :  { %v2478_v45 = vadd.f32 %v6600_v51, %v8803_v35  ;;  %v6603_v36 = vadd.f32 %v6602_v11, %v6601_v59  ;;  %v6642_v50 = vpop.f32.mrb[143].mxu1  ;;  %5933 = vmatmul.mubr.msk.bf16.gmra.mrb[152].mxu0 %vm360_vm2, %v2575_v63  ;;  %6692 = vmatprep.subr.bf16.mxu1 %v7152_v29  ;;  %v7158_v59 = vld [vmem:[%s10590_s1 + $0x2f8] sm:$0xff]  }
 0x806   :  { %v2559_v21 = vadd.f32 %v6640_v6, %v8803_v35  ;;  %v6643_v23 = vadd.f32 %v6642_v50, %v6641_v5  ;;  %5937 = vmatmul.mubr.msk.bf16.gmra.mrb[152].mxu1 %vm360_vm2, %v2678_v39  ;;  %2665 = vmatprep.mubr.bf16.mxu0 %v7312_v7  ;;  %v7162_v39 = vld [vmem:[%s10591_s2 + $0x54] ss:$8 sps:$4 sm:$0x1f]  }
 0x807   :  { %v2481_v25 = vadd.f32 %v6603_v36, %v8803_v35  ;;  %2754 = vmatprep.mubr.bf16.mxu1 %v7312_v7  ;;  %6653 = vmatpush3.bf16.msra.mxu0 %v7153_v47  ;;  %v2490_v29 = vmax.f32 %v2478_v45, 0.0  ;;  %v3156_v6 = vand.u32 %v7162_v39, %v7425_v32 }
 0x808   :  { %v2562_v24 = vadd.f32 %v6643_v23, %v8803_v35  ;;  %6693 = vmatpush3.bf16.msra.mxu1 %v7153_v47  ;;  %6654 = vmatprep.subr.bf16.mxu0 %v7154_v44  ;;  %v2571_v60 = vmax.f32 %v2559_v21, 0.0  ;;  %v7157_v35 = vld [vmem:[%s10590_s1 + $0x2b0] sm:$0xff]   ;;  %v7159_v47 = vld [vmem:[%s10590_s1 + $0x2b8] sm:$0xff]  }
 0x809   :  { %v2491_v10 = vmax.f32 %v2481_v25, 0.0  ;;  %6694 = vmatprep.subr.bf16.mxu1 %v7154_v44 }
 0x80a   :  { %v2572_v28 = vmax.f32 %v2562_v24, 0.0 }
 0x80b   :  { %v2576_v63 = vpack.c.bf16 %v2491_v10, %v2490_v29  ;;  %6655 = vmatpush3.bf16.msra.mxu0 %v7155_v31 }
 0x80c   :  { %v2679_v51 = vpack.c.bf16 %v2572_v28, %v2571_v60  ;;  %6695 = vmatpush3.bf16.msra.mxu1 %v7155_v31  ;;  %6656 = vmatprep.subr.bf16.mxu0 %v7156_v0  ;;  %v3153_v60 = vand.u32 %v7160_v33, %v7425_v32 }
 0x80d   :  { %5934 = vmatmul.mubr.msk.bf16.gmra.mrb[156].mxu0 %vm360_vm2, %v2576_v63  ;;  %6696 = vmatprep.subr.bf16.mxu1 %v7156_v0 }
 0x80e   :  { %5938 = vmatmul.mubr.msk.bf16.gmra.mrb[156].mxu1 %vm360_vm2, %v2679_v51 }
 0x80f   :  { %6657 = vmatpush3.bf16.msra.mxu0 %v7157_v35 }
 0x810   :  { %6697 = vmatpush3.bf16.msra.mxu1 %v7157_v35  ;;  %6658 = vmatprep.subr.bf16.mxu0 %v7158_v59 }
 0x811   :  { %6698 = vmatprep.subr.bf16.mxu1 %v7158_v59  ;;  %v10895_v59 = vmax.f32 %v8629_v55, 0.0 }
 0x813   :  { %6659 = vmatpush3.bf16.msra.mxu0 %v7159_v47 }
 0x814   :  { %6699 = vmatpush3.bf16.msra.mxu1 %v7159_v47  ;;  %3158 = vmatprep.subr.bf16.mxu0 %v3156_v6 }
 0x815   :  { %3247 = vmatprep.subr.bf16.mxu1 %v3156_v6 }
 0x8c8   :  { %v2637_v5 = vpop.f32.mrb[144].mxu0 }
 0x8c9   :  { %v2726_v11 = vpop.f32.mrb[144].mxu1  ;;  %v2639_v44 = vpop.f32.mrb[145].mxu0  ;;  %v8890_v21 = vadd.f32 %v2637_v5, %v2226_v27  ;;  %v10894_v27 = vmax.f32 %v8601_v37, 0.0  ;;  %v10896_v5 = vmax.f32 %v8633_v61, 0.0  ;;  %v10900_v61 = vmax.f32 %v8649_v62, 0.0 }
 0x8ca   :  { %v8886_v45 = vadd.f32 %v2639_v44, %v2227_v19  ;;  %v2728_v36 = vpop.f32.mrb[145].mxu1  ;;  %v2641_v50 = vpop.f32.mrb[146].mxu0  ;;  %v8902_v16 = vadd.f32 %v2726_v11, %v2258_v4  ;;  %v10897_v44 = vmax.f32 %v8637_v2, 0.0  ;;  %v10901_v2 = vmax.f32 %v8653_v58, 0.0 }
 0x8cb   :  { %v8894_v23 = vadd.f32 %v2728_v36, %v2259_v9  ;;  %v8898_v25 = vadd.f32 %v2641_v50, %v2228_v15  ;;  %v2730_v31 = vpop.f32.mrb[146].mxu1  ;;  %v2643_v24 = vpop.f32.mrb[147].mxu0  ;;  %v2781_v26 = vmax.f32 %v8890_v21, 0.0  ;;  %v10898_v50 = vmax.f32 %v8641_v43, 0.0 }
 0x8cc   :  { %v8906_v19 = vadd.f32 %v2730_v31, %v2260_v22  ;;  %v8910_v57 = vadd.f32 %v2643_v24, %v2229_v18  ;;  %v2732_v54 = vpop.f32.mrb[147].mxu1  ;;  %v2782_v9 = vmax.f32 %v8886_v45, 0.0  ;;  %v2813_v29 = vmax.f32 %v8902_v16, 0.0 }
 0x8cd   :  { %v2783_v15 = vmax.f32 %v8898_v25, 0.0  ;;  %v8918_v30 = vadd.f32 %v2732_v54, %v10894_v27  ;;  %v2814_v18 = vmax.f32 %v8894_v23, 0.0  ;;  %v10899_v54 = vmax.f32 %v8645_v46, 0.0  ;;  %v7179_v25 = vld [vmem:[%s10591_s2 + $0x60] ss:$8 sps:$4 sm:$0x1f]  }
 0x8ce   :  { %v2815_v20 = vmax.f32 %v8906_v19, 0.0  ;;  %v2784_v22 = vmax.f32 %v8910_v57, 0.0 }
 0x8cf   :  { %v10718_v4 = vmax.f32 %v8918_v30, 0.0  ;;  %v2866_v28 = vpack.c.bf16 %v2783_v15, %v2781_v26 }
 0x8d0   :  { %v2867_v37 = vpack.c.bf16 %v2784_v22, %v2782_v9  ;;  %v2647_v10 = vpop.f32.mrb[148].mxu0  ;;  %v3047_v35 = vpack.c.bf16 %v2815_v20, %v2813_v29 }
 0x8d1   :  { %v3048_v63 = vpack.c.bf16 %v10718_v4, %v2814_v18  ;;  %v2736_v51 = vpop.f32.mrb[148].mxu1  ;;  %v2649_v0 = vpop.f32.mrb[149].mxu0  ;;  %v8950_v11 = vadd.f32 %v2647_v10, %v10896_v5 }
 0x8d2   :  { %v8946_v47 = vadd.f32 %v2649_v0, %v10895_v59  ;;  %v2738_v39 = vpop.f32.mrb[149].mxu1  ;;  %v2651_v6 = vpop.f32.mrb[150].mxu0  ;;  %3006 = vmatprep.mubr.bf16.mxu0 %v2867_v37  ;;  %v8962_v33 = vadd.f32 %v2736_v51, %v10899_v54 }
 0x8d3   :  { %v8954_v36 = vadd.f32 %v2738_v39, %v10897_v44  ;;  %v8958_v31 = vadd.f32 %v2651_v6, %v10898_v50  ;;  %v2740_v24 = vpop.f32.mrb[150].mxu1  ;;  %3087 = vmatprep.mubr.bf16.mxu1 %v3048_v63  ;;  %v2653_v55 = vpop.f32.mrb[151].mxu0  ;;  %3007 = vmatmul.mubr.bf16.vlgmr.msra.gmra.mrb[160].mxu0 %v2866_v28  ;;  %v10902_v63 = vmax.f32 %v8658_v17, 0.0  ;;  %v10716_v58 = vmax.f32 %v8950_v11, 0.0 }
 0x8d4   :  { %v8966_v27 = vadd.f32 %v2740_v24, %v10900_v61  ;;  %v8970_v37 = vadd.f32 %v2653_v55, %v10901_v2  ;;  %v2742_v10 = vpop.f32.mrb[151].mxu1  ;;  %3088 = vmatmul.mubr.bf16.vlgmr.msra.gmra.mrb[160].mxu1 %v3047_v35  ;;  %3159 = vmatpush1.bf16.msra.mxu0 %v3153_v60  ;;  %v10717_v46 = vmax.f32 %v8946_v47, 0.0  ;;  %v10704_v59 = vmax.f32 %v8962_v33, 0.0 }
 0x8d5   :  { %v10696_v43 = vmax.f32 %v8958_v31, 0.0  ;;  %v8975_v28 = vadd.f32 %v2742_v10, %v10902_v63  ;;  %3248 = vmatpush1.bf16.msra.mxu1 %v3153_v60  ;;  %v10715_v0 = vmax.f32 %v8954_v36, 0.0  ;;  %v10903_v24 = vmax.f32 %v8685_v49, 0.0 }
 0x8d6   :  { %v10697_v62 = vmax.f32 %v8966_v27, 0.0  ;;  %v10695_v51 = vmax.f32 %v8970_v37, 0.0  ;;  %v10904_v2 = vmax.f32 %v8689_v53, 0.0  ;;  %v10905_v63 = vmax.f32 %v8693_v56, 0.0 }
 0x8d7   :  { %v10694_v35 = vmax.f32 %v8975_v28, 0.0  ;;  %v2868_v39 = vpack.c.bf16 %v10696_v43, %v10716_v58  ;;  %v10908_v53 = vmax.f32 %v8705_v34, 0.0  ;;  %v10909_v56 = vmax.f32 %v8709_v52, 0.0 }
 0x8d8   :  { %v2869_v17 = vpack.c.bf16 %v10695_v51, %v10717_v46  ;;  %v2657_v60 = vpop.f32.mrb[152].mxu0  ;;  %v3049_v50 = vpack.c.bf16 %v10697_v62, %v10704_v59  ;;  %v10906_v51 = vmax.f32 %v8697_v13, 0.0 }
 0x8d9   :  { %v3050_v6 = vpack.c.bf16 %v10694_v35, %v10715_v0  ;;  %v2746_v5 = vpop.f32.mrb[152].mxu1  ;;  %v2659_v44 = vpop.f32.mrb[153].mxu0  ;;  %v9006_v10 = vadd.f32 %v2657_v60, %v10904_v2 }
 0x8da   :  { %v9002_v55 = vadd.f32 %v2659_v44, %v10903_v24  ;;  %v2748_v54 = vpop.f32.mrb[153].mxu1  ;;  %v2661_v61 = vpop.f32.mrb[154].mxu0  ;;  %3014 = vmatprep.mubr.bf16.mxu0 %v2869_v17  ;;  %v10907_v44 = vmax.f32 %v8701_v14, 0.0 }
 0x8db   :  { %v9010_v35 = vadd.f32 %v2748_v54, %v10905_v63  ;;  %v9014_v43 = vadd.f32 %v2661_v61, %v10906_v51  ;;  %v2750_v62 = vpop.f32.mrb[154].mxu1  ;;  %3095 = vmatprep.mubr.bf16.mxu1 %v3050_v6  ;;  %v2663_v49 = vpop.f32.mrb[155].mxu0  ;;  %3015 = vmatmul.mubr.bf16.gmra.mrb[164].mxu0 %v2868_v39  ;;  %v10910_v51 = vmax.f32 %v8714_v8, 0.0 }
 0x8dc   :  { %v9018_v24 = vadd.f32 %v2746_v5, %v10907_v44  ;;  %v9022_v17 = vadd.f32 %v2750_v62, %v10908_v53  ;;  %v9026_v60 = vadd.f32 %v2663_v49, %v10909_v56  ;;  %v2752_v54 = vpop.f32.mrb[155].mxu1  ;;  %3096 = vmatmul.mubr.bf16.gmra.mrb[164].mxu1 %v3049_v50  ;;  %v10703_v14 = vmax.f32 %v9002_v55, 0.0 }
 0x8dd   :  { %v10699_v13 = vmax.f32 %v9014_v43, 0.0  ;;  %v9031_v6 = vadd.f32 %v2752_v54, %v10910_v51  ;;  %v10700_v62 = vmax.f32 %v9006_v10, 0.0  ;;  %v10702_v52 = vmax.f32 %v9010_v35, 0.0 }
 0x8de   :  { %v10705_v39 = vmax.f32 %v9022_v17, 0.0  ;;  %v10698_v34 = vmax.f32 %v9026_v60, 0.0  ;;  %v10714_v50 = vmax.f32 %v9018_v24, 0.0  ;;  %v10911_v56 = vmax.f32 %v8741_v40, 0.0 }
 0x8df   :  { %v10701_v5 = vmax.f32 %v9031_v6, 0.0  ;;  %v2870_v2 = vpack.c.bf16 %v10699_v13, %v10700_v62  ;;  %v10912_v13 = vmax.f32 %v8745_v12, 0.0  ;;  %v10916_v12 = vmax.f32 %v8761_v48, 0.0 }
 0x8e0   :  { %v2871_v8 = vpack.c.bf16 %v10698_v34, %v10703_v14  ;;  %v2667_v61 = vpop.f32.mrb[156].mxu0  ;;  %v3051_v53 = vpack.c.bf16 %v10705_v39, %v10714_v50  ;;  %v10914_v14 = vmax.f32 %v8753_v38, 0.0 }
 0x8e1   :  { %v3052_v63 = vpack.c.bf16 %v10701_v5, %v10702_v52  ;;  %v2756_v49 = vpop.f32.mrb[156].mxu1  ;;  %v2669_v44 = vpop.f32.mrb[157].mxu0  ;;  %v9062_v62 = vadd.f32 %v2667_v61, %v10912_v13  ;;  %v10913_v5 = vmax.f32 %v8749_v42, 0.0  ;;  %v10917_v42 = vmax.f32 %v8765_v41, 0.0 }
 0x8e2   :  { %v9058_v54 = vadd.f32 %v2669_v44, %v10911_v56  ;;  %v2758_v51 = vpop.f32.mrb[157].mxu1  ;;  %v2671_v34 = vpop.f32.mrb[158].mxu0  ;;  %3022 = vmatprep.mubr.bf16.mxu0 %v2871_v8  ;;  %v10915_v44 = vmax.f32 %v8757_v1, 0.0 }
 0x8e3   :  { %v9066_v52 = vadd.f32 %v2758_v51, %v10913_v5  ;;  %v9070_v59 = vadd.f32 %v2671_v34, %v10914_v14  ;;  %v2760_v39 = vpop.f32.mrb[158].mxu1  ;;  %3103 = vmatprep.mubr.bf16.mxu1 %v3052_v63  ;;  %v2673_v40 = vpop.f32.mrb[159].mxu0  ;;  %3023 = vmatmul.mubr.bf16.gmra.mrb[168].mxu0 %v2870_v2  ;;  %v10918_v14 = vmax.f32 %v8770_v3, 0.0 }
 0x8e4   :  { %v9074_v56 = vadd.f32 %v2756_v49, %v10915_v44  ;;  %v9078_v13 = vadd.f32 %v2760_v39, %v10916_v12  ;;  %v9082_v5 = vadd.f32 %v2673_v40, %v10917_v42  ;;  %v2762_v8 = vpop.f32.mrb[159].mxu1  ;;  %3104 = vmatmul.mubr.bf16.gmra.mrb[168].mxu1 %v3051_v53  ;;  %v10713_v1 = vmax.f32 %v9058_v54, 0.0  ;;  %v7163_v40 = vld [vmem:[%s10590_s1 + $0x340] sm:$0xff]  }
 0x8e5   :  { %v10710_v38 = vmax.f32 %v9070_v59, 0.0  ;;  %v9087_v34 = vadd.f32 %v2762_v8, %v10918_v14  ;;  %v10712_v39 = vmax.f32 %v9062_v62, 0.0  ;;  %v10711_v41 = vmax.f32 %v9066_v52, 0.0  ;;  %6724 = vmatprep.subr.bf16.mxu0 %v7163_v40  ;;  %6764 = vmatprep.subr.bf16.mxu1 %v7163_v40  ;;  %v9120_v42 = vld [vmem:[%s10592_s3 + $0x5] ss:$0 sm:$0xff] }
 0x8e6   :  { %v10708_v61 = vmax.f32 %v9078_v13, 0.0  ;;  %v10707_v48 = vmax.f32 %v9082_v5, 0.0  ;;  %v10709_v63 = vmax.f32 %v9074_v56, 0.0 }
 0x8e7   :  { %v10706_v2 = vmax.f32 %v9087_v34, 0.0  ;;  %v2872_v49 = vpack.c.bf16 %v10710_v38, %v10712_v39 }
 0x8e8   :  { %v2873_v3 = vpack.c.bf16 %v10707_v48, %v10713_v1  ;;  %v3053_v51 = vpack.c.bf16 %v10708_v61, %v10709_v63 }
 0x8e9   :  { %v3054_v53 = vpack.c.bf16 %v10706_v2, %v10711_v41 }
 0x8ea   :  { %3030 = vmatprep.mubr.bf16.mxu0 %v2873_v3 }
 0x8eb   :  { %3111 = vmatprep.mubr.bf16.mxu1 %v3054_v53  ;;  %3031 = vmatmul.mubr.bf16.gmra.mrb[172].mxu0 %v2872_v49 }
 0x8ec   :  { %3112 = vmatmul.mubr.bf16.gmra.mrb[172].mxu1 %v3053_v51  ;;  %3190 = vmatprep.mubr.bf16.mxu0 %v7312_v7 }
 0x8ed   :  { %3279 = vmatprep.mubr.bf16.mxu1 %v7312_v7 }
 0x9a6   :  { %v6660_v44 = vpop.f32.mrb[160].mxu0 }
 0x9a7   :  { %v6700_v12 = vpop.f32.mrb[160].mxu1  ;;  %v6661_v8 = vpop.f32.mrb[161].mxu0 }
 0x9a8   :  { %v6662_v14 = vadd.f32 %v6661_v8, %v6660_v44  ;;  %v6701_v3 = vpop.f32.mrb[161].mxu1  ;;  %v6663_v49 = vpop.f32.mrb[162].mxu0 }
 0x9a9   :  { %v6702_v53 = vadd.f32 %v6701_v3, %v6700_v12  ;;  %v6703_v51 = vpop.f32.mrb[162].mxu1  ;;  %v6664_v2 = vpop.f32.mrb[163].mxu0 }
 0x9aa   :  { %v3009_v48 = vadd.f32 %v6662_v14, %v9120_v42  ;;  %v6665_v61 = vadd.f32 %v6664_v2, %v6663_v49  ;;  %v6704_v63 = vpop.f32.mrb[163].mxu1  ;;  %v7164_v2 = vld [vmem:[%s10590_s1 + $0x300] sm:$0xff]  }
 0x9ab   :  { %v3090_v40 = vadd.f32 %v6702_v53, %v9120_v42  ;;  %v6705_v38 = vadd.f32 %v6704_v63, %v6703_v51 }
 0x9ac   :  { %v3012_v41 = vadd.f32 %v6665_v61, %v9120_v42  ;;  %v3039_v1 = vmax.f32 %v3009_v48, 0.0 }
 0x9ad   :  { %v3093_v39 = vadd.f32 %v6705_v38, %v9120_v42  ;;  %v3120_v44 = vmax.f32 %v3090_v40, 0.0  ;;  %v7165_v38 = vld [vmem:[%s10590_s1 + $0x348] sm:$0xff]  }
 0x9ae   :  { %v3040_v50 = vmax.f32 %v3012_v41, 0.0  ;;  %v6666_v0 = vpop.f32.mrb[164].mxu0 }
 0x9af   :  { %v3121_v8 = vmax.f32 %v3093_v39, 0.0  ;;  %v6706_v58 = vpop.f32.mrb[164].mxu1  ;;  %v6667_v12 = vpop.f32.mrb[165].mxu0 }
 0x9b0   :  { %v3128_v3 = vpack.c.bf16 %v3040_v50, %v3039_v1  ;;  %v6668_v46 = vadd.f32 %v6667_v12, %v6666_v0  ;;  %v6707_v4 = vpop.f32.mrb[165].mxu1  ;;  %v6669_v14 = vpop.f32.mrb[166].mxu0  ;;  %v7167_v1 = vld [vmem:[%s10590_s1 + $0x350] sm:$0xff]  }
 0x9b1   :  { %v3231_v63 = vpack.c.bf16 %v3121_v8, %v3120_v44  ;;  %v6708_v49 = vadd.f32 %v6707_v4, %v6706_v58  ;;  %v6709_v61 = vpop.f32.mrb[166].mxu1  ;;  %v6670_v53 = vpop.f32.mrb[167].mxu0 }
 0x9b2   :  { %v3017_v48 = vadd.f32 %v6668_v46, %v9120_v42  ;;  %v6671_v39 = vadd.f32 %v6670_v53, %v6669_v14  ;;  %v6710_v41 = vpop.f32.mrb[167].mxu1  ;;  %5992 = vmatmul.mubr.msk.bf16.vlgmr.msra.gmra.mrb[176].mxu0 %vm360_vm2, %v3128_v3  ;;  %v7166_v46 = vld [vmem:[%s10590_s1 + $0x308] sm:$0xff]  }
 0x9b3   :  { %v3098_v0 = vadd.f32 %v6708_v49, %v9120_v42  ;;  %v6711_v50 = vadd.f32 %v6710_v41, %v6709_v61  ;;  %5996 = vmatmul.mubr.msk.bf16.vlgmr.msra.gmra.mrb[176].mxu1 %vm360_vm2, %v3231_v63  ;;  %3200 = vmatprep.mubr.bf16.mxu0 %v7312_v7 }
 0x9b4   :  { %v3020_v4 = vadd.f32 %v6671_v39, %v9120_v42  ;;  %3289 = vmatprep.mubr.bf16.mxu1 %v7312_v7  ;;  %6725 = vmatpush3.bf16.msra.mxu0 %v7164_v2  ;;  %v3041_v51 = vmax.f32 %v3017_v48, 0.0 }
 0x9b5   :  { %v3101_v58 = vadd.f32 %v6711_v50, %v9120_v42  ;;  %6765 = vmatpush3.bf16.msra.mxu1 %v7164_v2  ;;  %6726 = vmatprep.subr.bf16.mxu0 %v7165_v38  ;;  %v3122_v8 = vmax.f32 %v3098_v0, 0.0  ;;  %v7168_v2 = vld [vmem:[%s10590_s1 + $0x310] sm:$0xff]  }
 0x9b6   :  { %v3042_v40 = vmax.f32 %v3020_v4, 0.0  ;;  %v6672_v44 = vpop.f32.mrb[168].mxu0  ;;  %6766 = vmatprep.subr.bf16.mxu1 %v7165_v38  ;;  %v7169_v38 = vld [vmem:[%s10590_s1 + $0x358] sm:$0xff]  }
 0x9b7   :  { %v3123_v12 = vmax.f32 %v3101_v58, 0.0  ;;  %v6712_v3 = vpop.f32.mrb[168].mxu1  ;;  %v6673_v14 = vpop.f32.mrb[169].mxu0 }
 0x9b8   :  { %v3129_v63 = vpack.c.bf16 %v3042_v40, %v3041_v51  ;;  %v6674_v49 = vadd.f32 %v6673_v14, %v6672_v44  ;;  %v6713_v61 = vpop.f32.mrb[169].mxu1  ;;  %v6675_v53 = vpop.f32.mrb[170].mxu0  ;;  %6727 = vmatpush3.bf16.msra.mxu0 %v7166_v46  ;;  %v7170_v44 = vld [vmem:[%s10590_s1 + $0x318] sm:$0xff]  }
 0x9b9   :  { %v3232_v39 = vpack.c.bf16 %v3123_v12, %v3122_v8  ;;  %v6714_v41 = vadd.f32 %v6713_v61, %v6712_v3  ;;  %v6715_v50 = vpop.f32.mrb[170].mxu1  ;;  %v6676_v48 = vpop.f32.mrb[171].mxu0  ;;  %6767 = vmatpush3.bf16.msra.mxu1 %v7166_v46  ;;  %6728 = vmatprep.subr.bf16.mxu0 %v7167_v1 }
 0x9ba   :  { %v3025_v0 = vadd.f32 %v6674_v49, %v9120_v42  ;;  %v6677_v4 = vadd.f32 %v6676_v48, %v6675_v53  ;;  %v6716_v58 = vpop.f32.mrb[171].mxu1  ;;  %5993 = vmatmul.mubr.msk.bf16.gmra.mrb[180].mxu0 %vm360_vm2, %v3129_v63  ;;  %6768 = vmatprep.subr.bf16.mxu1 %v7167_v1  ;;  %v7171_v1 = vld [vmem:[%s10590_s1 + $0x360] sm:$0xff]  }
 0x9bb   :  { %v3106_v51 = vadd.f32 %v6714_v41, %v9120_v42  ;;  %v6717_v40 = vadd.f32 %v6716_v58, %v6715_v50  ;;  %5997 = vmatmul.mubr.msk.bf16.gmra.mrb[180].mxu1 %vm360_vm2, %v3232_v39  ;;  %3210 = vmatprep.mubr.bf16.mxu0 %v7312_v7 }
 0x9bc   :  { %v3028_v46 = vadd.f32 %v6677_v4, %v9120_v42  ;;  %3299 = vmatprep.mubr.bf16.mxu1 %v7312_v7  ;;  %6729 = vmatpush3.bf16.msra.mxu0 %v7168_v2  ;;  %v3043_v12 = vmax.f32 %v3025_v0, 0.0 }
 0x9bd   :  { %v3109_v8 = vadd.f32 %v6717_v40, %v9120_v42  ;;  %6769 = vmatpush3.bf16.msra.mxu1 %v7168_v2  ;;  %6730 = vmatprep.subr.bf16.mxu0 %v7169_v38  ;;  %v3124_v63 = vmax.f32 %v3106_v51, 0.0  ;;  %v7172_v2 = vld [vmem:[%s10590_s1 + $0x320] sm:$0xff]  }
 0x9be   :  { %v3044_v3 = vmax.f32 %v3028_v46, 0.0  ;;  %v6678_v14 = vpop.f32.mrb[172].mxu0  ;;  %6770 = vmatprep.subr.bf16.mxu1 %v7169_v38  ;;  %v7173_v38 = vld [vmem:[%s10590_s1 + $0x368] sm:$0xff]  }
 0x9bf   :  { %v3125_v49 = vmax.f32 %v3109_v8, 0.0  ;;  %v6718_v61 = vpop.f32.mrb[172].mxu1  ;;  %v6679_v53 = vpop.f32.mrb[173].mxu0 }
 0x9c0   :  { %v3130_v39 = vpack.c.bf16 %v3044_v3, %v3043_v12  ;;  %v6680_v41 = vadd.f32 %v6679_v53, %v6678_v14  ;;  %v6719_v50 = vpop.f32.mrb[173].mxu1  ;;  %v6681_v48 = vpop.f32.mrb[174].mxu0  ;;  %6731 = vmatpush3.bf16.msra.mxu0 %v7170_v44  ;;  %v7174_v14 = vld [vmem:[%s10590_s1 + $0x328] sm:$0xff]  }
 0x9c1   :  { %v3233_v4 = vpack.c.bf16 %v3125_v49, %v3124_v63  ;;  %v6720_v58 = vadd.f32 %v6719_v50, %v6718_v61  ;;  %v6721_v40 = vpop.f32.mrb[174].mxu1  ;;  %v6682_v0 = vpop.f32.mrb[175].mxu0  ;;  %6771 = vmatpush3.bf16.msra.mxu1 %v7170_v44  ;;  %6732 = vmatprep.subr.bf16.mxu0 %v7171_v1  ;;  %v7175_v50 = vld [vmem:[%s10590_s1 + $0x370] sm:$0xff]  }
 0x9c2   :  { %v3033_v51 = vadd.f32 %v6680_v41, %v9120_v42  ;;  %v6683_v46 = vadd.f32 %v6682_v0, %v6681_v48  ;;  %v6722_v8 = vpop.f32.mrb[175].mxu1  ;;  %5994 = vmatmul.mubr.msk.bf16.gmra.mrb[184].mxu0 %vm360_vm2, %v3130_v39  ;;  %6772 = vmatprep.subr.bf16.mxu1 %v7171_v1  ;;  %v7177_v48 = vld [vmem:[%s10590_s1 + $0x378] sm:$0xff]  }
 0x9c3   :  { %v3114_v12 = vadd.f32 %v6720_v58, %v9120_v42  ;;  %v6723_v3 = vadd.f32 %v6722_v8, %v6721_v40  ;;  %5998 = vmatmul.mubr.msk.bf16.gmra.mrb[184].mxu1 %vm360_vm2, %v3233_v4  ;;  %3220 = vmatprep.mubr.bf16.mxu0 %v7312_v7  ;;  %v7181_v4 = vld [vmem:[%s10591_s2 + $0x64] ss:$8 sps:$4 sm:$0x1f]  }
 0x9c4   :  { %v3036_v44 = vadd.f32 %v6683_v46, %v9120_v42  ;;  %3309 = vmatprep.mubr.bf16.mxu1 %v7312_v7  ;;  %6733 = vmatpush3.bf16.msra.mxu0 %v7172_v2  ;;  %v3045_v1 = vmax.f32 %v3033_v51, 0.0  ;;  %v3711_v58 = vand.u32 %v7181_v4, %v7425_v32 }
 0x9c5   :  { %v3117_v63 = vadd.f32 %v6723_v3, %v9120_v42  ;;  %6773 = vmatpush3.bf16.msra.mxu1 %v7172_v2  ;;  %6734 = vmatprep.subr.bf16.mxu0 %v7173_v38  ;;  %v3126_v61 = vmax.f32 %v3114_v12, 0.0  ;;  %v7176_v42 = vld [vmem:[%s10590_s1 + $0x330] sm:$0xff]   ;;  %v7178_v2 = vld [vmem:[%s10590_s1 + $0x338] sm:$0xff]  }
 0x9c6   :  { %v3046_v49 = vmax.f32 %v3036_v44, 0.0  ;;  %6774 = vmatprep.subr.bf16.mxu1 %v7173_v38 }
 0x9c7   :  { %v3127_v53 = vmax.f32 %v3117_v63, 0.0 }
 0x9c8   :  { %v3131_v39 = vpack.c.bf16 %v3046_v49, %v3045_v1  ;;  %6735 = vmatpush3.bf16.msra.mxu0 %v7174_v14 }
 0x9c9   :  { %v3234_v41 = vpack.c.bf16 %v3127_v53, %v3126_v61  ;;  %6775 = vmatpush3.bf16.msra.mxu1 %v7174_v14  ;;  %6736 = vmatprep.subr.bf16.mxu0 %v7175_v50  ;;  %v3708_v61 = vand.u32 %v7179_v25, %v7425_v32 }
 0x9ca   :  { %5995 = vmatmul.mubr.msk.bf16.gmra.mrb[188].mxu0 %vm360_vm2, %v3131_v39  ;;  %6776 = vmatprep.subr.bf16.mxu1 %v7175_v50 }
 0x9cb   :  { %5999 = vmatmul.mubr.msk.bf16.gmra.mrb[188].mxu1 %vm360_vm2, %v3234_v41 }
 0x9cc   :  { %6737 = vmatpush3.bf16.msra.mxu0 %v7176_v42 }
 0x9cd   :  { %6777 = vmatpush3.bf16.msra.mxu1 %v7176_v42  ;;  %6738 = vmatprep.subr.bf16.mxu0 %v7177_v48 }
 0x9ce   :  { %6778 = vmatprep.subr.bf16.mxu1 %v7177_v48  ;;  %v10920_v48 = vmax.f32 %v8946_v47, 0.0 }
 0x9d0   :  { %6739 = vmatpush3.bf16.msra.mxu0 %v7178_v2 }
 0x9d1   :  { %6779 = vmatpush3.bf16.msra.mxu1 %v7178_v2  ;;  %3713 = vmatprep.subr.bf16.mxu0 %v3711_v58 }
 0x9d2   :  { %3802 = vmatprep.subr.bf16.mxu1 %v3711_v58 }
 0xa85   :  { %v3192_v40 = vpop.f32.mrb[176].mxu0 }
 0xa86   :  { %v3281_v0 = vpop.f32.mrb[176].mxu1  ;;  %v3194_v38 = vpop.f32.mrb[177].mxu0  ;;  %v9207_v12 = vadd.f32 %v3192_v40, %v2781_v26  ;;  %v10919_v26 = vmax.f32 %v8918_v30, 0.0  ;;  %v10921_v40 = vmax.f32 %v8950_v11, 0.0  ;;  %v10925_v11 = vmax.f32 %v8966_v27, 0.0 }
 0xa87   :  { %v9203_v51 = vadd.f32 %v3194_v38, %v2782_v9  ;;  %v3283_v46 = vpop.f32.mrb[177].mxu1  ;;  %v3196_v8 = vpop.f32.mrb[178].mxu0  ;;  %v9219_v45 = vadd.f32 %v3281_v0, %v2813_v29  ;;  %v10922_v38 = vmax.f32 %v8954_v36, 0.0  ;;  %v10926_v36 = vmax.f32 %v8970_v37, 0.0 }
 0xa88   :  { %v9211_v3 = vadd.f32 %v3283_v46, %v2814_v18  ;;  %v9215_v44 = vadd.f32 %v3196_v8, %v2783_v15  ;;  %v3285_v14 = vpop.f32.mrb[178].mxu1  ;;  %v3198_v63 = vpop.f32.mrb[179].mxu0  ;;  %v3336_v57 = vmax.f32 %v9207_v12, 0.0  ;;  %v10923_v8 = vmax.f32 %v8958_v31, 0.0 }
 0xa89   :  { %v9223_v9 = vadd.f32 %v3285_v14, %v2815_v20  ;;  %v9227_v21 = vadd.f32 %v3198_v63, %v2784_v22  ;;  %v3287_v23 = vpop.f32.mrb[179].mxu1  ;;  %v3337_v18 = vmax.f32 %v9203_v51, 0.0  ;;  %v3368_v1 = vmax.f32 %v9219_v45, 0.0 }
 0xa8a   :  { %v3338_v15 = vmax.f32 %v9215_v44, 0.0  ;;  %v9235_v16 = vadd.f32 %v3287_v23, %v10919_v26  ;;  %v3369_v22 = vmax.f32 %v9211_v3, 0.0  ;;  %v10924_v23 = vmax.f32 %v8962_v33, 0.0  ;;  %v7198_v44 = vld [vmem:[%s10591_s2 + $0x70] ss:$8 sps:$4 sm:$0x1f]  }
 0xa8b   :  { %v3370_v19 = vmax.f32 %v9223_v9, 0.0  ;;  %v3339_v20 = vmax.f32 %v9227_v21, 0.0 }
 0xa8c   :  { %v10743_v29 = vmax.f32 %v9235_v16, 0.0  ;;  %v3421_v53 = vpack.c.bf16 %v3338_v15, %v3336_v57 }
 0xa8d   :  { %v3422_v30 = vpack.c.bf16 %v3339_v20, %v3337_v18  ;;  %v3202_v49 = vpop.f32.mrb[180].mxu0  ;;  %v3602_v42 = vpack.c.bf16 %v3370_v19, %v3368_v1 }
 0xa8e   :  { %v3603_v39 = vpack.c.bf16 %v10743_v29, %v3369_v22  ;;  %v3291_v41 = vpop.f32.mrb[180].mxu1  ;;  %v3204_v50 = vpop.f32.mrb[181].mxu0  ;;  %v9267_v0 = vadd.f32 %v3202_v49, %v10921_v40 }
 0xa8f   :  { %v9263_v2 = vadd.f32 %v3204_v50, %v10920_v48  ;;  %v3293_v4 = vpop.f32.mrb[181].mxu1  ;;  %v3206_v58 = vpop.f32.mrb[182].mxu0  ;;  %3561 = vmatprep.mubr.bf16.mxu0 %v3422_v30  ;;  %v9279_v25 = vadd.f32 %v3291_v41, %v10924_v23 }
 0xa90   :  { %v9271_v46 = vadd.f32 %v3293_v4, %v10922_v38  ;;  %v9275_v14 = vadd.f32 %v3206_v58, %v10923_v8  ;;  %v3295_v63 = vpop.f32.mrb[182].mxu1  ;;  %3642 = vmatprep.mubr.bf16.mxu1 %v3603_v39  ;;  %v3208_v47 = vpop.f32.mrb[183].mxu0  ;;  %3562 = vmatmul.mubr.bf16.vlgmr.msra.gmra.mrb[192].mxu0 %v3421_v53  ;;  %v10927_v39 = vmax.f32 %v8975_v28, 0.0  ;;  %v10741_v37 = vmax.f32 %v9267_v0, 0.0 }
 0xa91   :  { %v9283_v26 = vadd.f32 %v3295_v63, %v10925_v11  ;;  %v9287_v30 = vadd.f32 %v3208_v47, %v10926_v36  ;;  %v3297_v49 = vpop.f32.mrb[183].mxu1  ;;  %3643 = vmatmul.mubr.bf16.vlgmr.msra.gmra.mrb[192].mxu1 %v3602_v42  ;;  %3714 = vmatpush1.bf16.msra.mxu0 %v3708_v61  ;;  %v10742_v33 = vmax.f32 %v9263_v2, 0.0  ;;  %v10729_v48 = vmax.f32 %v9279_v25, 0.0 }
 0xa92   :  { %v10721_v31 = vmax.f32 %v9275_v14, 0.0  ;;  %v9292_v53 = vadd.f32 %v3297_v49, %v10927_v39  ;;  %3803 = vmatpush1.bf16.msra.mxu1 %v3708_v61  ;;  %v10740_v50 = vmax.f32 %v9271_v46, 0.0  ;;  %v10928_v63 = vmax.f32 %v9002_v55, 0.0 }
 0xa93   :  { %v10722_v27 = vmax.f32 %v9283_v26, 0.0  ;;  %v10720_v41 = vmax.f32 %v9287_v30, 0.0  ;;  %v10929_v36 = vmax.f32 %v9006_v10, 0.0  ;;  %v10930_v39 = vmax.f32 %v9010_v35, 0.0 }
 0xa94   :  { %v10719_v42 = vmax.f32 %v9292_v53, 0.0  ;;  %v3423_v4 = vpack.c.bf16 %v10721_v31, %v10741_v37  ;;  %v10933_v10 = vmax.f32 %v9022_v17, 0.0  ;;  %v10934_v35 = vmax.f32 %v9026_v60, 0.0 }
 0xa95   :  { %v3424_v28 = vpack.c.bf16 %v10720_v41, %v10742_v33  ;;  %v3212_v61 = vpop.f32.mrb[184].mxu0  ;;  %v3604_v8 = vpack.c.bf16 %v10722_v27, %v10729_v48  ;;  %v10931_v41 = vmax.f32 %v9014_v43, 0.0 }
 0xa96   :  { %v3605_v58 = vpack.c.bf16 %v10719_v42, %v10740_v50  ;;  %v3301_v40 = vpop.f32.mrb[184].mxu1  ;;  %v3214_v38 = vpop.f32.mrb[185].mxu0  ;;  %v9323_v49 = vadd.f32 %v3212_v61, %v10929_v36 }
 0xa97   :  { %v9319_v47 = vadd.f32 %v3214_v38, %v10928_v63  ;;  %v3303_v23 = vpop.f32.mrb[185].mxu1  ;;  %v3216_v11 = vpop.f32.mrb[186].mxu0  ;;  %3569 = vmatprep.mubr.bf16.mxu0 %v3424_v28  ;;  %v10932_v38 = vmax.f32 %v9018_v24, 0.0 }
 0xa98   :  { %v9327_v42 = vadd.f32 %v3303_v23, %v10930_v39  ;;  %v9331_v31 = vadd.f32 %v3216_v11, %v10931_v41  ;;  %v3305_v27 = vpop.f32.mrb[186].mxu1  ;;  %3650 = vmatprep.mubr.bf16.mxu1 %v3605_v58  ;;  %v3218_v55 = vpop.f32.mrb[187].mxu0  ;;  %3570 = vmatmul.mubr.bf16.gmra.mrb[196].mxu0 %v3423_v4  ;;  %v10935_v41 = vmax.f32 %v9031_v6, 0.0 }
 0xa99   :  { %v9335_v63 = vadd.f32 %v3301_v40, %v10932_v38  ;;  %v9339_v28 = vadd.f32 %v3305_v27, %v10933_v10  ;;  %v9343_v61 = vadd.f32 %v3218_v55, %v10934_v35  ;;  %v3307_v23 = vpop.f32.mrb[187].mxu1  ;;  %3651 = vmatmul.mubr.bf16.gmra.mrb[196].mxu1 %v3604_v8  ;;  %v10728_v24 = vmax.f32 %v9319_v47, 0.0 }
 0xa9a   :  { %v10724_v43 = vmax.f32 %v9331_v31, 0.0  ;;  %v9348_v58 = vadd.f32 %v3307_v23, %v10935_v41  ;;  %v10725_v27 = vmax.f32 %v9323_v49, 0.0  ;;  %v10727_v60 = vmax.f32 %v9327_v42, 0.0 }
 0xa9b   :  { %v10730_v4 = vmax.f32 %v9339_v28, 0.0  ;;  %v10723_v17 = vmax.f32 %v9343_v61, 0.0  ;;  %v10739_v8 = vmax.f32 %v9335_v63, 0.0  ;;  %v10936_v35 = vmax.f32 %v9058_v54, 0.0 }
 0xa9c   :  { %v10726_v40 = vmax.f32 %v9348_v58, 0.0  ;;  %v3425_v36 = vpack.c.bf16 %v10724_v43, %v10725_v27  ;;  %v10937_v43 = vmax.f32 %v9062_v62, 0.0  ;;  %v10941_v62 = vmax.f32 %v9078_v13, 0.0 }
 0xa9d   :  { %v3426_v6 = vpack.c.bf16 %v10723_v17, %v10728_v24  ;;  %v3222_v11 = vpop.f32.mrb[188].mxu0  ;;  %v3606_v10 = vpack.c.bf16 %v10730_v4, %v10739_v8  ;;  %v10939_v24 = vmax.f32 %v9070_v59, 0.0 }
 0xa9e   :  { %v3607_v39 = vpack.c.bf16 %v10726_v40, %v10727_v60  ;;  %v3311_v55 = vpop.f32.mrb[188].mxu1  ;;  %v3224_v38 = vpop.f32.mrb[189].mxu0  ;;  %v9379_v27 = vadd.f32 %v3222_v11, %v10937_v43  ;;  %v10938_v40 = vmax.f32 %v9066_v52, 0.0  ;;  %v10942_v52 = vmax.f32 %v9082_v5, 0.0 }
 0xa9f   :  { %v9375_v23 = vadd.f32 %v3224_v38, %v10936_v35  ;;  %v3313_v41 = vpop.f32.mrb[189].mxu1  ;;  %v3226_v17 = vpop.f32.mrb[190].mxu0  ;;  %3577 = vmatprep.mubr.bf16.mxu0 %v3426_v6  ;;  %v10940_v38 = vmax.f32 %v9074_v56, 0.0 }
 0xaa0   :  { %v9383_v60 = vadd.f32 %v3313_v41, %v10938_v40  ;;  %v9387_v48 = vadd.f32 %v3226_v17, %v10939_v24  ;;  %v3315_v4 = vpop.f32.mrb[190].mxu1  ;;  %3658 = vmatprep.mubr.bf16.mxu1 %v3607_v39  ;;  %v3228_v54 = vpop.f32.mrb[191].mxu0  ;;  %3578 = vmatmul.mubr.bf16.gmra.mrb[200].mxu0 %v3425_v36  ;;  %v10943_v24 = vmax.f32 %v9087_v34, 0.0 }
 0xaa1   :  { %v9391_v35 = vadd.f32 %v3311_v55, %v10940_v38  ;;  %v9395_v43 = vadd.f32 %v3315_v4, %v10941_v62  ;;  %v9399_v40 = vadd.f32 %v3228_v54, %v10942_v52  ;;  %v3317_v6 = vpop.f32.mrb[191].mxu1  ;;  %3659 = vmatmul.mubr.bf16.gmra.mrb[200].mxu1 %v3606_v10  ;;  %v10738_v56 = vmax.f32 %v9375_v23, 0.0  ;;  %v7182_v54 = vld [vmem:[%s10590_s1 + $0x3c0] sm:$0xff]  }
 0xaa2   :  { %v10735_v59 = vmax.f32 %v9387_v48, 0.0  ;;  %v9404_v17 = vadd.f32 %v3317_v6, %v10943_v24  ;;  %v10737_v4 = vmax.f32 %v9379_v27, 0.0  ;;  %v10736_v5 = vmax.f32 %v9383_v60, 0.0  ;;  %6804 = vmatprep.subr.bf16.mxu0 %v7182_v54  ;;  %6844 = vmatprep.subr.bf16.mxu1 %v7182_v54  ;;  %v9437_v52 = vld [vmem:[%s10592_s3 + $0x6] ss:$0 sm:$0xff] }
 0xaa3   :  { %v10733_v11 = vmax.f32 %v9395_v43, 0.0  ;;  %v10732_v13 = vmax.f32 %v9399_v40, 0.0  ;;  %v10734_v39 = vmax.f32 %v9391_v35, 0.0 }
 0xaa4   :  { %v10731_v36 = vmax.f32 %v9404_v17, 0.0  ;;  %v3427_v55 = vpack.c.bf16 %v10735_v59, %v10737_v4 }
 0xaa5   :  { %v3428_v34 = vpack.c.bf16 %v10732_v13, %v10738_v56  ;;  %v3608_v41 = vpack.c.bf16 %v10733_v11, %v10734_v39 }
 0xaa6   :  { %v3609_v10 = vpack.c.bf16 %v10731_v36, %v10736_v5 }
 0xaa7   :  { %3585 = vmatprep.mubr.bf16.mxu0 %v3428_v34 }
 0xaa8   :  { %3666 = vmatprep.mubr.bf16.mxu1 %v3609_v10  ;;  %3586 = vmatmul.mubr.bf16.gmra.mrb[204].mxu0 %v3427_v55 }
 0xaa9   :  { %3667 = vmatmul.mubr.bf16.gmra.mrb[204].mxu1 %v3608_v41  ;;  %3745 = vmatprep.mubr.bf16.mxu0 %v7312_v7 }
 0xaaa   :  { %3834 = vmatprep.mubr.bf16.mxu1 %v7312_v7 }
 0xb63   :  { %v6740_v38 = vpop.f32.mrb[192].mxu0 }
 0xb64   :  { %v6780_v62 = vpop.f32.mrb[192].mxu1  ;;  %v6741_v6 = vpop.f32.mrb[193].mxu0 }
 0xb65   :  { %v6742_v24 = vadd.f32 %v6741_v6, %v6740_v38  ;;  %v6781_v34 = vpop.f32.mrb[193].mxu1  ;;  %v6743_v55 = vpop.f32.mrb[194].mxu0 }
 0xb66   :  { %v6782_v10 = vadd.f32 %v6781_v34, %v6780_v62  ;;  %v6783_v41 = vpop.f32.mrb[194].mxu1  ;;  %v6744_v36 = vpop.f32.mrb[195].mxu0 }
 0xb67   :  { %v3564_v13 = vadd.f32 %v6742_v24, %v9437_v52  ;;  %v6745_v11 = vadd.f32 %v6744_v36, %v6743_v55  ;;  %v6784_v39 = vpop.f32.mrb[195].mxu1  ;;  %v7183_v36 = vld [vmem:[%s10590_s1 + $0x380] sm:$0xff]  }
 0xb68   :  { %v3645_v54 = vadd.f32 %v6782_v10, %v9437_v52  ;;  %v6785_v59 = vadd.f32 %v6784_v39, %v6783_v41 }
 0xb69   :  { %v3567_v5 = vadd.f32 %v6745_v11, %v9437_v52  ;;  %v3594_v56 = vmax.f32 %v3564_v13, 0.0 }
 0xb6a   :  { %v3648_v4 = vadd.f32 %v6785_v59, %v9437_v52  ;;  %v3675_v38 = vmax.f32 %v3645_v54, 0.0  ;;  %v7184_v59 = vld [vmem:[%s10590_s1 + $0x3c8] sm:$0xff]  }
 0xb6b   :  { %v3595_v8 = vmax.f32 %v3567_v5, 0.0  ;;  %v6746_v50 = vpop.f32.mrb[196].mxu0 }
 0xb6c   :  { %v3676_v6 = vmax.f32 %v3648_v4, 0.0  ;;  %v6786_v37 = vpop.f32.mrb[196].mxu1  ;;  %v6747_v62 = vpop.f32.mrb[197].mxu0 }
 0xb6d   :  { %v3683_v34 = vpack.c.bf16 %v3595_v8, %v3594_v56  ;;  %v6748_v33 = vadd.f32 %v6747_v62, %v6746_v50  ;;  %v6787_v29 = vpop.f32.mrb[197].mxu1  ;;  %v6749_v24 = vpop.f32.mrb[198].mxu0  ;;  %v7186_v56 = vld [vmem:[%s10590_s1 + $0x3d0] sm:$0xff]  }
 0xb6e   :  { %v3786_v39 = vpack.c.bf16 %v3676_v6, %v3675_v38  ;;  %v6788_v55 = vadd.f32 %v6787_v29, %v6786_v37  ;;  %v6789_v11 = vpop.f32.mrb[198].mxu1  ;;  %v6750_v10 = vpop.f32.mrb[199].mxu0 }
 0xb6f   :  { %v3572_v13 = vadd.f32 %v6748_v33, %v9437_v52  ;;  %v6751_v4 = vadd.f32 %v6750_v10, %v6749_v24  ;;  %v6790_v5 = vpop.f32.mrb[199].mxu1  ;;  %6053 = vmatmul.mubr.msk.bf16.vlgmr.msra.gmra.mrb[208].mxu0 %vm360_vm2, %v3683_v34  ;;  %v7185_v33 = vld [vmem:[%s10590_s1 + $0x388] sm:$0xff]  }
 0xb70   :  { %v3653_v50 = vadd.f32 %v6788_v55, %v9437_v52  ;;  %v6791_v8 = vadd.f32 %v6790_v5, %v6789_v11  ;;  %6057 = vmatmul.mubr.msk.bf16.vlgmr.msra.gmra.mrb[208].mxu1 %vm360_vm2, %v3786_v39  ;;  %3755 = vmatprep.mubr.bf16.mxu0 %v7312_v7 }
 0xb71   :  { %v3575_v29 = vadd.f32 %v6751_v4, %v9437_v52  ;;  %3844 = vmatprep.mubr.bf16.mxu1 %v7312_v7  ;;  %6805 = vmatpush3.bf16.msra.mxu0 %v7183_v36  ;;  %v3596_v41 = vmax.f32 %v3572_v13, 0.0 }
 0xb72   :  { %v3656_v37 = vadd.f32 %v6791_v8, %v9437_v52  ;;  %6845 = vmatpush3.bf16.msra.mxu1 %v7183_v36  ;;  %6806 = vmatprep.subr.bf16.mxu0 %v7184_v59  ;;  %v3677_v6 = vmax.f32 %v3653_v50, 0.0  ;;  %v7187_v36 = vld [vmem:[%s10590_s1 + $0x390] sm:$0xff]  }
 0xb73   :  { %v3597_v54 = vmax.f32 %v3575_v29, 0.0  ;;  %v6752_v38 = vpop.f32.mrb[200].mxu0  ;;  %6846 = vmatprep.subr.bf16.mxu1 %v7184_v59  ;;  %v7188_v59 = vld [vmem:[%s10590_s1 + $0x3d8] sm:$0xff]  }
 0xb74   :  { %v3678_v62 = vmax.f32 %v3656_v37, 0.0  ;;  %v6792_v34 = vpop.f32.mrb[200].mxu1  ;;  %v6753_v24 = vpop.f32.mrb[201].mxu0 }
 0xb75   :  { %v3684_v39 = vpack.c.bf16 %v3597_v54, %v3596_v41  ;;  %v6754_v55 = vadd.f32 %v6753_v24, %v6752_v38  ;;  %v6793_v11 = vpop.f32.mrb[201].mxu1  ;;  %v6755_v10 = vpop.f32.mrb[202].mxu0  ;;  %6807 = vmatpush3.bf16.msra.mxu0 %v7185_v33  ;;  %v7189_v38 = vld [vmem:[%s10590_s1 + $0x398] sm:$0xff]  }
 0xb76   :  { %v3787_v4 = vpack.c.bf16 %v3678_v62, %v3677_v6  ;;  %v6794_v5 = vadd.f32 %v6793_v11, %v6792_v34  ;;  %v6795_v8 = vpop.f32.mrb[202].mxu1  ;;  %v6756_v13 = vpop.f32.mrb[203].mxu0  ;;  %6847 = vmatpush3.bf16.msra.mxu1 %v7185_v33  ;;  %6808 = vmatprep.subr.bf16.mxu0 %v7186_v56 }
 0xb77   :  { %v3580_v50 = vadd.f32 %v6754_v55, %v9437_v52  ;;  %v6757_v29 = vadd.f32 %v6756_v13, %v6755_v10  ;;  %v6796_v37 = vpop.f32.mrb[203].mxu1  ;;  %6054 = vmatmul.mubr.msk.bf16.gmra.mrb[212].mxu0 %vm360_vm2, %v3684_v39  ;;  %6848 = vmatprep.subr.bf16.mxu1 %v7186_v56  ;;  %v7190_v56 = vld [vmem:[%s10590_s1 + $0x3e0] sm:$0xff]  }
 0xb78   :  { %v3661_v41 = vadd.f32 %v6794_v5, %v9437_v52  ;;  %v6797_v54 = vadd.f32 %v6796_v37, %v6795_v8  ;;  %6058 = vmatmul.mubr.msk.bf16.gmra.mrb[212].mxu1 %vm360_vm2, %v3787_v4  ;;  %3765 = vmatprep.mubr.bf16.mxu0 %v7312_v7 }
 0xb79   :  { %v3583_v33 = vadd.f32 %v6757_v29, %v9437_v52  ;;  %3854 = vmatprep.mubr.bf16.mxu1 %v7312_v7  ;;  %6809 = vmatpush3.bf16.msra.mxu0 %v7187_v36  ;;  %v3598_v62 = vmax.f32 %v3580_v50, 0.0 }
 0xb7a   :  { %v3664_v6 = vadd.f32 %v6797_v54, %v9437_v52  ;;  %6849 = vmatpush3.bf16.msra.mxu1 %v7187_v36  ;;  %6810 = vmatprep.subr.bf16.mxu0 %v7188_v59  ;;  %v3679_v39 = vmax.f32 %v3661_v41, 0.0  ;;  %v7191_v36 = vld [vmem:[%s10590_s1 + $0x3a0] sm:$0xff]  }
 0xb7b   :  { %v3599_v34 = vmax.f32 %v3583_v33, 0.0  ;;  %v6758_v24 = vpop.f32.mrb[204].mxu0  ;;  %6850 = vmatprep.subr.bf16.mxu1 %v7188_v59  ;;  %v7192_v59 = vld [vmem:[%s10590_s1 + $0x3e8] sm:$0xff]  }
 0xb7c   :  { %v3680_v55 = vmax.f32 %v3664_v6, 0.0  ;;  %v6798_v11 = vpop.f32.mrb[204].mxu1  ;;  %v6759_v10 = vpop.f32.mrb[205].mxu0 }
 0xb7d   :  { %v3685_v4 = vpack.c.bf16 %v3599_v34, %v3598_v62  ;;  %v6760_v5 = vadd.f32 %v6759_v10, %v6758_v24  ;;  %v6799_v8 = vpop.f32.mrb[205].mxu1  ;;  %v6761_v13 = vpop.f32.mrb[206].mxu0  ;;  %6811 = vmatpush3.bf16.msra.mxu0 %v7189_v38  ;;  %v7193_v24 = vld [vmem:[%s10590_s1 + $0x3a8] sm:$0xff]  }
 0xb7e   :  { %v3788_v29 = vpack.c.bf16 %v3680_v55, %v3679_v39  ;;  %v6800_v37 = vadd.f32 %v6799_v8, %v6798_v11  ;;  %v6801_v54 = vpop.f32.mrb[206].mxu1  ;;  %v6762_v50 = vpop.f32.mrb[207].mxu0  ;;  %6851 = vmatpush3.bf16.msra.mxu1 %v7189_v38  ;;  %6812 = vmatprep.subr.bf16.mxu0 %v7190_v56  ;;  %v7194_v8 = vld [vmem:[%s10590_s1 + $0x3f0] sm:$0xff]  }
 0xb7f   :  { %v3588_v41 = vadd.f32 %v6760_v5, %v9437_v52  ;;  %v6763_v33 = vadd.f32 %v6762_v50, %v6761_v13  ;;  %v6802_v6 = vpop.f32.mrb[207].mxu1  ;;  %6055 = vmatmul.mubr.msk.bf16.gmra.mrb[216].mxu0 %vm360_vm2, %v3685_v4  ;;  %6852 = vmatprep.subr.bf16.mxu1 %v7190_v56  ;;  %v7196_v13 = vld [vmem:[%s10590_s1 + $0x3f8] sm:$0xff]  }
 0xb80   :  { %v3669_v62 = vadd.f32 %v6800_v37, %v9437_v52  ;;  %v6803_v34 = vadd.f32 %v6802_v6, %v6801_v54  ;;  %6059 = vmatmul.mubr.msk.bf16.gmra.mrb[216].mxu1 %vm360_vm2, %v3788_v29  ;;  %3775 = vmatprep.mubr.bf16.mxu0 %v7312_v7  ;;  %v7200_v29 = vld [vmem:[%s10591_s2 + $0x74] ss:$8 sps:$4 sm:$0x1f]  }
 0xb81   :  { %v3591_v38 = vadd.f32 %v6763_v33, %v9437_v52  ;;  %3864 = vmatprep.mubr.bf16.mxu1 %v7312_v7  ;;  %6813 = vmatpush3.bf16.msra.mxu0 %v7191_v36  ;;  %v3600_v56 = vmax.f32 %v3588_v41, 0.0  ;;  %v4266_v37 = vand.u32 %v7200_v29, %v7425_v32 }
 0xb82   :  { %v3672_v39 = vadd.f32 %v6803_v34, %v9437_v52  ;;  %6853 = vmatpush3.bf16.msra.mxu1 %v7191_v36  ;;  %6814 = vmatprep.subr.bf16.mxu0 %v7192_v59  ;;  %v3681_v11 = vmax.f32 %v3669_v62, 0.0  ;;  %v7195_v52 = vld [vmem:[%s10590_s1 + $0x3b0] sm:$0xff]   ;;  %v7197_v36 = vld [vmem:[%s10590_s1 + $0x3b8] sm:$0xff]  }
 0xb83   :  { %v3601_v55 = vmax.f32 %v3591_v38, 0.0  ;;  %6854 = vmatprep.subr.bf16.mxu1 %v7192_v59 }
 0xb84   :  { %v3682_v10 = vmax.f32 %v3672_v39, 0.0 }
 0xb85   :  { %v3686_v4 = vpack.c.bf16 %v3601_v55, %v3600_v56  ;;  %6815 = vmatpush3.bf16.msra.mxu0 %v7193_v24 }
 0xb86   :  { %v3789_v5 = vpack.c.bf16 %v3682_v10, %v3681_v11  ;;  %6855 = vmatpush3.bf16.msra.mxu1 %v7193_v24  ;;  %6816 = vmatprep.subr.bf16.mxu0 %v7194_v8  ;;  %v4263_v11 = vand.u32 %v7198_v44, %v7425_v32 }
 0xb87   :  { %6056 = vmatmul.mubr.msk.bf16.gmra.mrb[220].mxu0 %vm360_vm2, %v3686_v4  ;;  %6856 = vmatprep.subr.bf16.mxu1 %v7194_v8 }
 0xb88   :  { %6060 = vmatmul.mubr.msk.bf16.gmra.mrb[220].mxu1 %vm360_vm2, %v3789_v5 }
 0xb89   :  { %6817 = vmatpush3.bf16.msra.mxu0 %v7195_v52 }
 0xb8a   :  { %6857 = vmatpush3.bf16.msra.mxu1 %v7195_v52  ;;  %6818 = vmatprep.subr.bf16.mxu0 %v7196_v13 }
 0xb8b   :  { %6858 = vmatprep.subr.bf16.mxu1 %v7196_v13  ;;  %v10945_v13 = vmax.f32 %v9263_v2, 0.0 }
 0xb8d   :  { %6819 = vmatpush3.bf16.msra.mxu0 %v7197_v36 }
 0xb8e   :  { %6859 = vmatpush3.bf16.msra.mxu1 %v7197_v36  ;;  %4268 = vmatprep.subr.bf16.mxu0 %v4266_v37 }
 0xb8f   :  { %4357 = vmatprep.subr.bf16.mxu1 %v4266_v37 }
 0xc42   :  { %v3747_v54 = vpop.f32.mrb[208].mxu0 }
 0xc43   :  { %v3836_v50 = vpop.f32.mrb[208].mxu1  ;;  %v3749_v59 = vpop.f32.mrb[209].mxu0  ;;  %v9524_v62 = vadd.f32 %v3747_v54, %v3336_v57  ;;  %v10944_v57 = vmax.f32 %v9235_v16, 0.0  ;;  %v10946_v54 = vmax.f32 %v9267_v0, 0.0  ;;  %v10950_v0 = vmax.f32 %v9283_v26, 0.0 }
 0xc44   :  { %v9520_v41 = vadd.f32 %v3749_v59, %v3337_v18  ;;  %v3838_v33 = vpop.f32.mrb[209].mxu1  ;;  %v3751_v6 = vpop.f32.mrb[210].mxu0  ;;  %v9536_v51 = vadd.f32 %v3836_v50, %v3368_v1  ;;  %v10947_v59 = vmax.f32 %v9271_v46, 0.0  ;;  %v10951_v46 = vmax.f32 %v9287_v30, 0.0 }
 0xc45   :  { %v9528_v34 = vadd.f32 %v3838_v33, %v3369_v22  ;;  %v9532_v38 = vadd.f32 %v3751_v6, %v3338_v15  ;;  %v3840_v24 = vpop.f32.mrb[210].mxu1  ;;  %v3753_v39 = vpop.f32.mrb[211].mxu0  ;;  %v3891_v21 = vmax.f32 %v9524_v62, 0.0  ;;  %v10948_v6 = vmax.f32 %v9275_v14, 0.0 }
 0xc46   :  { %v9540_v18 = vadd.f32 %v3840_v24, %v3370_v19  ;;  %v9544_v12 = vadd.f32 %v3753_v39, %v3339_v20  ;;  %v3842_v3 = vpop.f32.mrb[211].mxu1  ;;  %v3892_v22 = vmax.f32 %v9520_v41, 0.0  ;;  %v3923_v56 = vmax.f32 %v9536_v51, 0.0 }
 0xc47   :  { %v3893_v15 = vmax.f32 %v9532_v38, 0.0  ;;  %v9552_v45 = vadd.f32 %v3842_v3, %v10944_v57  ;;  %v3924_v20 = vmax.f32 %v9528_v34, 0.0  ;;  %v10949_v3 = vmax.f32 %v9279_v25, 0.0  ;;  %v7217_v38 = vld [vmem:[%s10591_s2 + $0x80] ss:$8 sps:$4 sm:$0x1f]  }
 0xc48   :  { %v3925_v9 = vmax.f32 %v9540_v18, 0.0  ;;  %v3894_v19 = vmax.f32 %v9544_v12, 0.0 }
 0xc49   :  { %v10768_v1 = vmax.f32 %v9552_v45, 0.0  ;;  %v3976_v10 = vpack.c.bf16 %v3893_v15, %v3891_v21 }
 0xc4a   :  { %v3977_v16 = vpack.c.bf16 %v3894_v19, %v3892_v22  ;;  %v3757_v55 = vpop.f32.mrb[212].mxu0  ;;  %v4157_v52 = vpack.c.bf16 %v3925_v9, %v3923_v56 }
 0xc4b   :  { %v4158_v4 = vpack.c.bf16 %v10768_v1, %v3924_v20  ;;  %v3846_v5 = vpop.f32.mrb[212].mxu1  ;;  %v3759_v8 = vpop.f32.mrb[213].mxu0  ;;  %v9584_v50 = vadd.f32 %v3757_v55, %v10946_v54 }
 0xc4c   :  { %v9580_v36 = vadd.f32 %v3759_v8, %v10945_v13  ;;  %v3848_v29 = vpop.f32.mrb[213].mxu1  ;;  %v3761_v37 = vpop.f32.mrb[214].mxu0  ;;  %4116 = vmatprep.mubr.bf16.mxu0 %v3977_v16  ;;  %v9596_v44 = vadd.f32 %v3846_v5, %v10949_v3 }
 0xc4d   :  { %v9588_v33 = vadd.f32 %v3848_v29, %v10947_v59  ;;  %v9592_v24 = vadd.f32 %v3761_v37, %v10948_v6  ;;  %v3850_v39 = vpop.f32.mrb[214].mxu1  ;;  %4197 = vmatprep.mubr.bf16.mxu1 %v4158_v4  ;;  %v3763_v2 = vpop.f32.mrb[215].mxu0  ;;  %4117 = vmatmul.mubr.bf16.vlgmr.msra.gmra.mrb[224].mxu0 %v3976_v10  ;;  %v10952_v4 = vmax.f32 %v9292_v53, 0.0  ;;  %v10766_v30 = vmax.f32 %v9584_v50, 0.0 }
 0xc4e   :  { %v9600_v57 = vadd.f32 %v3850_v39, %v10950_v0  ;;  %v9604_v16 = vadd.f32 %v3763_v2, %v10951_v46  ;;  %v3852_v55 = vpop.f32.mrb[215].mxu1  ;;  %4198 = vmatmul.mubr.bf16.vlgmr.msra.gmra.mrb[224].mxu1 %v4157_v52  ;;  %4269 = vmatpush1.bf16.msra.mxu0 %v4263_v11  ;;  %v10767_v25 = vmax.f32 %v9580_v36, 0.0  ;;  %v10754_v13 = vmax.f32 %v9596_v44, 0.0 }
 0xc4f   :  { %v10746_v14 = vmax.f32 %v9592_v24, 0.0  ;;  %v9609_v10 = vadd.f32 %v3852_v55, %v10952_v4  ;;  %4358 = vmatpush1.bf16.msra.mxu1 %v4263_v11  ;;  %v10765_v8 = vmax.f32 %v9588_v33, 0.0  ;;  %v10953_v39 = vmax.f32 %v9319_v47, 0.0 }
 0xc50   :  { %v10747_v26 = vmax.f32 %v9600_v57, 0.0  ;;  %v10745_v5 = vmax.f32 %v9604_v16, 0.0  ;;  %v10954_v46 = vmax.f32 %v9323_v49, 0.0  ;;  %v10955_v4 = vmax.f32 %v9327_v42, 0.0 }
 0xc51   :  { %v10744_v52 = vmax.f32 %v9609_v10, 0.0  ;;  %v3978_v29 = vpack.c.bf16 %v10746_v14, %v10766_v30  ;;  %v10958_v49 = vmax.f32 %v9339_v28, 0.0  ;;  %v10959_v42 = vmax.f32 %v9343_v61, 0.0 }
 0xc52   :  { %v3979_v53 = vpack.c.bf16 %v10745_v5, %v10767_v25  ;;  %v3767_v11 = vpop.f32.mrb[216].mxu0  ;;  %v4159_v6 = vpack.c.bf16 %v10747_v26, %v10754_v13  ;;  %v10956_v5 = vmax.f32 %v9331_v31, 0.0 }
 0xc53   :  { %v4160_v37 = vpack.c.bf16 %v10744_v52, %v10765_v8  ;;  %v3856_v54 = vpop.f32.mrb[216].mxu1  ;;  %v3769_v59 = vpop.f32.mrb[217].mxu0  ;;  %v9640_v55 = vadd.f32 %v3767_v11, %v10954_v46 }
 0xc54   :  { %v9636_v2 = vadd.f32 %v3769_v59, %v10953_v39  ;;  %v3858_v3 = vpop.f32.mrb[217].mxu1  ;;  %v3771_v0 = vpop.f32.mrb[218].mxu0  ;;  %4124 = vmatprep.mubr.bf16.mxu0 %v3979_v53  ;;  %v10957_v59 = vmax.f32 %v9335_v63, 0.0 }
 0xc55   :  { %v9644_v52 = vadd.f32 %v3858_v3, %v10955_v4  ;;  %v9648_v14 = vadd.f32 %v3771_v0, %v10956_v5  ;;  %v3860_v26 = vpop.f32.mrb[218].mxu1  ;;  %4205 = vmatprep.mubr.bf16.mxu1 %v4160_v37  ;;  %v3773_v47 = vpop.f32.mrb[219].mxu0  ;;  %4125 = vmatmul.mubr.bf16.gmra.mrb[228].mxu0 %v3978_v29  ;;  %v10960_v5 = vmax.f32 %v9348_v58, 0.0 }
 0xc56   :  { %v9652_v39 = vadd.f32 %v3856_v54, %v10957_v59  ;;  %v9656_v53 = vadd.f32 %v3860_v26, %v10958_v49  ;;  %v9660_v11 = vadd.f32 %v3773_v47, %v10959_v42  ;;  %v3862_v3 = vpop.f32.mrb[219].mxu1  ;;  %4206 = vmatmul.mubr.bf16.gmra.mrb[228].mxu1 %v4159_v6  ;;  %v10753_v63 = vmax.f32 %v9636_v2, 0.0 }
 0xc57   :  { %v10749_v31 = vmax.f32 %v9648_v14, 0.0  ;;  %v9665_v37 = vadd.f32 %v3862_v3, %v10960_v5  ;;  %v10750_v26 = vmax.f32 %v9640_v55, 0.0  ;;  %v10752_v61 = vmax.f32 %v9644_v52, 0.0 }
 0xc58   :  { %v10755_v29 = vmax.f32 %v9656_v53, 0.0  ;;  %v10748_v28 = vmax.f32 %v9660_v11, 0.0  ;;  %v10764_v6 = vmax.f32 %v9652_v39, 0.0  ;;  %v10961_v42 = vmax.f32 %v9375_v23, 0.0 }
 0xc59   :  { %v10751_v54 = vmax.f32 %v9665_v37, 0.0  ;;  %v3980_v46 = vpack.c.bf16 %v10749_v31, %v10750_v26  ;;  %v10962_v31 = vmax.f32 %v9379_v27, 0.0  ;;  %v10966_v27 = vmax.f32 %v9395_v43, 0.0 }
 0xc5a   :  { %v3981_v58 = vpack.c.bf16 %v10748_v28, %v10753_v63  ;;  %v3777_v0 = vpop.f32.mrb[220].mxu0  ;;  %v4161_v49 = vpack.c.bf16 %v10755_v29, %v10764_v6  ;;  %v10964_v63 = vmax.f32 %v9387_v48, 0.0 }
 0xc5b   :  { %v4162_v4 = vpack.c.bf16 %v10751_v54, %v10752_v61  ;;  %v3866_v47 = vpop.f32.mrb[220].mxu1  ;;  %v3779_v59 = vpop.f32.mrb[221].mxu0  ;;  %v9696_v26 = vadd.f32 %v3777_v0, %v10962_v31  ;;  %v10963_v54 = vmax.f32 %v9383_v60, 0.0  ;;  %v10967_v60 = vmax.f32 %v9399_v40, 0.0 }
 0xc5c   :  { %v9692_v3 = vadd.f32 %v3779_v59, %v10961_v42  ;;  %v3868_v5 = vpop.f32.mrb[221].mxu1  ;;  %v3781_v28 = vpop.f32.mrb[222].mxu0  ;;  %4132 = vmatprep.mubr.bf16.mxu0 %v3981_v58  ;;  %v10965_v59 = vmax.f32 %v9391_v35, 0.0 }
 0xc5d   :  { %v9700_v61 = vadd.f32 %v3868_v5, %v10963_v54  ;;  %v9704_v13 = vadd.f32 %v3781_v28, %v10964_v63  ;;  %v3870_v29 = vpop.f32.mrb[222].mxu1  ;;  %4213 = vmatprep.mubr.bf16.mxu1 %v4162_v4  ;;  %v3783_v23 = vpop.f32.mrb[223].mxu0  ;;  %4133 = vmatmul.mubr.bf16.gmra.mrb[232].mxu0 %v3980_v46  ;;  %v10968_v63 = vmax.f32 %v9404_v17, 0.0 }
 0xc5e   :  { %v9708_v42 = vadd.f32 %v3866_v47, %v10965_v59  ;;  %v9712_v31 = vadd.f32 %v3870_v29, %v10966_v27  ;;  %v9716_v54 = vadd.f32 %v3783_v23, %v10967_v60  ;;  %v3872_v58 = vpop.f32.mrb[223].mxu1  ;;  %4214 = vmatmul.mubr.bf16.gmra.mrb[232].mxu1 %v4161_v49  ;;  %v10763_v35 = vmax.f32 %v9692_v3, 0.0  ;;  %v7201_v23 = vld [vmem:[%s10590_s1 + $0x440] sm:$0xff]  }
 0xc5f   :  { %v10760_v48 = vmax.f32 %v9704_v13, 0.0  ;;  %v9721_v28 = vadd.f32 %v3872_v58, %v10968_v63  ;;  %v10762_v29 = vmax.f32 %v9696_v26, 0.0  ;;  %v10761_v40 = vmax.f32 %v9700_v61, 0.0  ;;  %6884 = vmatprep.subr.bf16.mxu0 %v7201_v23  ;;  %6924 = vmatprep.subr.bf16.mxu1 %v7201_v23  ;;  %v9754_v60 = vld [vmem:[%s10592_s3 + $0x7] ss:$0 sm:$0xff] }
 0xc60   :  { %v10758_v0 = vmax.f32 %v9712_v31, 0.0  ;;  %v10757_v43 = vmax.f32 %v9716_v54, 0.0  ;;  %v10759_v4 = vmax.f32 %v9708_v42, 0.0 }
 0xc61   :  { %v10756_v46 = vmax.f32 %v9721_v28, 0.0  ;;  %v3982_v47 = vpack.c.bf16 %v10760_v48, %v10762_v29 }
 0xc62   :  { %v3983_v17 = vpack.c.bf16 %v10757_v43, %v10763_v35  ;;  %v4163_v5 = vpack.c.bf16 %v10758_v0, %v10759_v4 }
 0xc63   :  { %v4164_v49 = vpack.c.bf16 %v10756_v46, %v10761_v40 }
 0xc64   :  { %4140 = vmatprep.mubr.bf16.mxu0 %v3983_v17 }
 0xc65   :  { %4221 = vmatprep.mubr.bf16.mxu1 %v4164_v49  ;;  %4141 = vmatmul.mubr.bf16.gmra.mrb[236].mxu0 %v3982_v47 }
 0xc66   :  { %4222 = vmatmul.mubr.bf16.gmra.mrb[236].mxu1 %v4163_v5  ;;  %4300 = vmatprep.mubr.bf16.mxu0 %v7312_v7 }
 0xc67   :  { %4389 = vmatprep.mubr.bf16.mxu1 %v7312_v7 }
 0xd20   :  { %v6820_v59 = vpop.f32.mrb[224].mxu0 }
 0xd21   :  { %v6860_v27 = vpop.f32.mrb[224].mxu1  ;;  %v6821_v58 = vpop.f32.mrb[225].mxu0 }
 0xd22   :  { %v6822_v63 = vadd.f32 %v6821_v58, %v6820_v59  ;;  %v6861_v17 = vpop.f32.mrb[225].mxu1  ;;  %v6823_v47 = vpop.f32.mrb[226].mxu0 }
 0xd23   :  { %v6862_v49 = vadd.f32 %v6861_v17, %v6860_v27  ;;  %v6863_v5 = vpop.f32.mrb[226].mxu1  ;;  %v6824_v46 = vpop.f32.mrb[227].mxu0 }
 0xd24   :  { %v4119_v43 = vadd.f32 %v6822_v63, %v9754_v60  ;;  %v6825_v0 = vadd.f32 %v6824_v46, %v6823_v47  ;;  %v6864_v4 = vpop.f32.mrb[227].mxu1  ;;  %v7202_v46 = vld [vmem:[%s10590_s1 + $0x400] sm:$0xff]  }
 0xd25   :  { %v4200_v23 = vadd.f32 %v6862_v49, %v9754_v60  ;;  %v6865_v48 = vadd.f32 %v6864_v4, %v6863_v5 }
 0xd26   :  { %v4122_v40 = vadd.f32 %v6825_v0, %v9754_v60  ;;  %v4149_v35 = vmax.f32 %v4119_v43, 0.0 }
 0xd27   :  { %v4203_v29 = vadd.f32 %v6865_v48, %v9754_v60  ;;  %v4230_v59 = vmax.f32 %v4200_v23, 0.0  ;;  %v7203_v48 = vld [vmem:[%s10590_s1 + $0x448] sm:$0xff]  }
 0xd28   :  { %v4150_v6 = vmax.f32 %v4122_v40, 0.0  ;;  %v6826_v8 = vpop.f32.mrb[228].mxu0 }
 0xd29   :  { %v4231_v58 = vmax.f32 %v4203_v29, 0.0  ;;  %v6866_v30 = vpop.f32.mrb[228].mxu1  ;;  %v6827_v27 = vpop.f32.mrb[229].mxu0 }
 0xd2a   :  { %v4238_v17 = vpack.c.bf16 %v4150_v6, %v4149_v35  ;;  %v6828_v25 = vadd.f32 %v6827_v27, %v6826_v8  ;;  %v6867_v1 = vpop.f32.mrb[229].mxu1  ;;  %v6829_v63 = vpop.f32.mrb[230].mxu0  ;;  %v7205_v35 = vld [vmem:[%s10590_s1 + $0x450] sm:$0xff]  }
 0xd2b   :  { %v4341_v4 = vpack.c.bf16 %v4231_v58, %v4230_v59  ;;  %v6868_v47 = vadd.f32 %v6867_v1, %v6866_v30  ;;  %v6869_v0 = vpop.f32.mrb[230].mxu1  ;;  %v6830_v49 = vpop.f32.mrb[231].mxu0 }
 0xd2c   :  { %v4127_v43 = vadd.f32 %v6828_v25, %v9754_v60  ;;  %v6831_v29 = vadd.f32 %v6830_v49, %v6829_v63  ;;  %v6870_v40 = vpop.f32.mrb[231].mxu1  ;;  %6114 = vmatmul.mubr.msk.bf16.vlgmr.msra.gmra.mrb[240].mxu0 %vm360_vm2, %v4238_v17  ;;  %v7204_v25 = vld [vmem:[%s10590_s1 + $0x408] sm:$0xff]  }
 0xd2d   :  { %v4208_v8 = vadd.f32 %v6868_v47, %v9754_v60  ;;  %v6871_v6 = vadd.f32 %v6870_v40, %v6869_v0  ;;  %6118 = vmatmul.mubr.msk.bf16.vlgmr.msra.gmra.mrb[240].mxu1 %vm360_vm2, %v4341_v4  ;;  %4310 = vmatprep.mubr.bf16.mxu0 %v7312_v7 }
 0xd2e   :  { %v4130_v1 = vadd.f32 %v6831_v29, %v9754_v60  ;;  %4399 = vmatprep.mubr.bf16.mxu1 %v7312_v7  ;;  %6885 = vmatpush3.bf16.msra.mxu0 %v7202_v46  ;;  %v4151_v5 = vmax.f32 %v4127_v43, 0.0 }
 0xd2f   :  { %v4211_v30 = vadd.f32 %v6871_v6, %v9754_v60  ;;  %6925 = vmatpush3.bf16.msra.mxu1 %v7202_v46  ;;  %6886 = vmatprep.subr.bf16.mxu0 %v7203_v48  ;;  %v4232_v58 = vmax.f32 %v4208_v8, 0.0  ;;  %v7206_v46 = vld [vmem:[%s10590_s1 + $0x410] sm:$0xff]  }
 0xd30   :  { %v4152_v23 = vmax.f32 %v4130_v1, 0.0  ;;  %v6832_v59 = vpop.f32.mrb[232].mxu0  ;;  %6926 = vmatprep.subr.bf16.mxu1 %v7203_v48  ;;  %v7207_v48 = vld [vmem:[%s10590_s1 + $0x458] sm:$0xff]  }
 0xd31   :  { %v4233_v27 = vmax.f32 %v4211_v30, 0.0  ;;  %v6872_v17 = vpop.f32.mrb[232].mxu1  ;;  %v6833_v63 = vpop.f32.mrb[233].mxu0 }
 0xd32   :  { %v4239_v4 = vpack.c.bf16 %v4152_v23, %v4151_v5  ;;  %v6834_v47 = vadd.f32 %v6833_v63, %v6832_v59  ;;  %v6873_v0 = vpop.f32.mrb[233].mxu1  ;;  %v6835_v49 = vpop.f32.mrb[234].mxu0  ;;  %6887 = vmatpush3.bf16.msra.mxu0 %v7204_v25  ;;  %v7208_v59 = vld [vmem:[%s10590_s1 + $0x418] sm:$0xff]  }
 0xd33   :  { %v4342_v29 = vpack.c.bf16 %v4233_v27, %v4232_v58  ;;  %v6874_v40 = vadd.f32 %v6873_v0, %v6872_v17  ;;  %v6875_v6 = vpop.f32.mrb[234].mxu1  ;;  %v6836_v43 = vpop.f32.mrb[235].mxu0  ;;  %6927 = vmatpush3.bf16.msra.mxu1 %v7204_v25  ;;  %6888 = vmatprep.subr.bf16.mxu0 %v7205_v35 }
 0xd34   :  { %v4135_v8 = vadd.f32 %v6834_v47, %v9754_v60  ;;  %v6837_v1 = vadd.f32 %v6836_v43, %v6835_v49  ;;  %v6876_v30 = vpop.f32.mrb[235].mxu1  ;;  %6115 = vmatmul.mubr.msk.bf16.gmra.mrb[244].mxu0 %vm360_vm2, %v4239_v4  ;;  %6928 = vmatprep.subr.bf16.mxu1 %v7205_v35  ;;  %v7209_v35 = vld [vmem:[%s10590_s1 + $0x460] sm:$0xff]  }
 0xd35   :  { %v4216_v5 = vadd.f32 %v6874_v40, %v9754_v60  ;;  %v6877_v23 = vadd.f32 %v6876_v30, %v6875_v6  ;;  %6119 = vmatmul.mubr.msk.bf16.gmra.mrb[244].mxu1 %vm360_vm2, %v4342_v29  ;;  %4320 = vmatprep.mubr.bf16.mxu0 %v7312_v7 }
 0xd36   :  { %v4138_v25 = vadd.f32 %v6837_v1, %v9754_v60  ;;  %4409 = vmatprep.mubr.bf16.mxu1 %v7312_v7  ;;  %6889 = vmatpush3.bf16.msra.mxu0 %v7206_v46  ;;  %v4153_v27 = vmax.f32 %v4135_v8, 0.0 }
 0xd37   :  { %v4219_v58 = vadd.f32 %v6877_v23, %v9754_v60  ;;  %6929 = vmatpush3.bf16.msra.mxu1 %v7206_v46  ;;  %6890 = vmatprep.subr.bf16.mxu0 %v7207_v48  ;;  %v4234_v4 = vmax.f32 %v4216_v5, 0.0  ;;  %v7210_v46 = vld [vmem:[%s10590_s1 + $0x420] sm:$0xff]  }
 0xd38   :  { %v4154_v17 = vmax.f32 %v4138_v25, 0.0  ;;  %v6838_v63 = vpop.f32.mrb[236].mxu0  ;;  %6930 = vmatprep.subr.bf16.mxu1 %v7207_v48  ;;  %v7211_v48 = vld [vmem:[%s10590_s1 + $0x468] sm:$0xff]  }
 0xd39   :  { %v4235_v47 = vmax.f32 %v4219_v58, 0.0  ;;  %v6878_v0 = vpop.f32.mrb[236].mxu1  ;;  %v6839_v49 = vpop.f32.mrb[237].mxu0 }
 0xd3a   :  { %v4240_v29 = vpack.c.bf16 %v4154_v17, %v4153_v27  ;;  %v6840_v40 = vadd.f32 %v6839_v49, %v6838_v63  ;;  %v6879_v6 = vpop.f32.mrb[237].mxu1  ;;  %v6841_v43 = vpop.f32.mrb[238].mxu0  ;;  %6891 = vmatpush3.bf16.msra.mxu0 %v7208_v59  ;;  %v7212_v63 = vld [vmem:[%s10590_s1 + $0x428] sm:$0xff]  }
 0xd3b   :  { %v4343_v1 = vpack.c.bf16 %v4235_v47, %v4234_v4  ;;  %v6880_v30 = vadd.f32 %v6879_v6, %v6878_v0  ;;  %v6881_v23 = vpop.f32.mrb[238].mxu1  ;;  %v6842_v8 = vpop.f32.mrb[239].mxu0  ;;  %6931 = vmatpush3.bf16.msra.mxu1 %v7208_v59  ;;  %6892 = vmatprep.subr.bf16.mxu0 %v7209_v35  ;;  %v7213_v6 = vld [vmem:[%s10590_s1 + $0x470] sm:$0xff]  }
 0xd3c   :  { %v4143_v5 = vadd.f32 %v6840_v40, %v9754_v60  ;;  %v6843_v25 = vadd.f32 %v6842_v8, %v6841_v43  ;;  %v6882_v58 = vpop.f32.mrb[239].mxu1  ;;  %6116 = vmatmul.mubr.msk.bf16.gmra.mrb[248].mxu0 %vm360_vm2, %v4240_v29  ;;  %6932 = vmatprep.subr.bf16.mxu1 %v7209_v35  ;;  %v7215_v43 = vld [vmem:[%s10590_s1 + $0x478] sm:$0xff]  }
 0xd3d   :  { %v4224_v27 = vadd.f32 %v6880_v30, %v9754_v60  ;;  %v6883_v17 = vadd.f32 %v6882_v58, %v6881_v23  ;;  %6120 = vmatmul.mubr.msk.bf16.gmra.mrb[248].mxu1 %vm360_vm2, %v4343_v1  ;;  %4330 = vmatprep.mubr.bf16.mxu0 %v7312_v7  ;;  %v7219_v1 = vld [vmem:[%s10591_s2 + $0x84] ss:$8 sps:$4 sm:$0x1f]  }
 0xd3e   :  { %v4146_v59 = vadd.f32 %v6843_v25, %v9754_v60  ;;  %4419 = vmatprep.mubr.bf16.mxu1 %v7312_v7  ;;  %6893 = vmatpush3.bf16.msra.mxu0 %v7210_v46  ;;  %v4155_v35 = vmax.f32 %v4143_v5, 0.0  ;;  %v4821_v30 = vand.u32 %v7219_v1, %v7425_v32 }
 0xd3f   :  { %v4227_v4 = vadd.f32 %v6883_v17, %v9754_v60  ;;  %6933 = vmatpush3.bf16.msra.mxu1 %v7210_v46  ;;  %6894 = vmatprep.subr.bf16.mxu0 %v7211_v48  ;;  %v4236_v0 = vmax.f32 %v4224_v27, 0.0  ;;  %v7214_v60 = vld [vmem:[%s10590_s1 + $0x430] sm:$0xff]   ;;  %v7216_v46 = vld [vmem:[%s10590_s1 + $0x438] sm:$0xff]  }
 0xd40   :  { %v4156_v47 = vmax.f32 %v4146_v59, 0.0  ;;  %6934 = vmatprep.subr.bf16.mxu1 %v7211_v48 }
 0xd41   :  { %v4237_v49 = vmax.f32 %v4227_v4, 0.0 }
 0xd42   :  { %v4241_v29 = vpack.c.bf16 %v4156_v47, %v4155_v35  ;;  %6895 = vmatpush3.bf16.msra.mxu0 %v7212_v63 }
 0xd43   :  { %v4344_v40 = vpack.c.bf16 %v4237_v49, %v4236_v0  ;;  %6935 = vmatpush3.bf16.msra.mxu1 %v7212_v63  ;;  %6896 = vmatprep.subr.bf16.mxu0 %v7213_v6  ;;  %v4818_v0 = vand.u32 %v7217_v38, %v7425_v32 }
 0xd44   :  { %6117 = vmatmul.mubr.msk.bf16.gmra.mrb[252].mxu0 %vm360_vm2, %v4241_v29  ;;  %6936 = vmatprep.subr.bf16.mxu1 %v7213_v6 }
 0xd45   :  { %6121 = vmatmul.mubr.msk.bf16.gmra.mrb[252].mxu1 %vm360_vm2, %v4344_v40 }
 0xd46   :  { %6897 = vmatpush3.bf16.msra.mxu0 %v7214_v60 }
 0xd47   :  { %6937 = vmatpush3.bf16.msra.mxu1 %v7214_v60  ;;  %6898 = vmatprep.subr.bf16.mxu0 %v7215_v43 }
 0xd48   :  { %6938 = vmatprep.subr.bf16.mxu1 %v7215_v43  ;;  %v10970_v43 = vmax.f32 %v9580_v36, 0.0 }
 0xd4a   :  { %6899 = vmatpush3.bf16.msra.mxu0 %v7216_v46 }
 0xd4b   :  { %6939 = vmatpush3.bf16.msra.mxu1 %v7216_v46  ;;  %4823 = vmatprep.subr.bf16.mxu0 %v4821_v30 }
 0xd4c   :  { %4912 = vmatprep.subr.bf16.mxu1 %v4821_v30 }
 0xdff   :  { %v4302_v23 = vpop.f32.mrb[240].mxu0 }
 0xe00   :  { %v4391_v8 = vpop.f32.mrb[240].mxu1  ;;  %v4304_v48 = vpop.f32.mrb[241].mxu0  ;;  %v9841_v27 = vadd.f32 %v4302_v23, %v3891_v21  ;;  %v10969_v21 = vmax.f32 %v9552_v45, 0.0  ;;  %v10971_v23 = vmax.f32 %v9584_v50, 0.0  ;;  %v10975_v50 = vmax.f32 %v9600_v57, 0.0 }
 0xe01   :  { %v9837_v5 = vadd.f32 %v4304_v48, %v3892_v22  ;;  %v4393_v25 = vpop.f32.mrb[241].mxu1  ;;  %v4306_v58 = vpop.f32.mrb[242].mxu0  ;;  %v9853_v41 = vadd.f32 %v4391_v8, %v3923_v56  ;;  %v10972_v48 = vmax.f32 %v9588_v33, 0.0  ;;  %v10976_v33 = vmax.f32 %v9604_v16, 0.0 }
 0xe02   :  { %v9845_v17 = vadd.f32 %v4393_v25, %v3924_v20  ;;  %v9849_v59 = vadd.f32 %v4306_v58, %v3893_v15  ;;  %v4395_v63 = vpop.f32.mrb[242].mxu1  ;;  %v4308_v4 = vpop.f32.mrb[243].mxu0  ;;  %v4446_v12 = vmax.f32 %v9841_v27, 0.0  ;;  %v10973_v58 = vmax.f32 %v9592_v24, 0.0 }
 0xe03   :  { %v9857_v22 = vadd.f32 %v4395_v63, %v3925_v9  ;;  %v9861_v62 = vadd.f32 %v4308_v4, %v3894_v19  ;;  %v4397_v34 = vpop.f32.mrb[243].mxu1  ;;  %v4447_v20 = vmax.f32 %v9837_v5, 0.0  ;;  %v4478_v35 = vmax.f32 %v9853_v41, 0.0 }
 0xe04   :  { %v4448_v15 = vmax.f32 %v9849_v59, 0.0  ;;  %v9869_v51 = vadd.f32 %v4397_v34, %v10969_v21  ;;  %v4479_v19 = vmax.f32 %v9845_v17, 0.0  ;;  %v10974_v34 = vmax.f32 %v9596_v44, 0.0  ;;  %v7236_v59 = vld [vmem:[%s10591_s2 + $0x90] ss:$8 sps:$4 sm:$0x1f]  }
 0xe05   :  { %v4480_v18 = vmax.f32 %v9857_v22, 0.0  ;;  %v4449_v9 = vmax.f32 %v9861_v62, 0.0 }
 0xe06   :  { %v10793_v56 = vmax.f32 %v9869_v51, 0.0  ;;  %v4531_v49 = vpack.c.bf16 %v4448_v15, %v4446_v12 }
 0xe07   :  { %v4532_v45 = vpack.c.bf16 %v4449_v9, %v4447_v20  ;;  %v4312_v47 = vpop.f32.mrb[244].mxu0  ;;  %v4712_v60 = vpack.c.bf16 %v4480_v18, %v4478_v35 }
 0xe08   :  { %v4713_v29 = vpack.c.bf16 %v10793_v56, %v4479_v19  ;;  %v4401_v40 = vpop.f32.mrb[244].mxu1  ;;  %v4314_v6 = vpop.f32.mrb[245].mxu0  ;;  %v9901_v8 = vadd.f32 %v4312_v47, %v10971_v23 }
 0xe09   :  { %v9897_v46 = vadd.f32 %v4314_v6, %v10970_v43  ;;  %v4403_v1 = vpop.f32.mrb[245].mxu1  ;;  %v4316_v30 = vpop.f32.mrb[246].mxu0  ;;  %4671 = vmatprep.mubr.bf16.mxu0 %v4532_v45  ;;  %v9913_v38 = vadd.f32 %v4401_v40, %v10974_v34 }
 0xe0a   :  { %v9905_v25 = vadd.f32 %v4403_v1, %v10972_v48  ;;  %v9909_v63 = vadd.f32 %v4316_v30, %v10973_v58  ;;  %v4405_v4 = vpop.f32.mrb[246].mxu1  ;;  %4752 = vmatprep.mubr.bf16.mxu1 %v4713_v29  ;;  %v4318_v36 = vpop.f32.mrb[247].mxu0  ;;  %4672 = vmatmul.mubr.bf16.vlgmr.msra.gmra.mrb[0].mxu0 %v4531_v49  ;;  %v10977_v29 = vmax.f32 %v9609_v10, 0.0  ;;  %v10791_v16 = vmax.f32 %v9901_v8, 0.0 }
 0xe0b   :  { %v9917_v21 = vadd.f32 %v4405_v4, %v10975_v50  ;;  %v9921_v45 = vadd.f32 %v4318_v36, %v10976_v33  ;;  %v4407_v47 = vpop.f32.mrb[247].mxu1  ;;  %4753 = vmatmul.mubr.bf16.vlgmr.msra.gmra.mrb[0].mxu1 %v4712_v60  ;;  %4824 = vmatpush1.bf16.msra.mxu0 %v4818_v0  ;;  %v10792_v44 = vmax.f32 %v9897_v46, 0.0  ;;  %v10779_v43 = vmax.f32 %v9913_v38, 0.0 }
 0xe0c   :  { %v10771_v24 = vmax.f32 %v9909_v63, 0.0  ;;  %v9926_v49 = vadd.f32 %v4407_v47, %v10977_v29  ;;  %4913 = vmatpush1.bf16.msra.mxu1 %v4818_v0  ;;  %v10790_v6 = vmax.f32 %v9905_v25, 0.0  ;;  %v10978_v4 = vmax.f32 %v9636_v2, 0.0 }
 0xe0d   :  { %v10772_v57 = vmax.f32 %v9917_v21, 0.0  ;;  %v10770_v40 = vmax.f32 %v9921_v45, 0.0  ;;  %v10979_v33 = vmax.f32 %v9640_v55, 0.0  ;;  %v10980_v29 = vmax.f32 %v9644_v52, 0.0 }
 0xe0e   :  { %v10769_v60 = vmax.f32 %v9926_v49, 0.0  ;;  %v4533_v1 = vpack.c.bf16 %v10771_v24, %v10791_v16  ;;  %v10983_v55 = vmax.f32 %v9656_v53, 0.0  ;;  %v10984_v52 = vmax.f32 %v9660_v11, 0.0 }
 0xe0f   :  { %v4534_v10 = vpack.c.bf16 %v10770_v40, %v10792_v44  ;;  %v4322_v0 = vpop.f32.mrb[248].mxu0  ;;  %v4714_v58 = vpack.c.bf16 %v10772_v57, %v10779_v43  ;;  %v10981_v40 = vmax.f32 %v9648_v14, 0.0 }
 0xe10   :  { %v4715_v30 = vpack.c.bf16 %v10769_v60, %v10790_v6  ;;  %v4411_v23 = vpop.f32.mrb[248].mxu1  ;;  %v4324_v48 = vpop.f32.mrb[249].mxu0  ;;  %v9957_v47 = vadd.f32 %v4322_v0, %v10979_v33 }
 0xe11   :  { %v9953_v36 = vadd.f32 %v4324_v48, %v10978_v4  ;;  %v4413_v34 = vpop.f32.mrb[249].mxu1  ;;  %v4326_v50 = vpop.f32.mrb[250].mxu0  ;;  %4679 = vmatprep.mubr.bf16.mxu0 %v4534_v10  ;;  %v10982_v48 = vmax.f32 %v9652_v39, 0.0 }
 0xe12   :  { %v9961_v60 = vadd.f32 %v4413_v34, %v10980_v29  ;;  %v9965_v24 = vadd.f32 %v4326_v50, %v10981_v40  ;;  %v4415_v57 = vpop.f32.mrb[250].mxu1  ;;  %4760 = vmatprep.mubr.bf16.mxu1 %v4715_v30  ;;  %v4328_v2 = vpop.f32.mrb[251].mxu0  ;;  %4680 = vmatmul.mubr.bf16.gmra.mrb[4].mxu0 %v4533_v1  ;;  %v10985_v40 = vmax.f32 %v9665_v37, 0.0 }
 0xe13   :  { %v9969_v4 = vadd.f32 %v4411_v23, %v10982_v48  ;;  %v9973_v10 = vadd.f32 %v4415_v57, %v10983_v55  ;;  %v9977_v0 = vadd.f32 %v4328_v2, %v10984_v52  ;;  %v4417_v34 = vpop.f32.mrb[251].mxu1  ;;  %4761 = vmatmul.mubr.bf16.gmra.mrb[4].mxu1 %v4714_v58  ;;  %v10778_v39 = vmax.f32 %v9953_v36, 0.0 }
 0xe14   :  { %v10774_v14 = vmax.f32 %v9965_v24, 0.0  ;;  %v9982_v30 = vadd.f32 %v4417_v34, %v10985_v40  ;;  %v10775_v57 = vmax.f32 %v9957_v47, 0.0  ;;  %v10777_v11 = vmax.f32 %v9961_v60, 0.0 }
 0xe15   :  { %v10780_v1 = vmax.f32 %v9973_v10, 0.0  ;;  %v10773_v53 = vmax.f32 %v9977_v0, 0.0  ;;  %v10789_v58 = vmax.f32 %v9969_v4, 0.0  ;;  %v10986_v52 = vmax.f32 %v9692_v3, 0.0 }
 0xe16   :  { %v10776_v23 = vmax.f32 %v9982_v30, 0.0  ;;  %v4535_v33 = vpack.c.bf16 %v10774_v14, %v10775_v57  ;;  %v10987_v14 = vmax.f32 %v9696_v26, 0.0  ;;  %v10991_v26 = vmax.f32 %v9712_v31, 0.0 }
 0xe17   :  { %v4536_v37 = vpack.c.bf16 %v10773_v53, %v10778_v39  ;;  %v4332_v50 = vpop.f32.mrb[252].mxu0  ;;  %v4716_v55 = vpack.c.bf16 %v10780_v1, %v10789_v58  ;;  %v10989_v39 = vmax.f32 %v9704_v13, 0.0 }
 0xe18   :  { %v4717_v29 = vpack.c.bf16 %v10776_v23, %v10777_v11  ;;  %v4421_v2 = vpop.f32.mrb[252].mxu1  ;;  %v4334_v48 = vpop.f32.mrb[253].mxu0  ;;  %v10013_v57 = vadd.f32 %v4332_v50, %v10987_v14  ;;  %v10988_v23 = vmax.f32 %v9700_v61, 0.0  ;;  %v10992_v61 = vmax.f32 %v9716_v54, 0.0 }
 0xe19   :  { %v10009_v34 = vadd.f32 %v4334_v48, %v10986_v52  ;;  %v4423_v40 = vpop.f32.mrb[253].mxu1  ;;  %v4336_v53 = vpop.f32.mrb[254].mxu0  ;;  %4687 = vmatprep.mubr.bf16.mxu0 %v4536_v37  ;;  %v10990_v48 = vmax.f32 %v9708_v42, 0.0 }
 0xe1a   :  { %v10017_v11 = vadd.f32 %v4423_v40, %v10988_v23  ;;  %v10021_v43 = vadd.f32 %v4336_v53, %v10989_v39  ;;  %v4425_v1 = vpop.f32.mrb[254].mxu1  ;;  %4768 = vmatprep.mubr.bf16.mxu1 %v4717_v29  ;;  %v4338_v3 = vpop.f32.mrb[255].mxu0  ;;  %4688 = vmatmul.mubr.bf16.gmra.mrb[8].mxu0 %v4535_v33  ;;  %v10993_v39 = vmax.f32 %v9721_v28, 0.0 }
 0xe1b   :  { %v10025_v52 = vadd.f32 %v4421_v2, %v10990_v48  ;;  %v10029_v14 = vadd.f32 %v4425_v1, %v10991_v26  ;;  %v10033_v23 = vadd.f32 %v4338_v3, %v10992_v61  ;;  %v4427_v37 = vpop.f32.mrb[255].mxu1  ;;  %4769 = vmatmul.mubr.bf16.gmra.mrb[8].mxu1 %v4716_v55  ;;  %v10788_v42 = vmax.f32 %v10009_v34, 0.0  ;;  %v7220_v3 = vld [vmem:[%s10590_s1 + $0x4c0] sm:$0xff]   ;;  %v10071_v61 = vld [vmem:[%s10592_s3 + $0x8] ss:$0 sm:$0xff] }
 0xe1c   :  { %v10785_v13 = vmax.f32 %v10021_v43, 0.0  ;;  %v10038_v53 = vadd.f32 %v4427_v37, %v10993_v39  ;;  %v10787_v1 = vmax.f32 %v10013_v57, 0.0  ;;  %v10786_v54 = vmax.f32 %v10017_v11, 0.0  ;;  %6964 = vmatprep.subr.bf16.mxu0 %v7220_v3  ;;  %7004 = vmatprep.subr.bf16.mxu1 %v7220_v3 }
 0xe1d   :  { %v10783_v50 = vmax.f32 %v10029_v14, 0.0  ;;  %v10782_v31 = vmax.f32 %v10033_v23, 0.0  ;;  %v10784_v29 = vmax.f32 %v10025_v52, 0.0 }
 0xe1e   :  { %v10781_v33 = vmax.f32 %v10038_v53, 0.0  ;;  %v4537_v2 = vpack.c.bf16 %v10785_v13, %v10787_v1 }
 0xe1f   :  { %v4538_v28 = vpack.c.bf16 %v10782_v31, %v10788_v42  ;;  %v4718_v40 = vpack.c.bf16 %v10783_v50, %v10784_v29 }
 0xe20   :  { %v4719_v55 = vpack.c.bf16 %v10781_v33, %v10786_v54 }
 0xe21   :  { %4695 = vmatprep.mubr.bf16.mxu0 %v4538_v28 }
 0xe22   :  { %4776 = vmatprep.mubr.bf16.mxu1 %v4719_v55  ;;  %4696 = vmatmul.mubr.bf16.gmra.mrb[12].mxu0 %v4537_v2 }
 0xe23   :  { %4777 = vmatmul.mubr.bf16.gmra.mrb[12].mxu1 %v4718_v40  ;;  %4855 = vmatprep.mubr.bf16.mxu0 %v7312_v7 }
 0xe24   :  { %4944 = vmatprep.mubr.bf16.mxu1 %v7312_v7 }
 0xedd   :  { %v6900_v48 = vpop.f32.mrb[0].mxu0 }
 0xede   :  { %v6940_v26 = vpop.f32.mrb[0].mxu1  ;;  %v6901_v37 = vpop.f32.mrb[1].mxu0 }
 0xedf   :  { %v6902_v39 = vadd.f32 %v6901_v37, %v6900_v48  ;;  %v6941_v28 = vpop.f32.mrb[1].mxu1  ;;  %v6903_v2 = vpop.f32.mrb[2].mxu0 }
 0xee0   :  { %v6942_v55 = vadd.f32 %v6941_v28, %v6940_v26  ;;  %v6943_v40 = vpop.f32.mrb[2].mxu1  ;;  %v6904_v33 = vpop.f32.mrb[3].mxu0 }
 0xee1   :  { %v4674_v31 = vadd.f32 %v6902_v39, %v10071_v61  ;;  %v6905_v50 = vadd.f32 %v6904_v33, %v6903_v2  ;;  %v6944_v29 = vpop.f32.mrb[3].mxu1  ;;  %v7221_v33 = vld [vmem:[%s10590_s1 + $0x480] sm:$0xff]  }
 0xee2   :  { %v4755_v3 = vadd.f32 %v6942_v55, %v10071_v61  ;;  %v6945_v13 = vadd.f32 %v6944_v29, %v6943_v40 }
 0xee3   :  { %v4677_v54 = vadd.f32 %v6905_v50, %v10071_v61  ;;  %v4704_v42 = vmax.f32 %v4674_v31, 0.0 }
 0xee4   :  { %v4758_v1 = vadd.f32 %v6945_v13, %v10071_v61  ;;  %v4785_v48 = vmax.f32 %v4755_v3, 0.0  ;;  %v7222_v13 = vld [vmem:[%s10590_s1 + $0x4c8] sm:$0xff]  }
 0xee5   :  { %v4705_v58 = vmax.f32 %v4677_v54, 0.0  ;;  %v6906_v6 = vpop.f32.mrb[4].mxu0 }
 0xee6   :  { %v4786_v37 = vmax.f32 %v4758_v1, 0.0  ;;  %v6946_v16 = vpop.f32.mrb[4].mxu1  ;;  %v6907_v26 = vpop.f32.mrb[5].mxu0 }
 0xee7   :  { %v4793_v28 = vpack.c.bf16 %v4705_v58, %v4704_v42  ;;  %v6908_v44 = vadd.f32 %v6907_v26, %v6906_v6  ;;  %v6947_v56 = vpop.f32.mrb[5].mxu1  ;;  %v6909_v39 = vpop.f32.mrb[6].mxu0  ;;  %v7224_v42 = vld [vmem:[%s10590_s1 + $0x4d0] sm:$0xff]  }
 0xee8   :  { %v4896_v29 = vpack.c.bf16 %v4786_v37, %v4785_v48  ;;  %v6948_v2 = vadd.f32 %v6947_v56, %v6946_v16  ;;  %v6949_v50 = vpop.f32.mrb[6].mxu1  ;;  %v6910_v55 = vpop.f32.mrb[7].mxu0 }
 0xee9   :  { %v4682_v31 = vadd.f32 %v6908_v44, %v10071_v61  ;;  %v6911_v1 = vadd.f32 %v6910_v55, %v6909_v39  ;;  %v6950_v54 = vpop.f32.mrb[7].mxu1  ;;  %6175 = vmatmul.mubr.msk.bf16.vlgmr.msra.gmra.mrb[16].mxu0 %vm360_vm2, %v4793_v28  ;;  %v7223_v44 = vld [vmem:[%s10590_s1 + $0x488] sm:$0xff]  }
 0xeea   :  { %v4763_v6 = vadd.f32 %v6948_v2, %v10071_v61  ;;  %v6951_v58 = vadd.f32 %v6950_v54, %v6949_v50  ;;  %6179 = vmatmul.mubr.msk.bf16.vlgmr.msra.gmra.mrb[16].mxu1 %vm360_vm2, %v4896_v29  ;;  %4865 = vmatprep.mubr.bf16.mxu0 %v7312_v7 }
 0xeeb   :  { %v4685_v56 = vadd.f32 %v6911_v1, %v10071_v61  ;;  %4954 = vmatprep.mubr.bf16.mxu1 %v7312_v7  ;;  %6965 = vmatpush3.bf16.msra.mxu0 %v7221_v33  ;;  %v4706_v40 = vmax.f32 %v4682_v31, 0.0 }
 0xeec   :  { %v4766_v16 = vadd.f32 %v6951_v58, %v10071_v61  ;;  %7005 = vmatpush3.bf16.msra.mxu1 %v7221_v33  ;;  %6966 = vmatprep.subr.bf16.mxu0 %v7222_v13  ;;  %v4787_v37 = vmax.f32 %v4763_v6, 0.0  ;;  %v7225_v33 = vld [vmem:[%s10590_s1 + $0x490] sm:$0xff]  }
 0xeed   :  { %v4707_v3 = vmax.f32 %v4685_v56, 0.0  ;;  %v6912_v48 = vpop.f32.mrb[8].mxu0  ;;  %7006 = vmatprep.subr.bf16.mxu1 %v7222_v13  ;;  %v7226_v13 = vld [vmem:[%s10590_s1 + $0x4d8] sm:$0xff]  }
 0xeee   :  { %v4788_v26 = vmax.f32 %v4766_v16, 0.0  ;;  %v6952_v28 = vpop.f32.mrb[8].mxu1  ;;  %v6913_v39 = vpop.f32.mrb[9].mxu0 }
 0xeef   :  { %v4794_v29 = vpack.c.bf16 %v4707_v3, %v4706_v40  ;;  %v6914_v2 = vadd.f32 %v6913_v39, %v6912_v48  ;;  %v6953_v50 = vpop.f32.mrb[9].mxu1  ;;  %v6915_v55 = vpop.f32.mrb[10].mxu0  ;;  %6967 = vmatpush3.bf16.msra.mxu0 %v7223_v44  ;;  %v7227_v48 = vld [vmem:[%s10590_s1 + $0x498] sm:$0xff]  }
 0xef0   :  { %v4897_v1 = vpack.c.bf16 %v4788_v26, %v4787_v37  ;;  %v6954_v54 = vadd.f32 %v6953_v50, %v6952_v28  ;;  %v6955_v58 = vpop.f32.mrb[10].mxu1  ;;  %v6916_v31 = vpop.f32.mrb[11].mxu0  ;;  %7007 = vmatpush3.bf16.msra.mxu1 %v7223_v44  ;;  %6968 = vmatprep.subr.bf16.mxu0 %v7224_v42 }
 0xef1   :  { %v4690_v6 = vadd.f32 %v6914_v2, %v10071_v61  ;;  %v6917_v56 = vadd.f32 %v6916_v31, %v6915_v55  ;;  %v6956_v16 = vpop.f32.mrb[11].mxu1  ;;  %6176 = vmatmul.mubr.msk.bf16.gmra.mrb[20].mxu0 %vm360_vm2, %v4794_v29  ;;  %7008 = vmatprep.subr.bf16.mxu1 %v7224_v42  ;;  %v7228_v42 = vld [vmem:[%s10590_s1 + $0x4e0] sm:$0xff]  }
 0xef2   :  { %v4771_v40 = vadd.f32 %v6954_v54, %v10071_v61  ;;  %v6957_v3 = vadd.f32 %v6956_v16, %v6955_v58  ;;  %6180 = vmatmul.mubr.msk.bf16.gmra.mrb[20].mxu1 %vm360_vm2, %v4897_v1  ;;  %4875 = vmatprep.mubr.bf16.mxu0 %v7312_v7 }
 0xef3   :  { %v4693_v44 = vadd.f32 %v6917_v56, %v10071_v61  ;;  %4964 = vmatprep.mubr.bf16.mxu1 %v7312_v7  ;;  %6969 = vmatpush3.bf16.msra.mxu0 %v7225_v33  ;;  %v4708_v26 = vmax.f32 %v4690_v6, 0.0 }
 0xef4   :  { %v4774_v37 = vadd.f32 %v6957_v3, %v10071_v61  ;;  %7009 = vmatpush3.bf16.msra.mxu1 %v7225_v33  ;;  %6970 = vmatprep.subr.bf16.mxu0 %v7226_v13  ;;  %v4789_v29 = vmax.f32 %v4771_v40, 0.0  ;;  %v7229_v33 = vld [vmem:[%s10590_s1 + $0x4a0] sm:$0xff]  }
 0xef5   :  { %v4709_v28 = vmax.f32 %v4693_v44, 0.0  ;;  %v6918_v39 = vpop.f32.mrb[12].mxu0  ;;  %7010 = vmatprep.subr.bf16.mxu1 %v7226_v13  ;;  %v7230_v13 = vld [vmem:[%s10590_s1 + $0x4e8] sm:$0xff]  }
 0xef6   :  { %v4790_v2 = vmax.f32 %v4774_v37, 0.0  ;;  %v6958_v50 = vpop.f32.mrb[12].mxu1  ;;  %v6919_v55 = vpop.f32.mrb[13].mxu0 }
 0xef7   :  { %v4795_v1 = vpack.c.bf16 %v4709_v28, %v4708_v26  ;;  %v6920_v54 = vadd.f32 %v6919_v55, %v6918_v39  ;;  %v6959_v58 = vpop.f32.mrb[13].mxu1  ;;  %v6921_v31 = vpop.f32.mrb[14].mxu0  ;;  %6971 = vmatpush3.bf16.msra.mxu0 %v7227_v48  ;;  %v7231_v39 = vld [vmem:[%s10590_s1 + $0x4a8] sm:$0xff]  }
 0xef8   :  { %v4898_v56 = vpack.c.bf16 %v4790_v2, %v4789_v29  ;;  %v6960_v16 = vadd.f32 %v6959_v58, %v6958_v50  ;;  %v6961_v3 = vpop.f32.mrb[14].mxu1  ;;  %v6922_v6 = vpop.f32.mrb[15].mxu0  ;;  %7011 = vmatpush3.bf16.msra.mxu1 %v7227_v48  ;;  %6972 = vmatprep.subr.bf16.mxu0 %v7228_v42  ;;  %v7232_v58 = vld [vmem:[%s10590_s1 + $0x4f0] sm:$0xff]  }
 0xef9   :  { %v4698_v40 = vadd.f32 %v6920_v54, %v10071_v61  ;;  %v6923_v44 = vadd.f32 %v6922_v6, %v6921_v31  ;;  %v6962_v37 = vpop.f32.mrb[15].mxu1  ;;  %6177 = vmatmul.mubr.msk.bf16.gmra.mrb[24].mxu0 %vm360_vm2, %v4795_v1  ;;  %7012 = vmatprep.subr.bf16.mxu1 %v7228_v42  ;;  %v7234_v31 = vld [vmem:[%s10590_s1 + $0x4f8] sm:$0xff]  }
 0xefa   :  { %v4779_v26 = vadd.f32 %v6960_v16, %v10071_v61  ;;  %v6963_v28 = vadd.f32 %v6962_v37, %v6961_v3  ;;  %6181 = vmatmul.mubr.msk.bf16.gmra.mrb[24].mxu1 %vm360_vm2, %v4898_v56  ;;  %4885 = vmatprep.mubr.bf16.mxu0 %v7312_v7  ;;  %v7238_v56 = vld [vmem:[%s10591_s2 + $0x94] ss:$8 sps:$4 sm:$0x1f]   ;;  %s7313_s2 = smov [#allocation2]  }
 0xefb   :  { %v4701_v48 = vadd.f32 %v6923_v44, %v10071_v61  ;;  %4974 = vmatprep.mubr.bf16.mxu1 %v7312_v7  ;;  %6973 = vmatpush3.bf16.msra.mxu0 %v7229_v33  ;;  %v4710_v42 = vmax.f32 %v4698_v40, 0.0  ;;  %v5376_v16 = vand.u32 %v7238_v56, %v7425_v32  ;;  %s5657_s26 = sshll.u32 %s7313_s2, 4  ;;  %s5658_s26 = int_to_ptr.vmem [resolvable:$true] %s5657_s26 }
 0xefc   :  { %v4782_v29 = vadd.f32 %v6963_v28, %v10071_v61  ;;  %7013 = vmatpush3.bf16.msra.mxu1 %v7229_v33  ;;  %6974 = vmatprep.subr.bf16.mxu0 %v7230_v13  ;;  %v4791_v50 = vmax.f32 %v4779_v26, 0.0  ;;  %v7233_v61 = vld [vmem:[%s10590_s1 + $0x4b0] sm:$0xff]   ;;  %v7235_v33 = vld [vmem:[%s10590_s1 + $0x4b8] sm:$0xff]   ;;  %s7287_s8 = scalar_lea.vmem %s5658_s26, 4096  ;;  %p7292_p1 = scmp.lt.s32.totalorder %s5658_s26, %s5658_s26 }
 0xefd   :  { %v4711_v2 = vmax.f32 %v4701_v48, 0.0  ;;  %7014 = vmatprep.subr.bf16.mxu1 %v7230_v13  ;;  %p7288_p0 = scmp.ne.s32.totalorder %s5658_s26, %s7287_s8  ;;  %p7293_p2 = scmp.lt.s32.totalorder %s7287_s8, %s7287_s8 }
 0xefe   :  { %v4792_v55 = vmax.f32 %v4782_v29, 0.0 }
 0xeff   :  { %v4796_v1 = vpack.c.bf16 %v4711_v2, %v4710_v42  ;;  %6975 = vmatpush3.bf16.msra.mxu0 %v7231_v39  ;;  %p7294_p3 = por %p7293_p2, %p7292_p1 }
 0xf00   :  { %v4899_v54 = vpack.c.bf16 %v4792_v55, %v4791_v50  ;;  %7015 = vmatpush3.bf16.msra.mxu1 %v7231_v39  ;;  %6976 = vmatprep.subr.bf16.mxu0 %v7232_v58  ;;  %v5373_v50 = vand.u32 %v7236_v59, %v7425_v32 }
 0xf01   :  { %6178 = vmatmul.mubr.msk.bf16.gmra.mrb[28].mxu0 %vm360_vm2, %v4796_v1  ;;  %7016 = vmatprep.subr.bf16.mxu1 %v7232_v58  ;;  %p7295_p4 = pnand %p7294_p3, %p7288_p0 }
 0xf02   :  { %6182 = vmatmul.mubr.msk.bf16.gmra.mrb[28].mxu1 %vm360_vm2, %v4899_v54 }
 0xf03   :  { %6977 = vmatpush3.bf16.msra.mxu0 %v7233_v61 }
 0xf04   :  { %7017 = vmatpush3.bf16.msra.mxu1 %v7233_v61  ;;  %6978 = vmatprep.subr.bf16.mxu0 %v7234_v31 }
 0xf05   :  { %7018 = vmatprep.subr.bf16.mxu1 %v7234_v31  ;;  %v10995_v31 = vmax.f32 %v9897_v46, 0.0 }
 0xf07   :  { %6979 = vmatpush3.bf16.msra.mxu0 %v7235_v33 }
 0xf08   :  { %7019 = vmatpush3.bf16.msra.mxu1 %v7235_v33  ;;  %5378 = vmatprep.subr.bf16.mxu0 %v5376_v16 }
 0xf09   :  { %5467 = vmatprep.subr.bf16.mxu1 %v5376_v16  ;;  %v10996_v16 = vmax.f32 %v9901_v8, 0.0  ;;  %v11000_v8 = vmax.f32 %v9917_v21, 0.0 }
 0xfbc   :  { %v4857_v3 = vpop.f32.mrb[16].mxu0 }
 0xfbd   :  { %v4946_v6 = vpop.f32.mrb[16].mxu1  ;;  %v4859_v13 = vpop.f32.mrb[17].mxu0  ;;  %v10158_v26 = vadd.f32 %v4857_v3, %v4446_v12  ;;  %v10994_v12 = vmax.f32 %v9869_v51, 0.0 }
 0xfbe   :  { %v10154_v40 = vadd.f32 %v4859_v13, %v4447_v20  ;;  %v4948_v44 = vpop.f32.mrb[17].mxu1  ;;  %v4861_v37 = vpop.f32.mrb[18].mxu0  ;;  %v10170_v5 = vadd.f32 %v4946_v6, %v4478_v35  ;;  %v10997_v6 = vmax.f32 %v9905_v25, 0.0  ;;  %v11001_v25 = vmax.f32 %v9921_v45, 0.0 }
 0xfbf   :  { %v10162_v28 = vadd.f32 %v4948_v44, %v4479_v19  ;;  %v10166_v48 = vadd.f32 %v4861_v37, %v4448_v15  ;;  %v4950_v39 = vpop.f32.mrb[18].mxu1  ;;  %v4863_v29 = vpop.f32.mrb[19].mxu0  ;;  %v5001_v62 = vmax.f32 %v10158_v26, 0.0  ;;  %v10998_v44 = vmax.f32 %v9909_v63, 0.0  ;;  %v7271_v26 = vld [vmem:[%s10589_s0] sm:$0xff] }
 0xfc0   :  { %v10174_v20 = vadd.f32 %v4950_v39, %v4480_v18  ;;  %v10178_v27 = vadd.f32 %v4863_v29, %v4449_v9  ;;  %v4952_v17 = vpop.f32.mrb[19].mxu1  ;;  %v5002_v19 = vmax.f32 %v10154_v40, 0.0  ;;  %v5033_v42 = vmax.f32 %v10170_v5, 0.0  ;;  %v5606_v40 = vld [vmem:[%s10589_s0 + $0x90] sm:$0xff] }
 0xfc1   :  { %v5003_v15 = vmax.f32 %v10166_v48, 0.0  ;;  %v10186_v41 = vadd.f32 %v4952_v17, %v10994_v12  ;;  %v5034_v9 = vmax.f32 %v10162_v28, 0.0  ;;  %v10999_v29 = vmax.f32 %v9913_v38, 0.0 }
 0xfc2   :  { %v5035_v22 = vmax.f32 %v10174_v20, 0.0  ;;  %v5004_v18 = vmax.f32 %v10178_v27, 0.0  ;;  %v7274_v27 = vld [vmem:[%s10589_s0 + $0x18] sm:$0xff] }
 0xfc3   :  { %v10818_v35 = vmax.f32 %v10186_v41, 0.0  ;;  %v5086_v55 = vpack.c.bf16 %v5003_v15, %v5001_v62 }
 0xfc4   :  { %v5087_v51 = vpack.c.bf16 %v5004_v18, %v5002_v19  ;;  %v4867_v2 = vpop.f32.mrb[20].mxu0  ;;  %v5267_v61 = vpack.c.bf16 %v5035_v22, %v5033_v42 }
 0xfc5   :  { %v5268_v1 = vpack.c.bf16 %v10818_v35, %v5034_v9  ;;  %v4956_v54 = vpop.f32.mrb[20].mxu1  ;;  %v4869_v58 = vpop.f32.mrb[21].mxu0  ;;  %v10218_v3 = vadd.f32 %v4867_v2, %v10996_v16  ;;  %v11002_v2 = vmax.f32 %v9926_v49, 0.0 }
 0xfc6   :  { %v10214_v32 = vadd.f32 %v4869_v58, %v10995_v31  ;;  %v4958_v33 = vpop.f32.mrb[21].mxu1  ;;  %v4871_v56 = vpop.f32.mrb[22].mxu0  ;;  %5226 = vmatprep.mubr.bf16.mxu0 %v5087_v51  ;;  %v10230_v17 = vadd.f32 %v4956_v54, %v10999_v29 }
 0xfc7   :  { %v10222_v13 = vadd.f32 %v4958_v33, %v10997_v6  ;;  %v10226_v37 = vadd.f32 %v4871_v56, %v10998_v44  ;;  %v4960_v39 = vpop.f32.mrb[22].mxu1  ;;  %5307 = vmatprep.mubr.bf16.mxu1 %v5268_v1  ;;  %v4873_v46 = vpop.f32.mrb[23].mxu0  ;;  %5227 = vmatmul.mubr.bf16.vlgmr.msra.gmra.mrb[32].mxu0 %v5086_v55  ;;  %v10817_v45 = vmax.f32 %v10218_v3, 0.0  ;;  %v11003_v44 = vmax.f32 %v9953_v36, 0.0 }
 0xfc8   :  { %v10234_v59 = vadd.f32 %v4960_v39, %v11000_v8  ;;  %v10238_v12 = vadd.f32 %v4873_v46, %v11001_v25  ;;  %v4962_v51 = vpop.f32.mrb[23].mxu1  ;;  %5308 = vmatmul.mubr.bf16.vlgmr.msra.gmra.mrb[32].mxu1 %v5267_v61  ;;  %5379 = vmatpush1.bf16.msra.mxu0 %v5373_v50  ;;  %v10815_v38 = vmax.f32 %v10214_v32, 0.0  ;;  %v10816_v61 = vmax.f32 %v10230_v17, 0.0 }
 0xfc9   :  { %v10803_v63 = vmax.f32 %v10226_v37, 0.0  ;;  %v10243_v55 = vadd.f32 %v4962_v51, %v11002_v2  ;;  %5468 = vmatpush1.bf16.msra.mxu1 %v5373_v50  ;;  %v10814_v54 = vmax.f32 %v10222_v13, 0.0  ;;  %v11004_v8 = vmax.f32 %v9957_v47, 0.0 }
 0xfca   :  { %v10796_v21 = vmax.f32 %v10234_v59, 0.0  ;;  %v10795_v1 = vmax.f32 %v10238_v12, 0.0  ;;  %v11005_v51 = vmax.f32 %v9961_v60, 0.0  ;;  %v11008_v47 = vmax.f32 %v9973_v10, 0.0 }
 0xfcb   :  { %v10794_v58 = vmax.f32 %v10243_v55, 0.0  ;;  %v5088_v31 = vpack.c.bf16 %v10803_v63, %v10817_v45  ;;  %v11009_v60 = vmax.f32 %v9977_v0, 0.0 }
 0xfcc   :  { %v5089_v49 = vpack.c.bf16 %v10795_v1, %v10815_v38  ;;  %v4877_v50 = vpop.f32.mrb[24].mxu0  ;;  %v5269_v6 = vpack.c.bf16 %v10796_v21, %v10816_v61 }
 0xfcd   :  { %v5270_v33 = vpack.c.bf16 %v10794_v58, %v10814_v54  ;;  %v4966_v56 = vpop.f32.mrb[24].mxu1  ;;  %v4879_v16 = vpop.f32.mrb[25].mxu0  ;;  %v10274_v25 = vadd.f32 %v4877_v50, %v11004_v8  ;;  %v11006_v58 = vmax.f32 %v9965_v24, 0.0 }
 0xfce   :  { %v10270_v39 = vadd.f32 %v4879_v16, %v11003_v44  ;;  %v4968_v46 = vpop.f32.mrb[25].mxu1  ;;  %v4881_v29 = vpop.f32.mrb[26].mxu0  ;;  %5234 = vmatprep.mubr.bf16.mxu0 %v5089_v49  ;;  %v11007_v16 = vmax.f32 %v9969_v4, 0.0 }
 0xfcf   :  { %v10278_v2 = vadd.f32 %v4968_v46, %v11005_v51  ;;  %v10282_v1 = vadd.f32 %v4881_v29, %v11006_v58  ;;  %v4970_v21 = vpop.f32.mrb[26].mxu1  ;;  %5315 = vmatprep.mubr.bf16.mxu1 %v5270_v33  ;;  %v4883_v36 = vpop.f32.mrb[27].mxu0  ;;  %5235 = vmatmul.mubr.bf16.gmra.mrb[36].mxu0 %v5088_v31  ;;  %v11010_v58 = vmax.f32 %v9982_v30, 0.0 }
 0xfd0   :  { %v10286_v44 = vadd.f32 %v4966_v56, %v11007_v16  ;;  %v10290_v49 = vadd.f32 %v4970_v21, %v11008_v47  ;;  %v10294_v50 = vadd.f32 %v4883_v36, %v11009_v60  ;;  %v4972_v46 = vpop.f32.mrb[27].mxu1  ;;  %5316 = vmatmul.mubr.bf16.gmra.mrb[36].mxu1 %v5269_v6  ;;  %v10799_v4 = vmax.f32 %v10270_v39, 0.0 }
 0xfd1   :  { %v10798_v24 = vmax.f32 %v10282_v1, 0.0  ;;  %v10299_v33 = vadd.f32 %v4972_v46, %v11010_v58  ;;  %v10802_v21 = vmax.f32 %v10274_v25, 0.0  ;;  %v10801_v0 = vmax.f32 %v10278_v2, 0.0 }
 0xfd2   :  { %v10804_v31 = vmax.f32 %v10290_v49, 0.0  ;;  %v10797_v10 = vmax.f32 %v10294_v50, 0.0  ;;  %v10813_v6 = vmax.f32 %v10286_v44, 0.0  ;;  %v11011_v60 = vmax.f32 %v10009_v34, 0.0 }
 0xfd3   :  { %v10800_v56 = vmax.f32 %v10299_v33, 0.0  ;;  %v5090_v8 = vpack.c.bf16 %v10798_v24, %v10802_v21  ;;  %v11012_v24 = vmax.f32 %v10013_v57, 0.0  ;;  %v11014_v21 = vmax.f32 %v10021_v43, 0.0 }
 0xfd4   :  { %v5091_v30 = vpack.c.bf16 %v10797_v10, %v10799_v4  ;;  %v4887_v29 = vpop.f32.mrb[28].mxu0  ;;  %v5271_v47 = vpack.c.bf16 %v10804_v31, %v10813_v6  ;;  %v11016_v57 = vmax.f32 %v10029_v14, 0.0 }
 0xfd5   :  { %v5272_v51 = vpack.c.bf16 %v10800_v56, %v10801_v0  ;;  %v4976_v36 = vpop.f32.mrb[28].mxu1  ;;  %v4889_v16 = vpop.f32.mrb[29].mxu0  ;;  %v10330_v4 = vadd.f32 %v4887_v29, %v11012_v24  ;;  %v11013_v56 = vmax.f32 %v10017_v11, 0.0  ;;  %v11017_v11 = vmax.f32 %v10033_v23, 0.0 }
 0xfd6   :  { %v10326_v46 = vadd.f32 %v4889_v16, %v11011_v60  ;;  %v4978_v58 = vpop.f32.mrb[29].mxu1  ;;  %v4891_v10 = vpop.f32.mrb[30].mxu0  ;;  %5242 = vmatprep.mubr.bf16.mxu0 %v5091_v30  ;;  %v11015_v16 = vmax.f32 %v10025_v52, 0.0 }
 0xfd7   :  { %v10334_v0 = vadd.f32 %v4978_v58, %v11013_v56  ;;  %v10338_v63 = vadd.f32 %v4891_v10, %v11014_v21  ;;  %v4980_v31 = vpop.f32.mrb[30].mxu1  ;;  %5323 = vmatprep.mubr.bf16.mxu1 %v5272_v51  ;;  %v4893_v34 = vpop.f32.mrb[31].mxu0  ;;  %5243 = vmatmul.mubr.bf16.gmra.mrb[40].mxu0 %v5090_v8  ;;  %v11018_v10 = vmax.f32 %v10038_v53, 0.0 }
 0xfd8   :  { %v10342_v60 = vadd.f32 %v4976_v36, %v11015_v16  ;;  %v10346_v24 = vadd.f32 %v4980_v31, %v11016_v57  ;;  %v10350_v56 = vadd.f32 %v4893_v34, %v11017_v11  ;;  %v4982_v30 = vpop.f32.mrb[31].mxu1  ;;  %5324 = vmatmul.mubr.bf16.gmra.mrb[40].mxu1 %v5271_v47  ;;  %v10810_v52 = vmax.f32 %v10326_v46, 0.0  ;;  %v10385_v57 = vld [vmem:[%s10592_s3 + $0x9] ss:$0 sm:$0xff] }
 0xfd9   :  { %v10808_v43 = vmax.f32 %v10338_v63, 0.0  ;;  %v10355_v21 = vadd.f32 %v4982_v30, %v11018_v10  ;;  %v10812_v31 = vmax.f32 %v10330_v4, 0.0  ;;  %v10809_v23 = vmax.f32 %v10334_v0, 0.0 }
 0xfda   :  { %v10807_v29 = vmax.f32 %v10346_v24, 0.0  ;;  %v10806_v14 = vmax.f32 %v10350_v56, 0.0  ;;  %v10811_v51 = vmax.f32 %v10342_v60, 0.0 }
 0xfdb   :  { %v10805_v8 = vmax.f32 %v10355_v21, 0.0  ;;  %v5092_v36 = vpack.c.bf16 %v10808_v43, %v10812_v31 }
 0xfdc   :  { %v5093_v53 = vpack.c.bf16 %v10806_v14, %v10810_v52  ;;  %v5273_v58 = vpack.c.bf16 %v10807_v29, %v10811_v51 }
 0xfdd   :  { %v5274_v47 = vpack.c.bf16 %v10805_v8, %v10809_v23 }
 0xfde   :  { %5250 = vmatprep.mubr.bf16.mxu0 %v5093_v53 }
 0xfdf   :  { %5331 = vmatprep.mubr.bf16.mxu1 %v5274_v47  ;;  %5251 = vmatmul.mubr.bf16.gmra.mrb[44].mxu0 %v5092_v36 }
 0xfe0   :  { %5332 = vmatmul.mubr.bf16.gmra.mrb[44].mxu1 %v5273_v58  ;;  %5410 = vmatprep.mubr.bf16.mxu0 %v7312_v7 }
 0xfe1   :  { %5499 = vmatprep.mubr.bf16.mxu1 %v7312_v7 }
0x109a   :  { %v6980_v34 = vpop.f32.mrb[32].mxu0 }
0x109b   :  { %v7020_v16 = vpop.f32.mrb[32].mxu1  ;;  %v6981_v11 = vpop.f32.mrb[33].mxu0 }
0x109c   :  { %v6982_v30 = vadd.f32 %v6981_v11, %v6980_v34  ;;  %v7021_v10 = vpop.f32.mrb[33].mxu1  ;;  %v6983_v8 = vpop.f32.mrb[34].mxu0 }
0x109d   :  { %v7022_v14 = vadd.f32 %v7021_v10, %v7020_v16  ;;  %v7023_v53 = vpop.f32.mrb[34].mxu1  ;;  %v6984_v47 = vpop.f32.mrb[35].mxu0 }
0x109e   :  { %v5229_v36 = vadd.f32 %v6982_v30, %v10385_v57  ;;  %v6985_v58 = vadd.f32 %v6984_v47, %v6983_v8  ;;  %v7024_v29 = vpop.f32.mrb[35].mxu1 }
0x109f   :  { %v5310_v43 = vadd.f32 %v7022_v14, %v10385_v57  ;;  %v7025_v23 = vadd.f32 %v7024_v29, %v7023_v53 }
0x10a0   :  { %v5232_v52 = vadd.f32 %v6985_v58, %v10385_v57  ;;  %v5259_v31 = vmax.f32 %v5229_v36, 0.0 }
0x10a1   :  { %v5313_v51 = vadd.f32 %v7025_v23, %v10385_v57  ;;  %v5340_v34 = vmax.f32 %v5310_v43, 0.0 }
0x10a2   :  { %v5260_v6 = vmax.f32 %v5232_v52, 0.0  ;;  %v6986_v54 = vpop.f32.mrb[36].mxu0 }
0x10a3   :  { %v5341_v11 = vmax.f32 %v5313_v51, 0.0  ;;  %v7026_v38 = vpop.f32.mrb[36].mxu1  ;;  %v6987_v16 = vpop.f32.mrb[37].mxu0 }
0x10a4   :  { %v5348_v10 = vpack.c.bf16 %v5260_v6, %v5259_v31  ;;  %v6988_v61 = vadd.f32 %v6987_v16, %v6986_v54  ;;  %v7027_v45 = vpop.f32.mrb[37].mxu1  ;;  %v6989_v30 = vpop.f32.mrb[38].mxu0 }
0x10a5   :  { %v5451_v8 = vpack.c.bf16 %v5341_v11, %v5340_v34  ;;  %v7028_v47 = vadd.f32 %v7027_v45, %v7026_v38  ;;  %v7029_v35 = vpop.f32.mrb[38].mxu1  ;;  %v6990_v14 = vpop.f32.mrb[39].mxu0 }
0x10a6   :  { %v5237_v29 = vadd.f32 %v6988_v61, %v10385_v57  ;;  %v6991_v53 = vadd.f32 %v6990_v14, %v6989_v30  ;;  %v7030_v58 = vpop.f32.mrb[39].mxu1  ;;  %6236 = vmatmul.mubr.msk.bf16.vlgmr.msra.gmra.mrb[48].mxu0 %vm360_vm2, %v5348_v10 }
0x10a7   :  { %v5318_v52 = vadd.f32 %v7028_v47, %v10385_v57  ;;  %v7031_v43 = vadd.f32 %v7030_v58, %v7029_v35  ;;  %6240 = vmatmul.mubr.msk.bf16.vlgmr.msra.gmra.mrb[48].mxu1 %vm360_vm2, %v5451_v8  ;;  %5420 = vmatprep.mubr.bf16.mxu0 %v7312_v7 }
0x10a8   :  { %v5240_v54 = vadd.f32 %v6991_v53, %v10385_v57  ;;  %5509 = vmatprep.mubr.bf16.mxu1 %v7312_v7  ;;  %v5261_v45 = vmax.f32 %v5237_v29, 0.0 }
0x10a9   :  { %v5321_v38 = vadd.f32 %v7031_v43, %v10385_v57  ;;  %v5342_v31 = vmax.f32 %v5318_v52, 0.0 }
0x10aa   :  { %v5262_v6 = vmax.f32 %v5240_v54, 0.0  ;;  %v6992_v61 = vpop.f32.mrb[40].mxu0 }
0x10ab   :  { %v5343_v23 = vmax.f32 %v5321_v38, 0.0  ;;  %v7032_v51 = vpop.f32.mrb[40].mxu1  ;;  %v6993_v36 = vpop.f32.mrb[41].mxu0 }
0x10ac   :  { %v5349_v34 = vpack.c.bf16 %v5262_v6, %v5261_v45  ;;  %v6994_v11 = vadd.f32 %v6993_v36, %v6992_v61  ;;  %v7033_v35 = vpop.f32.mrb[41].mxu1  ;;  %v6995_v16 = vpop.f32.mrb[42].mxu0 }
0x10ad   :  { %v5452_v10 = vpack.c.bf16 %v5343_v23, %v5342_v31  ;;  %v7034_v30 = vadd.f32 %v7033_v35, %v7032_v51  ;;  %v7035_v8 = vpop.f32.mrb[42].mxu1  ;;  %v6996_v47 = vpop.f32.mrb[43].mxu0 }
0x10ae   :  { %v5245_v14 = vadd.f32 %v6994_v11, %v10385_v57  ;;  %v6997_v53 = vadd.f32 %v6996_v47, %v6995_v16  ;;  %v7036_v58 = vpop.f32.mrb[43].mxu1  ;;  %6237 = vmatmul.mubr.msk.bf16.gmra.mrb[52].mxu0 %vm360_vm2, %v5349_v34 }
0x10af   :  { %v5326_v29 = vadd.f32 %v7034_v30, %v10385_v57  ;;  %v7037_v52 = vadd.f32 %v7036_v58, %v7035_v8  ;;  %6241 = vmatmul.mubr.msk.bf16.gmra.mrb[52].mxu1 %vm360_vm2, %v5452_v10  ;;  %5430 = vmatprep.mubr.bf16.mxu0 %v7312_v7 }
0x10b0   :  { %v5248_v43 = vadd.f32 %v6997_v53, %v10385_v57  ;;  %5519 = vmatprep.mubr.bf16.mxu1 %v7312_v7  ;;  %v5263_v38 = vmax.f32 %v5245_v14, 0.0 }
0x10b1   :  { %v5329_v54 = vadd.f32 %v7037_v52, %v10385_v57  ;;  %v5344_v61 = vmax.f32 %v5326_v29, 0.0 }
0x10b2   :  { %v5264_v45 = vmax.f32 %v5248_v43, 0.0  ;;  %v6998_v6 = vpop.f32.mrb[44].mxu0 }
0x10b3   :  { %v5345_v31 = vmax.f32 %v5329_v54, 0.0  ;;  %v7038_v23 = vpop.f32.mrb[44].mxu1  ;;  %v6999_v51 = vpop.f32.mrb[45].mxu0 }
0x10b4   :  { %v5350_v36 = vpack.c.bf16 %v5264_v45, %v5263_v38  ;;  %v7000_v34 = vadd.f32 %v6999_v51, %v6998_v6  ;;  %v7039_v11 = vpop.f32.mrb[45].mxu1  ;;  %v7001_v35 = vpop.f32.mrb[46].mxu0 }
0x10b5   :  { %v5453_v16 = vpack.c.bf16 %v5345_v31, %v5344_v61  ;;  %v7040_v10 = vadd.f32 %v7039_v11, %v7038_v23  ;;  %v7041_v30 = vpop.f32.mrb[46].mxu1  ;;  %v7002_v8 = vpop.f32.mrb[47].mxu0 }
0x10b6   :  { %v5253_v47 = vadd.f32 %v7000_v34, %v10385_v57  ;;  %v7003_v53 = vadd.f32 %v7002_v8, %v7001_v35  ;;  %v7042_v58 = vpop.f32.mrb[47].mxu1  ;;  %6238 = vmatmul.mubr.msk.bf16.gmra.mrb[56].mxu0 %vm360_vm2, %v5350_v36 }
0x10b7   :  { %v5334_v14 = vadd.f32 %v7040_v10, %v10385_v57  ;;  %v7043_v29 = vadd.f32 %v7042_v58, %v7041_v30  ;;  %6242 = vmatmul.mubr.msk.bf16.gmra.mrb[56].mxu1 %vm360_vm2, %v5453_v16  ;;  %5440 = vmatprep.mubr.bf16.mxu0 %v7312_v7  ;;  %v5605_v16 = vld [vmem:[%s10589_s0 + $0x88] sm:$0xff] }
0x10b8   :  { %v5256_v52 = vadd.f32 %v7003_v53, %v10385_v57  ;;  %5529 = vmatprep.mubr.bf16.mxu1 %v7312_v7  ;;  %v5265_v54 = vmax.f32 %v5253_v47, 0.0  ;;  %v5604_v7 = vld [vmem:[%s10589_s0 + $0x80] sm:$0xff]  ;;  %v7272_v47 = vld [vmem:[%s10589_s0 + $0x8] sm:$0xff] }
0x10b9   :  { %v5337_v43 = vadd.f32 %v7043_v29, %v10385_v57  ;;  %v5346_v45 = vmax.f32 %v5334_v14, 0.0  ;;  %v7273_v14 = vld [vmem:[%s10589_s0 + $0x10] sm:$0xff] }
0x10ba   :  { %v5266_v38 = vmax.f32 %v5256_v52, 0.0  ;;  %v11019_v52 = vmax.f32 %v10186_v41, 0.0 }
0x10bb   :  { %v5347_v6 = vmax.f32 %v5337_v43, 0.0 }
0x10bc   :  { %v5351_v61 = vpack.c.bf16 %v5266_v38, %v5265_v54  ;;  %v11020_v38 = vmax.f32 %v10218_v3, 0.0  ;;  %v7275_v3 = vld [vmem:[%s10589_s0 + $0x20] sm:$0xff] }
0x10bd   :  { %v5454_v31 = vpack.c.bf16 %v5347_v6, %v5346_v45  ;;  %v5608_v6 = vld [vmem:[%s10589_s0 + $0xa0] sm:$0xff] }
0x10be   :  { %6239 = vmatmul.mubr.msk.bf16.gmra.mrb[60].mxu0 %vm360_vm2, %v5351_v61 }
0x10bf   :  { %6243 = vmatmul.mubr.msk.bf16.gmra.mrb[60].mxu1 %vm360_vm2, %v5454_v31  ;;  %v11021_v31 = vmax.f32 %v10230_v17, 0.0  ;;  %v11024_v17 = vmax.f32 %v10226_v37, 0.0 }
0x1179   :  { %v5412_v23 = vpop.f32.mrb[48].mxu0 }
0x117a   :  { %v5540_v51 = vadd.f32 %v5412_v23, %v5001_v62  ;;  %v5501_v36 = vpop.f32.mrb[48].mxu1  ;;  %v5414_v57 = vpop.f32.mrb[49].mxu0 }
0x117b   :  { %v5556_v34 = vadd.f32 %v5501_v36, %v5033_v42  ;;  %v5541_v11 = vadd.f32 %v5414_v57, %v5002_v19  ;;  %v5503_v35 = vpop.f32.mrb[49].mxu1  ;;  %v5416_v10 = vpop.f32.mrb[50].mxu0  ;;  %v5609_v57 = vld [vmem:[%s10589_s0 + $0xa8] sm:$0xff] }
0x117c   :  { %v5572_v62 = vadd.f32 %v7271_v26, %v5540_v51  ;;  %v5557_v30 = vadd.f32 %v5503_v35, %v5034_v9  ;;  %v5542_v5 = vadd.f32 %v5416_v10, %v5003_v15  ;;  %v5505_v42 = vpop.f32.mrb[50].mxu1  ;;  %v5418_v19 = vpop.f32.mrb[51].mxu0  ;;  %v5607_v15 = vld [vmem:[%s10589_s0 + $0x98] sm:$0xff]  ;;  %v11022_v51 = vmax.f32 %v10214_v32, 0.0  ;;  %v5610_v32 = vld [vmem:[%s10589_s0 + $0xb0] sm:$0xff] }
0x117d   :  { %v5620_v8 = vadd.f32 %v5604_v7, %v5556_v34  ;;  %v5573_v53 = vadd.f32 %v7272_v47, %v5541_v11  ;;  %v5558_v58 = vadd.f32 %v5505_v42, %v5035_v22  ;;  %v5543_v28 = vadd.f32 %v5418_v19, %v5004_v18  ;;  %v5507_v48 = vpop.f32.mrb[51].mxu1  ;;  %v5611_v47 = vld [vmem:[%s10589_s0 + $0xb8] sm:$0xff] }
0x117e   :  { %5588 = vst [vmem:[#allocation2] sm:$0xff] %v5572_v62  ;;  %v5621_v9 = vadd.f32 %v5605_v16, %v5557_v30  ;;  %v5574_v29 = vadd.f32 %v7273_v14, %v5542_v5  ;;  %v5559_v43 = vadd.f32 %v5507_v48, %v11019_v52  ;;  %v11023_v35 = vmax.f32 %v10222_v13, 0.0  ;;  %v7276_v5 = vld [vmem:[%s10589_s0 + $0x28] sm:$0xff] }
0x117f   :  { %5636 = vst [vmem:[#allocation2 + $0x80] sm:$0xff] %v5620_v8  ;;  %5589 = vst [vmem:[#allocation2 + $0x8] sm:$0xff] %v5573_v53  ;;  %v5622_v20 = vadd.f32 %v5606_v40, %v5558_v58  ;;  %v5575_v22 = vadd.f32 %v7274_v27, %v5543_v28  ;;  %v11025_v40 = vmax.f32 %v10234_v59, 0.0  ;;  %v11026_v13 = vmax.f32 %v10238_v12, 0.0  ;;  %v7277_v58 = vld [vmem:[%s10589_s0 + $0x30] sm:$0xff]  ;;  %v7278_v12 = vld [vmem:[%s10589_s0 + $0x38] sm:$0xff] }
0x1180   :  { %5637 = vst [vmem:[#allocation2 + $0x88] sm:$0xff] %v5621_v9  ;;  %5590 = vst [vmem:[#allocation2 + $0x10] sm:$0xff] %v5574_v29  ;;  %v5623_v18 = vadd.f32 %v5607_v15, %v5559_v43  ;;  %v11027_v48 = vmax.f32 %v10243_v55, 0.0  ;;  %v11028_v52 = vmax.f32 %v10274_v25, 0.0  ;;  %v7279_v25 = vld [vmem:[%s10589_s0 + $0x40] sm:$0xff] }
0x1181   :  { %5638 = vst [vmem:[#allocation2 + $0x90] sm:$0xff] %v5622_v20  ;;  %5591 = vst [vmem:[#allocation2 + $0x18] sm:$0xff] %v5575_v22  ;;  %v5422_v54 = vpop.f32.mrb[52].mxu0  ;;  %v5612_v20 = vld [vmem:[%s10589_s0 + $0xc0] sm:$0xff]  ;;  %v11029_v22 = vmax.f32 %v10286_v44, 0.0  ;;  %v11032_v44 = vmax.f32 %v10282_v1, 0.0 }
0x1182   :  { %5639 = vst [vmem:[#allocation2 + $0x98] sm:$0xff] %v5623_v18  ;;  %v5544_v45 = vadd.f32 %v5422_v54, %v11020_v38  ;;  %v5511_v41 = vpop.f32.mrb[52].mxu1  ;;  %v5424_v61 = vpop.f32.mrb[53].mxu0  ;;  %v11030_v54 = vmax.f32 %v10270_v39, 0.0  ;;  %v5614_v39 = vld [vmem:[%s10589_s0 + $0xd0] sm:$0xff] }
0x1183   :  { %v5560_v23 = vadd.f32 %v5511_v41, %v11021_v31  ;;  %v5545_v36 = vadd.f32 %v5424_v61, %v11022_v51  ;;  %v5513_v7 = vpop.f32.mrb[53].mxu1  ;;  %v5426_v34 = vpop.f32.mrb[54].mxu0  ;;  %v5613_v41 = vld [vmem:[%s10589_s0 + $0xc8] sm:$0xff]  ;;  %v11031_v31 = vmax.f32 %v10278_v2, 0.0  ;;  %v11034_v2 = vmax.f32 %v10294_v50, 0.0  ;;  %v7282_v50 = vld [vmem:[%s10589_s0 + $0x58] sm:$0xff] }
0x1184   :  { %v5576_v11 = vadd.f32 %v7275_v3, %v5544_v45  ;;  %v5561_v16 = vadd.f32 %v5513_v7, %v11023_v35  ;;  %v5546_v10 = vadd.f32 %v5426_v34, %v11024_v17  ;;  %v5515_v26 = vpop.f32.mrb[54].mxu1  ;;  %v5428_v62 = vpop.f32.mrb[55].mxu0  ;;  %v7280_v34 = vld [vmem:[%s10589_s0 + $0x48] sm:$0xff]  ;;  %v5615_v17 = vld [vmem:[%s10589_s0 + $0xd8] sm:$0xff] }
0x1185   :  { %v5624_v30 = vadd.f32 %v5608_v6, %v5560_v23  ;;  %v5577_v42 = vadd.f32 %v7276_v5, %v5545_v36  ;;  %v5562_v19 = vadd.f32 %v5515_v26, %v11025_v40  ;;  %v5547_v8 = vadd.f32 %v5428_v62, %v11026_v13  ;;  %v5517_v37 = vpop.f32.mrb[55].mxu1  ;;  %v7281_v26 = vld [vmem:[%s10589_s0 + $0x50] sm:$0xff] }
0x1186   :  { %5592 = vst [vmem:[#allocation2 + $0x20] sm:$0xff] %v5576_v11  ;;  %v5625_v53 = vadd.f32 %v5609_v57, %v5561_v16  ;;  %v5578_v28 = vadd.f32 %v7277_v58, %v5546_v10  ;;  %v5563_v15 = vadd.f32 %v5517_v37, %v11027_v48  ;;  %v11033_v11 = vmax.f32 %v10290_v49, 0.0 }
0x1187   :  { %5640 = vst [vmem:[#allocation2 + $0xa0] sm:$0xff] %v5624_v30  ;;  %5593 = vst [vmem:[#allocation2 + $0x28] sm:$0xff] %v5577_v42  ;;  %v5626_v59 = vadd.f32 %v5610_v32, %v5562_v19  ;;  %v5579_v9 = vadd.f32 %v7278_v12, %v5547_v8  ;;  %v11035_v62 = vmax.f32 %v10299_v33, 0.0  ;;  %v11036_v19 = vmax.f32 %v10330_v4, 0.0  ;;  %v5616_v8 = vld [vmem:[%s10589_s0 + $0xe0] sm:$0xff] }
0x1188   :  { %5641 = vst [vmem:[#allocation2 + $0xa8] sm:$0xff] %v5625_v53  ;;  %5594 = vst [vmem:[#allocation2 + $0x30] sm:$0xff] %v5578_v28  ;;  %v5627_v14 = vadd.f32 %v5611_v47, %v5563_v15  ;;  %v11037_v47 = vmax.f32 %v10342_v60, 0.0  ;;  %v11038_v58 = vmax.f32 %v10326_v46, 0.0  ;;  %v5617_v15 = vld [vmem:[%s10589_s0 + $0xe8] sm:$0xff]  ;;  %v7283_v4 = vld [vmem:[%s10589_s0 + $0x60] sm:$0xff] }
0x1189   :  { %5642 = vst [vmem:[#allocation2 + $0xb0] sm:$0xff] %v5626_v59  ;;  %5595 = vst [vmem:[#allocation2 + $0x38] sm:$0xff] %v5579_v9  ;;  %v5432_v29 = vpop.f32.mrb[56].mxu0  ;;  %v11039_v9 = vmax.f32 %v10334_v0, 0.0  ;;  %v11040_v60 = vmax.f32 %v10338_v63, 0.0  ;;  %v5618_v46 = vld [vmem:[%s10589_s0 + $0xf0] sm:$0xff] }
0x118a   :  { %5643 = vst [vmem:[#allocation2 + $0xb8] sm:$0xff] %v5627_v14  ;;  %v5548_v43 = vadd.f32 %v5432_v29, %v11028_v52  ;;  %v5521_v55 = vpop.f32.mrb[56].mxu1  ;;  %v5434_v27 = vpop.f32.mrb[57].mxu0  ;;  %v11041_v0 = vmax.f32 %v10346_v24, 0.0  ;;  %v11042_v63 = vmax.f32 %v10350_v56, 0.0  ;;  %v7286_v56 = vld [vmem:[%s10589_s0 + $0x78] sm:$0xff] }
0x118b   :  { %v5564_v18 = vadd.f32 %v5521_v55, %v11029_v22  ;;  %v5549_v38 = vadd.f32 %v5434_v27, %v11030_v54  ;;  %v5523_v45 = vpop.f32.mrb[57].mxu1  ;;  %v5436_v6 = vpop.f32.mrb[58].mxu0 }
0x118c   :  { %v5580_v61 = vadd.f32 %v7279_v25, %v5548_v43  ;;  %v5565_v23 = vadd.f32 %v5523_v45, %v11031_v31  ;;  %v5550_v51 = vadd.f32 %v5436_v6, %v11032_v44  ;;  %v5525_v36 = vpop.f32.mrb[58].mxu1  ;;  %v5438_v7 = vpop.f32.mrb[59].mxu0  ;;  %v11043_v25 = vmax.f32 %v10355_v21, 0.0 }
0x118d   :  { %v5628_v57 = vadd.f32 %v5612_v20, %v5564_v18  ;;  %v5581_v3 = vadd.f32 %v7280_v34, %v5549_v38  ;;  %v5566_v35 = vadd.f32 %v5525_v36, %v11033_v11  ;;  %v5551_v16 = vadd.f32 %v5438_v7, %v11034_v2  ;;  %v5527_v1 = vpop.f32.mrb[59].mxu1  ;;  %v7284_v20 = vld [vmem:[%s10589_s0 + $0x68] sm:$0xff]  ;;  %v5619_v38 = vld [vmem:[%s10589_s0 + $0xf8] sm:$0xff] }
0x118e   :  { %5596 = vst [vmem:[#allocation2 + $0x40] sm:$0xff] %v5580_v61  ;;  %v5629_v10 = vadd.f32 %v5613_v41, %v5565_v23  ;;  %v5582_v32 = vadd.f32 %v7281_v26, %v5550_v51  ;;  %v5567_v30 = vadd.f32 %v5527_v1, %v11035_v62  ;;  %v7285_v41 = vld [vmem:[%s10589_s0 + $0x70] sm:$0xff] }
0x118f   :  { %5644 = vst [vmem:[#allocation2 + $0xc0] sm:$0xff] %v5628_v57  ;;  %5597 = vst [vmem:[#allocation2 + $0x48] sm:$0xff] %v5581_v3  ;;  %v5630_v49 = vadd.f32 %v5614_v39, %v5566_v35  ;;  %v5583_v5 = vadd.f32 %v7282_v50, %v5551_v16 }
0x1190   :  { %5645 = vst [vmem:[#allocation2 + $0xc8] sm:$0xff] %v5629_v10  ;;  %5598 = vst [vmem:[#allocation2 + $0x50] sm:$0xff] %v5582_v32  ;;  %v5631_v42 = vadd.f32 %v5615_v17, %v5567_v30 }
0x1191   :  { %5646 = vst [vmem:[#allocation2 + $0xd0] sm:$0xff] %v5630_v49  ;;  %5599 = vst [vmem:[#allocation2 + $0x58] sm:$0xff] %v5583_v5  ;;  %v5442_v40 = vpop.f32.mrb[60].mxu0 }
0x1192   :  { %5647 = vst [vmem:[#allocation2 + $0xd8] sm:$0xff] %v5631_v42  ;;  %v5552_v13 = vadd.f32 %v5442_v40, %v11036_v19  ;;  %v5531_v33 = vpop.f32.mrb[60].mxu1  ;;  %v5444_v37 = vpop.f32.mrb[61].mxu0 }
0x1193   :  { %v5568_v53 = vadd.f32 %v5531_v33, %v11037_v47  ;;  %v5553_v28 = vadd.f32 %v5444_v37, %v11038_v58  ;;  %v5533_v48 = vpop.f32.mrb[61].mxu1  ;;  %v5446_v59 = vpop.f32.mrb[62].mxu0 }
0x1194   :  { %v5584_v12 = vadd.f32 %v7283_v4, %v5552_v13  ;;  %v5569_v14 = vadd.f32 %v5533_v48, %v11039_v9  ;;  %v5554_v29 = vadd.f32 %v5446_v59, %v11040_v60  ;;  %v5535_v52 = vpop.f32.mrb[62].mxu1  ;;  %v5448_v43 = vpop.f32.mrb[63].mxu0 }
0x1195   :  { %v5632_v55 = vadd.f32 %v5616_v8, %v5568_v53  ;;  %v5585_v27 = vadd.f32 %v7284_v20, %v5553_v28  ;;  %v5570_v22 = vadd.f32 %v5535_v52, %v11041_v0  ;;  %v5555_v18 = vadd.f32 %v5448_v43, %v11042_v63  ;;  %v5537_v54 = vpop.f32.mrb[63].mxu1 }
0x1196   :  { %5600 = vst [vmem:[#allocation2 + $0x60] sm:$0xff] %v5584_v12  ;;  %v5633_v45 = vadd.f32 %v5617_v15, %v5569_v14  ;;  %v5586_v6 = vadd.f32 %v7285_v41, %v5554_v29  ;;  %v5571_v61 = vadd.f32 %v5537_v54, %v11043_v25 }
0x1197   :  { %5648 = vst [vmem:[#allocation2 + $0xe0] sm:$0xff] %v5632_v55  ;;  %5601 = vst [vmem:[#allocation2 + $0x68] sm:$0xff] %v5585_v27  ;;  %v5634_v24 = vadd.f32 %v5618_v46, %v5570_v22  ;;  %v5587_v31 = vadd.f32 %v7286_v56, %v5555_v18 }
0x1198   :  { %5649 = vst [vmem:[#allocation2 + $0xe8] sm:$0xff] %v5633_v45  ;;  %5602 = vst [vmem:[#allocation2 + $0x70] sm:$0xff] %v5586_v6  ;;  %v5635_v23 = vadd.f32 %v5619_v38, %v5571_v61 }
0x1199   :  { %5650 = vst [vmem:[#allocation2 + $0xf0] sm:$0xff] %v5634_v24  ;;  %5603 = vst [vmem:[#allocation2 + $0x78] sm:$0xff] %v5587_v31 }
0x119a   :  { %5651 = vst [vmem:[#allocation2 + $0xf8] sm:$0xff] %v5635_v23 }
0x119b   :  { %7298 = shalt.err (!%p7295_p4)
}
0x119c   :  { %s7299_s11 = scalar_lea.hbm %s10593_s4, 4096 }
0x119d   :  { %p7300_p5 = scmp.ne.s32.totalorder %s10593_s4, %s7299_s11  ;;  %p7303_p6 = scmp.lt.u32.totalorder %s7299_s11, %s10593_s4 }
0x119f   :  { %p7305_p7 = pnand %p7303_p6, %p7300_p5 }
0x11a1   :  { %7308 = shalt.err (!%p7305_p7)
}
0x11a2   :  { %s7314_s15 = smov 256   ;;  %s7315_s16 = smov 16  }
0x11a3   :  { %5663 = dma.vmem_to_hbm [thread:$0]  %s5658_s26, 4096, %s10593_s4, [#allocation3], %s7314_s15, %s7314_s15, %s7315_s16  }
0x11a4   :  { %7309 = dma.done.wait [#allocation3], 4096  }
0x11a5   :  { %7310 = vsyncadd [#allocation3], 4294963200 }
0x11a6   :  { %5667 = vsyncpa [#allocation3], 1 }

</bundles_post_ra>
